<compile_context>
chip_gen: v6e
topology: v6e:2x2x1
jax: 0.10.0
libtpu: 0.0.40
codegen_flags: <defaults>
</compile_context>

<pallas_src>
import functools
import math

import jax
import jax.numpy as jnp
from jax import lax
from jax.experimental import pallas as pl
from jax.experimental.pallas import tpu as pltpu

_VMEM_LIMIT_CACHE = [None]


def _vmem_limit():
    """~3/4 of physical VMEM, conservative fallback if the query fails."""
    if _VMEM_LIMIT_CACHE[0] is None:
        try:
            cap = int(pltpu.get_tpu_info().vmem_capacity_bytes)
        except Exception:
            cap = 64 * 1024 * 1024
        if cap <= 0:
            cap = 64 * 1024 * 1024
        _VMEM_LIMIT_CACHE[0] = int(max(32 * 1024 * 1024,
                                       min(cap * 3 // 4, 100 * 1024 * 1024)))
    return _VMEM_LIMIT_CACHE[0]


def _row_tile(m, target=512):
    return min(((m + 7) // 8) * 8, target)


def _pad_rows(x, tm):
    pad = (-x.shape[0]) % tm
    if pad:
        x = jnp.concatenate([x, jnp.zeros((pad,) + x.shape[1:], x.dtype)], axis=0)
    return x


def _chunk_len(L):
    for tc in (32, 16, 8, 4, 2):
        if L % tc == 0:
            return tc
    return 1


def _ed_tile(ED, target=512):
    if ED <= target:
        return ED
    for t in range(target, 0, -1):
        if ED % t == 0:
            return t
    return ED


def _softplus(x):
    return jnp.maximum(x, 0.0) + jnp.log1p(jnp.exp(-jnp.abs(x)))


# ----------------------------------------------------------------------------
# Fused embeddings + interleave + embedding LayerNorm
# ----------------------------------------------------------------------------

def _embed_kernel(st_ref, rt_ref, rw_ref, dn_ref,
                  ws_ref, bs_ref, wr_ref, br_ref, ww_ref, bw_ref,
                  dtab_ref, g_ref, bln_ref, o_ref, *, H, eps):
    g = g_ref[...]
    beta = bln_ref[...]

    def ln(v):
        mu = jnp.mean(v, axis=-1, keepdims=True)
        vc = v - mu
        var = jnp.mean(vc * vc, axis=-1, keepdims=True)
        return vc * lax.rsqrt(var + eps) * g + beta

    se = jnp.dot(st_ref[...].astype(jnp.bfloat16),
                 ws_ref[...].astype(jnp.bfloat16),
                 preferred_element_type=jnp.float32) + bs_ref[...]
    re = rt_ref[...] * wr_ref[...] + br_ref[...]        # K=1 linear -> VPU
    we = rw_ref[...] * ww_ref[...] + bw_ref[...]        # K=1 linear -> VPU
    dn = dn_ref[...]
    de = jnp.where(dn == 0, dtab_ref[0:1, :],
                   jnp.where(dn == 1, dtab_ref[1:2, :], dtab_ref[2:3, :]))
    # interleave (return, state, reward, done) along lanes; row r of the
    # (M, 4H) output reshapes directly to 4 consecutive tokens of (B, 4T, H).
    o_ref[:, 0 * H:1 * H] = ln(re)
    o_ref[:, 1 * H:2 * H] = ln(se)
    o_ref[:, 2 * H:3 * H] = ln(we)
    o_ref[:, 3 * H:4 * H] = ln(de)


def embed_tokens(states2d, rtg2d, rew2d, done2d, params, eps=1e-5):
    M, SD = states2d.shape
    H = params["embed_state_w"].shape[1]
    tm = _row_tile(M)
    st = _pad_rows(states2d.astype(jnp.float32), tm)
    rt = _pad_rows(rtg2d.astype(jnp.float32), tm)
    rw = _pad_rows(rew2d.astype(jnp.float32), tm)
    dn = _pad_rows(done2d.astype(jnp.int32), tm)
    Mp = st.shape[0]
    row = lambda a: a.reshape(1, -1).astype(jnp.float32)
    out = pl.pallas_call(
        functools.partial(_embed_kernel, H=H, eps=eps),
        out_shape=jax.ShapeDtypeStruct((Mp, 4 * H), jnp.float32),
        grid=(Mp // tm,),
        in_specs=[
            pl.BlockSpec((tm, SD), lambda i: (i, 0)),
            pl.BlockSpec((tm, 1), lambda i: (i, 0)),
            pl.BlockSpec((tm, 1), lambda i: (i, 0)),
            pl.BlockSpec((tm, 1), lambda i: (i, 0)),
            pl.BlockSpec((SD, H), lambda i: (0, 0)),
            pl.BlockSpec((1, H), lambda i: (0, 0)),
            pl.BlockSpec((1, H), lambda i: (0, 0)),
            pl.BlockSpec((1, H), lambda i: (0, 0)),
            pl.BlockSpec((1, H), lambda i: (0, 0)),
            pl.BlockSpec((1, H), lambda i: (0, 0)),
            pl.BlockSpec((3, H), lambda i: (0, 0)),
            pl.BlockSpec((1, H), lambda i: (0, 0)),
            pl.BlockSpec((1, H), lambda i: (0, 0)),
        ],
        out_specs=pl.BlockSpec((tm, 4 * H), lambda i: (i, 0)),
        compiler_params=pltpu.CompilerParams(
            dimension_semantics=("parallel",), vmem_limit_bytes=_vmem_limit()),
    )(st, rt, rw, dn,
      params["embed_state_w"].astype(jnp.float32), row(params["embed_state_b"]),
      row(params["embed_return_w"]), row(params["embed_return_b"]),
      row(params["embed_reward_w"]), row(params["embed_reward_b"]),
      params["embed_done_w"].astype(jnp.float32),
      row(params["embed_ln_w"]), row(params["embed_ln_b"]))
    return out[:M]


# ----------------------------------------------------------------------------
# Fused RMSNorm + in_proj (single merged (D, 2*ED) bf16 matmul, bf16 output)
# ----------------------------------------------------------------------------

def _rms_inproj_kernel(x_ref, g_ref, w_ref, o_ref, *, eps):
    x = x_ref[...]
    ms = jnp.mean(x * x, axis=-1, keepdims=True)
    xn = (x * lax.rsqrt(ms + eps) * g_ref[...]).astype(jnp.bfloat16)
    o_ref[...] = jnp.dot(xn, w_ref[...],
                         preferred_element_type=jnp.float32).astype(o_ref.dtype)


def rmsnorm_in_proj(x2d, norm_w, w_in, eps=1e-5):
    M, D = x2d.shape
    N2 = w_in.shape[1]
    tm = _row_tile(M)
    xp = _pad_rows(x2d.astype(jnp.float32), tm)
    out = pl.pallas_call(
        functools.partial(_rms_inproj_kernel, eps=eps),
        out_shape=jax.ShapeDtypeStruct((xp.shape[0], N2), jnp.bfloat16),
        grid=(xp.shape[0] // tm,),
        in_specs=[
            pl.BlockSpec((tm, D), lambda i: (i, 0)),
            pl.BlockSpec((1, D), lambda i: (0, 0)),
            pl.BlockSpec((D, N2), lambda i: (0, 0)),
        ],
        out_specs=pl.BlockSpec((tm, N2), lambda i: (i, 0)),
        compiler_params=pltpu.CompilerParams(
            dimension_semantics=("parallel",), vmem_limit_bytes=_vmem_limit()),
    )(xp, norm_w.reshape(1, D).astype(jnp.float32), w_in.astype(jnp.bfloat16))
    return out[:M]


# ----------------------------------------------------------------------------
# Fused RMSNorm + linear (+tanh)  -- final norm + prediction head (bf16 MXU)
# ----------------------------------------------------------------------------

def _rms_linear_kernel(x_ref, g_ref, w_ref, b_ref, o_ref, *, eps, activation):
    x = x_ref[...]
    ms = jnp.mean(x * x, axis=-1, keepdims=True)
    xn = (x * lax.rsqrt(ms + eps) * g_ref[...]).astype(jnp.bfloat16)
    acc = jnp.dot(xn, w_ref[...], preferred_element_type=jnp.float32) + b_ref[...]
    if activation == "tanh":
        acc = jnp.tanh(acc)
    o_ref[...] = acc


def rmsnorm_linear(x2d, norm_w, w, b, activation="none", eps=1e-5):
    M, D = x2d.shape
    N = w.shape[1]
    tm = _row_tile(M)
    xp = _pad_rows(x2d.astype(jnp.float32), tm)
    out = pl.pallas_call(
        functools.partial(_rms_linear_kernel, eps=eps, activation=activation),
        out_shape=jax.ShapeDtypeStruct((xp.shape[0], N), jnp.float32),
        grid=(xp.shape[0] // tm,),
        in_specs=[
            pl.BlockSpec((tm, D), lambda i: (i, 0)),
            pl.BlockSpec((1, D), lambda i: (0, 0)),
            pl.BlockSpec((D, N), lambda i: (0, 0)),
            pl.BlockSpec((1, N), lambda i: (0, 0)),
        ],
        out_specs=pl.BlockSpec((tm, N), lambda i: (i, 0)),
        compiler_params=pltpu.CompilerParams(
            dimension_semantics=("parallel",), vmem_limit_bytes=_vmem_limit()),
    )(xp, norm_w.reshape(1, D).astype(jnp.float32),
      w.astype(jnp.bfloat16), b.reshape(1, N).astype(jnp.float32))
    return out[:M]


# ----------------------------------------------------------------------------
# Fused Mamba inner kernel: conv+SiLU, merged x_proj, dt_proj/softplus,
# chunked selective scan (tiled over d_inner), SiLU gate, out_proj, residual.
# One grid step per batch element.
# ----------------------------------------------------------------------------

def _mamba_inner_kernel(xin_ref, z_ref, xres_ref,
                        convw_ref, convb_ref,
                        wxp_ref, wdt_ref, bdt_ref,
                        At_ref, Dv_ref, wout_ref,
                        o_ref,
                        xc_scr, dlt_scr, b_scr, c_scr, y_scr,
                        *, L, ED, N, R, K, TC, ET):
    f32 = jnp.float32

    # ---- causal depthwise conv + SiLU (taps unrolled, all in vregs) ---------
    x_in = xin_ref[...].astype(f32)                            # (L, ED)
    x_pad = jnp.concatenate([jnp.zeros((K - 1, ED), f32), x_in], axis=0)
    acc = jnp.zeros((L, ED), f32)
    for k in range(K):                                         # static unroll
        acc = acc + x_pad[k:k + L, :] * convw_ref[k:k + 1, :]
    acc = acc + convb_ref[...]
    xc = acc * jax.nn.sigmoid(acc)                             # SiLU
    xc_scr[...] = xc

    # ---- merged x_proj: ONE bf16 MXU matmul -> (L, R+2N); slice delta/B/C ---
    xproj = jnp.dot(xc.astype(wxp_ref.dtype), wxp_ref[...],
                    preferred_element_type=f32)
    b_scr[...] = xproj[:, R:R + N]
    c_scr[...] = xproj[:, R + N:R + 2 * N]
    dlt = jnp.dot(xproj[:, :R], wdt_ref[...], preferred_element_type=f32)
    dlt_scr[...] = _softplus(dlt + bdt_ref[...])

    # ---- chunked selective scan, tiled over d_inner --------------------------
    n_chunks = L // TC
    for e in range(ED // ET):                                  # static ED tiles
        c0 = e * ET
        A_e = At_ref[:, pl.ds(c0, ET)]                         # (N, ET)
        d_e = Dv_ref[:, pl.ds(c0, ET)]                         # (1, ET)

        def chunk(cidx, h, c0=c0, A_e=A_e, d_e=d_e):
            off = pl.multiple_of(cidx * TC, TC)
            dt_c = dlt_scr[pl.ds(off, TC), pl.ds(c0, ET)]      # (TC, ET)
            xc_c = xc_scr[pl.ds(off, TC), pl.ds(c0, ET)]       # (TC, ET)
            bm_c = b_scr[pl.ds(off, TC), :]                    # (TC, N)
            cm_c = c_scr[pl.ds(off, TC), :]                    # (TC, N)
            dx_c = dt_c * xc_c
            # Hoisted off the serial chain: exp(dt*A) for the whole chunk (EUP)
            dA_all = jnp.exp(dt_c[:, None, :] * A_e[None, :, :])   # (TC, N, ET)
            # B/C chunk onto sublanes once per chunk (XLU transpose; tiny
            # identity-matmul fallback for non-8-aligned shapes).
            if TC % 8 == 0 and N % 8 == 0:
                bm_t = jnp.transpose(bm_c)                     # (N, TC)
                cm_t = jnp.transpose(cm_c)
            else:
                rr = lax.broadcasted_iota(jnp.int32, (TC, TC), 0)
                cc = lax.broadcasted_iota(jnp.int32, (TC, TC), 1)
                eye = (rr == cc).astype(f32)
                bm_t = lax.dot_general(bm_c, eye, (((0,), (0,)), ((), ())),
                                       preferred_element_type=f32)
                cm_t = lax.dot_general(cm_c, eye, (((0,), (0,)), ((), ())),
                                       preferred_element_type=f32)
            ys = []
            for t in range(TC):                                # static unroll
                dBx = bm_t[:, t:t + 1] * dx_c[t:t + 1, :]      # off the h chain
                h = dA_all[t] * h + dBx                        # serial: 2 VALU ops
                ys.append(jnp.sum(h * cm_t[:, t:t + 1], axis=0,
                                  keepdims=True))              # XLU reduce
            y_c = jnp.concatenate(ys, axis=0) + d_e * xc_c     # one store / chunk
            y_scr[pl.ds(off, TC), pl.ds(c0, ET)] = y_c
            return h

        lax.fori_loop(0, n_chunks, chunk, jnp.zeros((N, ET), f32))

    # ---- SiLU gate + out_proj + residual -------------------------------------
    z = z_ref[...].astype(f32)
    yg = y_scr[...] * (z * jax.nn.sigmoid(z))
    out = jnp.dot(yg.astype(wout_ref.dtype), wout_ref[...],
                  preferred_element_type=f32)
    o_ref[...] = out + xres_ref[...]


def mamba_inner(x_in, z, x_res, conv_w, conv_b, w_xp, w_dt, b_dt, A_t, D_vec,
                w_out):
    Bsz, L, ED = x_in.shape
    N = A_t.shape[0]
    K = conv_w.shape[0]
    R = w_dt.shape[0]
    Dm = w_out.shape[1]
    TC = _chunk_len(L)
    ET = _ed_tile(ED)

    kern = functools.partial(_mamba_inner_kernel,
                             L=L, ED=ED, N=N, R=R, K=K, TC=TC, ET=ET)
    return pl.pallas_call(
        kern,
        out_shape=jax.ShapeDtypeStruct((Bsz, L, Dm), jnp.float32),
        grid=(Bsz,),
        in_specs=[
            pl.BlockSpec((None, L, ED), lambda b: (b, 0, 0)),   # x_in (bf16)
            pl.BlockSpec((None, L, ED), lambda b: (b, 0, 0)),   # z (bf16)
            pl.BlockSpec((None, L, Dm), lambda b: (b, 0, 0)),   # residual (f32)
            pl.BlockSpec((K, ED), lambda b: (0, 0)),            # conv taps
            pl.BlockSpec((1, ED), lambda b: (0, 0)),            # conv bias
            pl.BlockSpec((ED, R + 2 * N), lambda b: (0, 0)),    # merged x_proj
            pl.BlockSpec((R, ED), lambda b: (0, 0)),            # dt_proj weight
            pl.BlockSpec((1, ED), lambda b: (0, 0)),            # dt_proj bias
            pl.BlockSpec((N, ED), lambda b: (0, 0)),            # A^T
            pl.BlockSpec((1, ED), lambda b: (0, 0)),            # D
            pl.BlockSpec((ED, Dm), lambda b: (0, 0)),           # out_proj
        ],
        out_specs=pl.BlockSpec((None, L, Dm), lambda b: (b, 0, 0)),
        scratch_shapes=[
            pltpu.VMEM((L, ED), jnp.float32),   # xc (post conv+SiLU)
            pltpu.VMEM((L, ED), jnp.float32),   # delta
            pltpu.VMEM((L, N), jnp.float32),    # B
            pltpu.VMEM((L, N), jnp.float32),    # C
            pltpu.VMEM((L, ED), jnp.float32),   # y
        ],
        compiler_params=pltpu.CompilerParams(
            dimension_semantics=("parallel",), vmem_limit_bytes=_vmem_limit()),
    )(x_in.astype(jnp.bfloat16), z.astype(jnp.bfloat16), x_res.astype(jnp.float32),
      conv_w.astype(jnp.float32), conv_b.reshape(1, ED).astype(jnp.float32),
      w_xp.astype(jnp.bfloat16),
      w_dt.astype(jnp.float32), b_dt.reshape(1, ED).astype(jnp.float32),
      A_t.astype(jnp.float32), D_vec.reshape(1, ED).astype(jnp.float32),
      w_out.astype(jnp.bfloat16))


# ----------------------------------------------------------------------------
# Mamba block / DecisionMamba forward (glue in plain JAX, compute in kernels)
# ----------------------------------------------------------------------------

def mamba_block_fused(x, lp, cfg):
    """Residual block: MambaBlock(RMSNorm(x)) + x, x: (B, L, D)."""
    Bsz, L, D = x.shape
    ED = cfg["d_inner"]
    xz = rmsnorm_in_proj(x.reshape(Bsz * L, D), lp["norm_w"], lp["in_proj_w"])
    x_in = xz[:, :ED].reshape(Bsz, L, ED)
    z = xz[:, ED:].reshape(Bsz, L, ED)
    A_t = (-jnp.exp(lp["A_log"])).T                            # (N, ED)
    return mamba_inner(x_in, z, x,
                       lp["conv_w"], lp["conv_b"], lp["x_proj_w"],
                       lp["dt_proj_w"], lp["dt_proj_b"],
                       A_t, lp["D"], lp["out_proj_w"])


def mamba_forward(x, params, cfg):
    for lp in params["layers"]:
        x = mamba_block_fused(x, lp, cfg)
    return x


def decision_mamba_forward(params, cfg, states, z_distributions, done,
                           returns_to_go, h_r):
    # NOTE: z_distributions is accepted but unused -- this matches the
    # reference PyTorch forward(), which only interleaves (return, state,
    # reward, done) tokens.
    Bsz, T = states.shape[0], states.shape[1]
    H = cfg["d_model"]

    stacked = embed_tokens(states.reshape(Bsz * T, -1),
                           returns_to_go.reshape(Bsz * T, 1),
                           h_r.reshape(Bsz * T, 1),
                           done.reshape(Bsz * T, 1),
                           params)                              # (B*T, 4H)
    x = stacked.reshape(Bsz, 4 * T, H)

    x = mamba_forward(x, params, cfg)                           # (B, 4T, H)

    # Only state-token rows feed the head; RMSNorm is row-wise, so slicing
    # first is exact and lets us fuse norm_f + predict_z + tanh in one kernel.
    x_state = x.reshape(Bsz, T, 4, H)[:, :, 1, :]               # (B, T, H)
    z_preds = rmsnorm_linear(x_state.reshape(Bsz * T, H), params["norm_f_w"],
                             params["predict_z_w"], params["predict_z_b"],
                             activation="tanh")
    return z_preds.reshape(Bsz, T, 2 * cfg["z_dim"])


# ----------------------------------------------------------------------------
# Deterministic parameter init
# ----------------------------------------------------------------------------

def init_params(key, cfg):
    H, ED, N = cfg["d_model"], cfg["d_inner"], cfg["d_state"]
    dt_rank, K = cfg["dt_rank"], cfg["d_conv"]
    state_dim, z_dim = cfg["state_dim"], cfg["z_dim"]

    def nrm(k, shape, scale=0.02):
        return (scale * jax.random.normal(k, shape)).astype(jnp.float32)

    keys = iter(jax.random.split(key, 64))
    params = {
        "embed_return_w": nrm(next(keys), (1, H)),
        "embed_return_b": nrm(next(keys), (H,)),
        "embed_state_w": nrm(next(keys), (state_dim, H)),
        "embed_state_b": nrm(next(keys), (H,)),
        "embed_reward_w": nrm(next(keys), (1, H)),
        "embed_reward_b": nrm(next(keys), (H,)),
        "embed_done_w": nrm(next(keys), (3, H)),
        "embed_z_w": nrm(next(keys), (2 * z_dim, H)),   # unused in forward
        "embed_z_b": nrm(next(keys), (H,)),
        "embed_ln_w": jnp.ones((H,), jnp.float32),
        "embed_ln_b": jnp.zeros((H,), jnp.float32),
        "norm_f_w": jnp.ones((H,), jnp.float32),
        "predict_z_w": nrm(next(keys), (H, 2 * z_dim)),
        "predict_z_b": nrm(next(keys), (2 * z_dim,)),
        "layers": [],
    }
    A_init = jnp.log(jnp.tile(jnp.arange(1, N + 1, dtype=jnp.float32)[None, :],
                              (ED, 1)))
    for _ in range(cfg["n_layers"]):
        lk = iter(jax.random.split(next(keys), 16))
        params["layers"].append({
            "norm_w": jnp.ones((H,), jnp.float32),
            "in_proj_w": nrm(next(lk), (H, 2 * ED)),
            "conv_w": nrm(next(lk), (K, ED)),           # depthwise taps (K, d_inner)
            "conv_b": nrm(next(lk), (ED,)),
            "x_proj_w": nrm(next(lk), (ED, dt_rank + 2 * N)),
            "dt_proj_w": nrm(next(lk), (dt_rank, ED)),
            "dt_proj_b": nrm(next(lk), (ED,)),
            "A_log": A_init,
            "D": jnp.ones((ED,), jnp.float32),
            "out_proj_w": nrm(next(lk), (ED, H)),
        })
    return params


# ----------------------------------------------------------------------------
# Main
# ----------------------------------------------------------------------------

if __name__ == "__main__":
    # Small config (d_inner = expand * d_model, dt_rank = ceil(d_model / 16))
    hidden = 32
    cfg = dict(
        d_model=hidden, n_layers=2, d_state=16, d_conv=4,
        d_inner=2 * hidden, dt_rank=math.ceil(hidden / 16),
        state_dim=8, z_dim=4,
    )

    key = jax.random.PRNGKey(0)
    kp, k1, k2, k3, k4, k5 = jax.random.split(key, 6)
    params = init_params(kp, cfg)

    B, T = 2, 8
    states = jax.random.normal(k1, (B, T, cfg["state_dim"]), jnp.float32)
    z_distributions = jax.random.normal(k2, (B, T, 2 * cfg["z_dim"]), jnp.float32)
    done = jax.random.randint(k3, (B, T), 0, 3, dtype=jnp.int32)
    returns_to_go = jax.random.normal(k4, (B, T, 1), jnp.float32)
    h_r = jax.random.normal(k5, (B, T, 1), jnp.float32)

    fwd = jax.jit(functools.partial(decision_mamba_forward, params, cfg))
    out = fwd(states, z_distributions, done, returns_to_go, h_r)
    out = jax.block_until_ready(out)
    assert out.shape == (B, T, 2 * cfg["z_dim"])
    assert jnp.all(jnp.isfinite(out))
    print("KERNEL_OK")
</pallas_src>

<mosaic_0001>
module attributes {stable_mosaic.version = 11 : i64} {
  func.func @_rms_inproj_kernel(%arg0: i32, %arg1: memref<64x32xf32, #tpu.memory_space<vmem>>, %arg2: memref<1x32xf32, #tpu.memory_space<vmem>>, %arg3: memref<32x128xbf16, #tpu.memory_space<vmem>>, %arg4: memref<64x128xbf16, #tpu.memory_space<vmem>>) attributes {dimension_semantics = [#tpu.dimension_semantics<parallel>], iteration_bounds = array<i64: 1>, scalar_prefetch = 0 : i64, scratch_operands = 0 : i64, tpu.core_type = #tpu.core_type<tc>, window_params = [{transform_indices = @transform_0, window_bounds = array<i64: 64, 32>}, {pipeline_mode = #tpu.pipeline_mode<synchronous>, transform_indices = @transform_1, window_bounds = array<i64: 1, 32>}, {pipeline_mode = #tpu.pipeline_mode<synchronous>, transform_indices = @transform_2, window_bounds = array<i64: 32, 128>}, {transform_indices = @transform_3, window_bounds = array<i64: 64, 128>}]} {
    %c0 = arith.constant 0 : index
    %c0_0 = arith.constant 0 : index
    %0 = vector.load %arg1[%c0, %c0_0] : memref<64x32xf32, #tpu.memory_space<vmem>>, vector<64x32xf32>
    %1 = arith.mulf %0, %0 : vector<64x32xf32>
    %cst = arith.constant dense<0.000000e+00> : vector<64xf32>
    %2 = vector.multi_reduction <add>, %1, %cst [1] : vector<64x32xf32> to vector<64xf32>
    %3 = vector.shape_cast %2 : vector<64xf32> to vector<64x1xf32>
    %cst_1 = arith.constant 3.200000e+01 : f32
    %4 = vector.broadcast %cst_1 : f32 to vector<64x1xf32>
    %5 = arith.divf %3, %4 : vector<64x1xf32>
    %cst_2 = arith.constant 9.99999974E-6 : f32
    %6 = vector.broadcast %cst_2 : f32 to vector<64x1xf32>
    %7 = arith.addf %5, %6 : vector<64x1xf32>
    %8 = math.rsqrt %7 : vector<64x1xf32>
    %9 = vector.broadcast %8 : vector<64x1xf32> to vector<64x32xf32>
    %10 = arith.mulf %0, %9 : vector<64x32xf32>
    %c0_3 = arith.constant 0 : index
    %c0_4 = arith.constant 0 : index
    %11 = vector.load %arg2[%c0_3, %c0_4] : memref<1x32xf32, #tpu.memory_space<vmem>>, vector<1x32xf32>
    %12 = vector.broadcast %11 : vector<1x32xf32> to vector<64x32xf32>
    %13 = arith.mulf %10, %12 : vector<64x32xf32>
    %14 = arith.truncf %13 : vector<64x32xf32> to vector<64x32xbf16>
    %c0_5 = arith.constant 0 : index
    %c0_6 = arith.constant 0 : index
    %15 = vector.load %arg3[%c0_5, %c0_6] : memref<32x128xbf16, #tpu.memory_space<vmem>>, vector<32x128xbf16>
    %cst_7 = arith.constant dense<0.000000e+00> : vector<64x128xf32>
    %16 = tpu.matmul %14, %15, %cst_7 {dimension_numbers = #tpu.dot_dimension_numbers<[1], [0], [0], [1], [0, 0, 1, 1], [], []>} : vector<64x32xbf16>, vector<32x128xbf16>, vector<64x128xf32> -> vector<64x128xf32>
    %17 = arith.truncf %16 : vector<64x128xf32> to vector<64x128xbf16>
    %c0_8 = arith.constant 0 : index
    %c0_9 = arith.constant 0 : index
    %18 = vector.load %arg4[%c0_8, %c0_9] : memref<64x128xbf16, #tpu.memory_space<vmem>>, vector<64x128xbf16>
    tpu.vector_store %arg4[%c0_8, %c0_9], %17 {strides = array<i32>} : memref<64x128xbf16, #tpu.memory_space<vmem>>, vector<64x128xbf16>,
    return
  }
  func.func @transform_0(%arg0: i32) -> (i32, i32) {
    %c0_i32 = arith.constant 0 : i32
    %c0_i32_0 = arith.constant 0 : i32
    return %arg0, %c0_i32 : i32, i32
  }
  func.func @transform_1(%arg0: i32) -> (i32, i32) {
    %c0_i32 = arith.constant 0 : i32
    %c0_i32_0 = arith.constant 0 : i32
    %c0_i32_1 = arith.constant 0 : i32
    return %c0_i32, %c0_i32_0 : i32, i32
  }
  func.func @transform_2(%arg0: i32) -> (i32, i32) {
    %c0_i32 = arith.constant 0 : i32
    %c0_i32_0 = arith.constant 0 : i32
    %c0_i32_1 = arith.constant 0 : i32
    return %c0_i32, %c0_i32_0 : i32, i32
  }
  func.func @transform_3(%arg0: i32) -> (i32, i32) {
    %c0_i32 = arith.constant 0 : i32
    %c0_i32_0 = arith.constant 0 : i32
    return %arg0, %c0_i32 : i32, i32
  }
}

module attributes {stable_mosaic.version = 11 : i64} {
  func.func @_embed_kernel(%arg0: i32, %arg1: memref<16x8xf32, #tpu.memory_space<vmem>>, %arg2: memref<16x1xf32, #tpu.memory_space<vmem>>, %arg3: memref<16x1xf32, #tpu.memory_space<vmem>>, %arg4: memref<16x1xi32, #tpu.memory_space<vmem>>, %arg5: memref<8x32xf32, #tpu.memory_space<vmem>>, %arg6: memref<1x32xf32, #tpu.memory_space<vmem>>, %arg7: memref<1x32xf32, #tpu.memory_space<vmem>>, %arg8: memref<1x32xf32, #tpu.memory_space<vmem>>, %arg9: memref<1x32xf32, #tpu.memory_space<vmem>>, %arg10: memref<1x32xf32, #tpu.memory_space<vmem>>, %arg11: memref<3x32xf32, #tpu.memory_space<vmem>>, %arg12: memref<1x32xf32, #tpu.memory_space<vmem>>, %arg13: memref<1x32xf32, #tpu.memory_space<vmem>>, %arg14: memref<16x128xf32, #tpu.memory_space<vmem>>) attributes {dimension_semantics = [#tpu.dimension_semantics<parallel>], iteration_bounds = array<i64: 1>, scalar_prefetch = 0 : i64, scratch_operands = 0 : i64, tpu.core_type = #tpu.core_type<tc>, window_params = [{transform_indices = @transform_0, window_bounds = array<i64: 16, 8>}, {transform_indices = @transform_1, window_bounds = array<i64: 16, 1>}, {transform_indices = @transform_2, window_bounds = array<i64: 16, 1>}, {transform_indices = @transform_3, window_bounds = array<i64: 16, 1>}, {pipeline_mode = #tpu.pipeline_mode<synchronous>, transform_indices = @transform_4, window_bounds = array<i64: 8, 32>}, {pipeline_mode = #tpu.pipeline_mode<synchronous>, transform_indices = @transform_5, window_bounds = array<i64: 1, 32>}, {pipeline_mode = #tpu.pipeline_mode<synchronous>, transform_indices = @transform_6, window_bounds = array<i64: 1, 32>}, {pipeline_mode = #tpu.pipeline_mode<synchronous>, transform_indices = @transform_7, window_bounds = array<i64: 1, 32>}, {pipeline_mode = #tpu.pipeline_mode<synchronous>, transform_indices = @transform_8, window_bounds = array<i64: 1, 32>}, {pipeline_mode = #tpu.pipeline_mode<synchronous>, transform_indices = @transform_9, window_bounds = array<i64: 1, 32>}, {pipeline_mode = #tpu.pipeline_mode<synchronous>, transform_indices = @transform_10, window_bounds = array<i64: 3, 32>}, {pipeline_mode = #tpu.pipeline_mode<synchronous>, transform_indices = @transform_11, window_bounds = array<i64: 1, 32>}, {pipeline_mode = #tpu.pipeline_mode<synchronous>, transform_indices = @transform_12, window_bounds = array<i64: 1, 32>}, {transform_indices = @transform_13, window_bounds = array<i64: 16, 128>}]} {
    %c0 = arith.constant 0 : index
    %c0_0 = arith.constant 0 : index
    %0 = vector.load %arg12[%c0, %c0_0] : memref<1x32xf32, #tpu.memory_space<vmem>>, vector<1x32xf32>
    %c0_1 = arith.constant 0 : index
    %c0_2 = arith.constant 0 : index
    %1 = vector.load %arg13[%c0_1, %c0_2] : memref<1x32xf32, #tpu.memory_space<vmem>>, vector<1x32xf32>
    %c0_3 = arith.constant 0 : index
    %c0_4 = arith.constant 0 : index
    %2 = vector.load %arg1[%c0_3, %c0_4] : memref<16x8xf32, #tpu.memory_space<vmem>>, vector<16x8xf32>
    %3 = arith.truncf %2 : vector<16x8xf32> to vector<16x8xbf16>
    %c0_5 = arith.constant 0 : index
    %c0_6 = arith.constant 0 : index
    %4 = vector.load %arg5[%c0_5, %c0_6] : memref<8x32xf32, #tpu.memory_space<vmem>>, vector<8x32xf32>
    %5 = arith.truncf %4 : vector<8x32xf32> to vector<8x32xbf16>
    %cst = arith.constant dense<0.000000e+00> : vector<16x32xf32>
    %6 = tpu.matmul %3, %5, %cst {dimension_numbers = #tpu.dot_dimension_numbers<[1], [0], [0], [1], [0, 0, 1, 1], [], []>} : vector<16x8xbf16>, vector<8x32xbf16>, vector<16x32xf32> -> vector<16x32xf32>
    %c0_7 = arith.constant 0 : index
    %c0_8 = arith.constant 0 : index
    %7 = vector.load %arg6[%c0_7, %c0_8] : memref<1x32xf32, #tpu.memory_space<vmem>>, vector<1x32xf32>
    %8 = vector.broadcast %7 : vector<1x32xf32> to vector<16x32xf32>
    %9 = arith.addf %6, %8 : vector<16x32xf32>
    %c0_9 = arith.constant 0 : index
    %c0_10 = arith.constant 0 : index
    %10 = vector.load %arg2[%c0_9, %c0_10] : memref<16x1xf32, #tpu.memory_space<vmem>>, vector<16x1xf32>
    %c0_11 = arith.constant 0 : index
    %c0_12 = arith.constant 0 : index
    %11 = vector.load %arg7[%c0_11, %c0_12] : memref<1x32xf32, #tpu.memory_space<vmem>>, vector<1x32xf32>
    %12 = vector.broadcast %10 : vector<16x1xf32> to vector<16x32xf32>
    %13 = vector.broadcast %11 : vector<1x32xf32> to vector<16x32xf32>
    %14 = arith.mulf %12, %13 : vector<16x32xf32>
    %c0_13 = arith.constant 0 : index
    %c0_14 = arith.constant 0 : index
    %15 = vector.load %arg8[%c0_13, %c0_14] : memref<1x32xf32, #tpu.memory_space<vmem>>, vector<1x32xf32>
    %16 = vector.broadcast %15 : vector<1x32xf32> to vector<16x32xf32>
    %17 = arith.addf %14, %16 : vector<16x32xf32>
    %c0_15 = arith.constant 0 : index
    %c0_16 = arith.constant 0 : index
    %18 = vector.load %arg3[%c0_15, %c0_16] : memref<16x1xf32, #tpu.memory_space<vmem>>, vector<16x1xf32>
    %c0_17 = arith.constant 0 : index
    %c0_18 = arith.constant 0 : index
    %19 = vector.load %arg9[%c0_17, %c0_18] : memref<1x32xf32, #tpu.memory_space<vmem>>, vector<1x32xf32>
    %20 = vector.broadcast %18 : vector<16x1xf32> to vector<16x32xf32>
    %21 = vector.broadcast %19 : vector<1x32xf32> to vector<16x32xf32>
    %22 = arith.mulf %20, %21 : vector<16x32xf32>
    %c0_19 = arith.constant 0 : index
    %c0_20 = arith.constant 0 : index
    %23 = vector.load %arg10[%c0_19, %c0_20] : memref<1x32xf32, #tpu.memory_space<vmem>>, vector<1x32xf32>
    %24 = vector.broadcast %23 : vector<1x32xf32> to vector<16x32xf32>
    %25 = arith.addf %22, %24 : vector<16x32xf32>
    %c0_21 = arith.constant 0 : index
    %c0_22 = arith.constant 0 : index
    %26 = vector.load %arg4[%c0_21, %c0_22] : memref<16x1xi32, #tpu.memory_space<vmem>>, vector<16x1xi32>
    %c0_i32 = arith.constant 0 : i32
    %27 = vector.broadcast %c0_i32 : i32 to vector<16x1xi32>
    %28 = arith.cmpi eq, %26, %27 : vector<16x1xi32>
    %c0_23 = arith.constant 0 : index
    %c0_24 = arith.constant 0 : index
    %29 = vector.load %arg11[%c0_23, %c0_24] : memref<3x32xf32, #tpu.memory_space<vmem>>, vector<1x32xf32>
    %c1_i32 = arith.constant 1 : i32
    %30 = vector.broadcast %c1_i32 : i32 to vector<16x1xi32>
    %31 = arith.cmpi eq, %26, %30 : vector<16x1xi32>
    %c1 = arith.constant 1 : index
    %c0_25 = arith.constant 0 : index
    %32 = vector.load %arg11[%c1, %c0_25] : memref<3x32xf32, #tpu.memory_space<vmem>>, vector<1x32xf32>
    %c2 = arith.constant 2 : index
    %c0_26 = arith.constant 0 : index
    %33 = vector.load %arg11[%c2, %c0_26] : memref<3x32xf32, #tpu.memory_space<vmem>>, vector<1x32xf32>
    %34 = vector.shape_cast %31 : vector<16x1xi1> to vector<16x1xi1>
    %35 = vector.broadcast %34 : vector<16x1xi1> to vector<16x32xi1>
    %36 = vector.shape_cast %32 : vector<1x32xf32> to vector<1x32xf32>
    %37 = vector.broadcast %36 : vector<1x32xf32> to vector<16x32xf32>
    %38 = vector.shape_cast %33 : vector<1x32xf32> to vector<1x32xf32>
    %39 = vector.broadcast %38 : vector<1x32xf32> to vector<16x32xf32>
    %40 = arith.select %35, %37, %39 : vector<16x32xi1>, vector<16x32xf32>
    %41 = vector.shape_cast %28 : vector<16x1xi1> to vector<16x1xi1>
    %42 = vector.broadcast %41 : vector<16x1xi1> to vector<16x32xi1>
    %43 = vector.shape_cast %29 : vector<1x32xf32> to vector<1x32xf32>
    %44 = vector.broadcast %43 : vector<1x32xf32> to vector<16x32xf32>
    %45 = arith.select %42, %44, %40 : vector<16x32xi1>, vector<16x32xf32>
    %cst_27 = arith.constant dense<0.000000e+00> : vector<16xf32>
    %46 = vector.multi_reduction <add>, %17, %cst_27 [1] : vector<16x32xf32> to vector<16xf32>
    %47 = vector.shape_cast %46 : vector<16xf32> to vector<16x1xf32>
    %cst_28 = arith.constant 3.200000e+01 : f32
    %48 = vector.broadcast %cst_28 : f32 to vector<16x1xf32>
    %49 = arith.divf %47, %48 : vector<16x1xf32>
    %50 = vector.broadcast %49 : vector<16x1xf32> to vector<16x32xf32>
    %51 = arith.subf %17, %50 : vector<16x32xf32>
    %52 = arith.mulf %51, %51 : vector<16x32xf32>
    %cst_29 = arith.constant dense<0.000000e+00> : vector<16xf32>
    %53 = vector.multi_reduction <add>, %52, %cst_29 [1] : vector<16x32xf32> to vector<16xf32>
    %54 = vector.shape_cast %53 : vector<16xf32> to vector<16x1xf32>
    %cst_30 = arith.constant 3.200000e+01 : f32
    %55 = vector.broadcast %cst_30 : f32 to vector<16x1xf32>
    %56 = arith.divf %54, %55 : vector<16x1xf32>
    %cst_31 = arith.constant 9.99999974E-6 : f32
    %57 = vector.broadcast %cst_31 : f32 to vector<16x1xf32>
    %58 = arith.addf %56, %57 : vector<16x1xf32>
    %59 = math.rsqrt %58 : vector<16x1xf32>
    %60 = vector.broadcast %59 : vector<16x1xf32> to vector<16x32xf32>
    %61 = arith.mulf %51, %60 : vector<16x32xf32>
    %62 = vector.broadcast %0 : vector<1x32xf32> to vector<16x32xf32>
    %63 = arith.mulf %61, %62 : vector<16x32xf32>
    %64 = vector.broadcast %1 : vector<1x32xf32> to vector<16x32xf32>
    %65 = arith.addf %63, %64 : vector<16x32xf32>
    %c0_32 = arith.constant 0 : index
    %c0_33 = arith.constant 0 : index
    %66 = vector.load %arg14[%c0_32, %c0_33] : memref<16x128xf32, #tpu.memory_space<vmem>>, vector<16x32xf32>
    tpu.vector_store %arg14[%c0_32, %c0_33], %65 {strides = array<i32>} : memref<16x128xf32, #tpu.memory_space<vmem>>, vector<16x32xf32>,
    %cst_34 = arith.constant dense<0.000000e+00> : vector<16xf32>
    %67 = vector.multi_reduction <add>, %9, %cst_34 [1] : vector<16x32xf32> to vector<16xf32>
    %68 = vector.shape_cast %67 : vector<16xf32> to vector<16x1xf32>
    %cst_35 = arith.constant 3.200000e+01 : f32
    %69 = vector.broadcast %cst_35 : f32 to vector<16x1xf32>
    %70 = arith.divf %68, %69 : vector<16x1xf32>
    %71 = vector.broadcast %70 : vector<16x1xf32> to vector<16x32xf32>
    %72 = arith.subf %9, %71 : vector<16x32xf32>
    %73 = arith.mulf %72, %72 : vector<16x32xf32>
    %cst_36 = arith.constant dense<0.000000e+00> : vector<16xf32>
    %74 = vector.multi_reduction <add>, %73, %cst_36 [1] : vector<16x32xf32> to vector<16xf32>
    %75 = vector.shape_cast %74 : vector<16xf32> to vector<16x1xf32>
    %cst_37 = arith.constant 3.200000e+01 : f32
    %76 = vector.broadcast %cst_37 : f32 to vector<16x1xf32>
    %77 = arith.divf %75, %76 : vector<16x1xf32>
    %cst_38 = arith.constant 9.99999974E-6 : f32
    %78 = vector.broadcast %cst_38 : f32 to vector<16x1xf32>
    %79 = arith.addf %77, %78 : vector<16x1xf32>
    %80 = math.rsqrt %79 : vector<16x1xf32>
    %81 = vector.broadcast %80 : vector<16x1xf32> to vector<16x32xf32>
    %82 = arith.mulf %72, %81 : vector<16x32xf32>
    %83 = vector.broadcast %0 : vector<1x32xf32> to vector<16x32xf32>
    %84 = arith.mulf %82, %83 : vector<16x32xf32>
    %85 = vector.broadcast %1 : vector<1x32xf32> to vector<16x32xf32>
    %86 = arith.addf %84, %85 : vector<16x32xf32>
    %c0_39 = arith.constant 0 : index
    %c32 = arith.constant 32 : index
    %87 = vector.load %arg14[%c0_39, %c32] : memref<16x128xf32, #tpu.memory_space<vmem>>, vector<16x32xf32>
    tpu.vector_store %arg14[%c0_39, %c32], %86 {strides = array<i32>} : memref<16x128xf32, #tpu.memory_space<vmem>>, vector<16x32xf32>,
    %cst_40 = arith.constant dense<0.000000e+00> : vector<16xf32>
    %88 = vector.multi_reduction <add>, %25, %cst_40 [1] : vector<16x32xf32> to vector<16xf32>
    %89 = vector.shape_cast %88 : vector<16xf32> to vector<16x1xf32>
    %cst_41 = arith.constant 3.200000e+01 : f32
    %90 = vector.broadcast %cst_41 : f32 to vector<16x1xf32>
    %91 = arith.divf %89, %90 : vector<16x1xf32>
    %92 = vector.broadcast %91 : vector<16x1xf32> to vector<16x32xf32>
    %93 = arith.subf %25, %92 : vector<16x32xf32>
    %94 = arith.mulf %93, %93 : vector<16x32xf32>
    %cst_42 = arith.constant dense<0.000000e+00> : vector<16xf32>
    %95 = vector.multi_reduction <add>, %94, %cst_42 [1] : vector<16x32xf32> to vector<16xf32>
    %96 = vector.shape_cast %95 : vector<16xf32> to vector<16x1xf32>
    %cst_43 = arith.constant 3.200000e+01 : f32
    %97 = vector.broadcast %cst_43 : f32 to vector<16x1xf32>
    %98 = arith.divf %96, %97 : vector<16x1xf32>
    %cst_44 = arith.constant 9.99999974E-6 : f32
    %99 = vector.broadcast %cst_44 : f32 to vector<16x1xf32>
    %100 = arith.addf %98, %99 : vector<16x1xf32>
    %101 = math.rsqrt %100 : vector<16x1xf32>
    %102 = vector.broadcast %101 : vector<16x1xf32> to vector<16x32xf32>
    %103 = arith.mulf %93, %102 : vector<16x32xf32>
    %104 = vector.broadcast %0 : vector<1x32xf32> to vector<16x32xf32>
    %105 = arith.mulf %103, %104 : vector<16x32xf32>
    %106 = vector.broadcast %1 : vector<1x32xf32> to vector<16x32xf32>
    %107 = arith.addf %105, %106 : vector<16x32xf32>
    %c0_45 = arith.constant 0 : index
    %c64 = arith.constant 64 : index
    %108 = vector.load %arg14[%c0_45, %c64] : memref<16x128xf32, #tpu.memory_space<vmem>>, vector<16x32xf32>
    tpu.vector_store %arg14[%c0_45, %c64], %107 {strides = array<i32>} : memref<16x128xf32, #tpu.memory_space<vmem>>, vector<16x32xf32>,
    %cst_46 = arith.constant dense<0.000000e+00> : vector<16xf32>
    %109 = vector.multi_reduction <add>, %45, %cst_46 [1] : vector<16x32xf32> to vector<16xf32>
    %110 = vector.shape_cast %109 : vector<16xf32> to vector<16x1xf32>
    %cst_47 = arith.constant 3.200000e+01 : f32
    %111 = vector.broadcast %cst_47 : f32 to vector<16x1xf32>
    %112 = arith.divf %110, %111 : vector<16x1xf32>
    %113 = vector.broadcast %112 : vector<16x1xf32> to vector<16x32xf32>
    %114 = arith.subf %45, %113 : vector<16x32xf32>
    %115 = arith.mulf %114, %114 : vector<16x32xf32>
    %cst_48 = arith.constant dense<0.000000e+00> : vector<16xf32>
    %116 = vector.multi_reduction <add>, %115, %cst_48 [1] : vector<16x32xf32> to vector<16xf32>
    %117 = vector.shape_cast %116 : vector<16xf32> to vector<16x1xf32>
    %cst_49 = arith.constant 3.200000e+01 : f32
    %118 = vector.broadcast %cst_49 : f32 to vector<16x1xf32>
    %119 = arith.divf %117, %118 : vector<16x1xf32>
    %cst_50 = arith.constant 9.99999974E-6 : f32
    %120 = vector.broadcast %cst_50 : f32 to vector<16x1xf32>
    %121 = arith.addf %119, %120 : vector<16x1xf32>
    %122 = math.rsqrt %121 : vector<16x1xf32>
    %123 = vector.broadcast %122 : vector<16x1xf32> to vector<16x32xf32>
    %124 = arith.mulf %114, %123 : vector<16x32xf32>
    %125 = vector.broadcast %0 : vector<1x32xf32> to vector<16x32xf32>
    %126 = arith.mulf %124, %125 : vector<16x32xf32>
    %127 = vector.broadcast %1 : vector<1x32xf32> to vector<16x32xf32>
    %128 = arith.addf %126, %127 : vector<16x32xf32>
    %c0_51 = arith.constant 0 : index
    %c96 = arith.constant 96 : index
    %129 = vector.load %arg14[%c0_51, %c96] : memref<16x128xf32, #tpu.memory_space<vmem>>, vector<16x32xf32>
    tpu.vector_store %arg14[%c0_51, %c96], %128 {strides = array<i32>} : memref<16x128xf32, #tpu.memory_space<vmem>>, vector<16x32xf32>,
    return
  }
  func.func @transform_0(%arg0: i32) -> (i32, i32) {
    %c0_i32 = arith.constant 0 : i32
    %c0_i32_0 = arith.constant 0 : i32
    return %arg0, %c0_i32 : i32, i32
  }
  func.func @transform_1(%arg0: i32) -> (i32, i32) {
    %c0_i32 = arith.constant 0 : i32
    %c0_i32_0 = arith.constant 0 : i32
    return %arg0, %c0_i32 : i32, i32
  }
  func.func @transform_2(%arg0: i32) -> (i32, i32) {
    %c0_i32 = arith.constant 0 : i32
    %c0_i32_0 = arith.constant 0 : i32
    return %arg0, %c0_i32 : i32, i32
  }
  func.func @transform_3(%arg0: i32) -> (i32, i32) {
    %c0_i32 = arith.constant 0 : i32
    %c0_i32_0 = arith.constant 0 : i32
    return %arg0, %c0_i32 : i32, i32
  }
  func.func @transform_4(%arg0: i32) -> (i32, i32) {
    %c0_i32 = arith.constant 0 : i32
    %c0_i32_0 = arith.constant 0 : i32
    %c0_i32_1 = arith.constant 0 : i32
    return %c0_i32, %c0_i32_0 : i32, i32
  }
  func.func @transform_5(%arg0: i32) -> (i32, i32) {
    %c0_i32 = arith.constant 0 : i32
    %c0_i32_0 = arith.constant 0 : i32
    %c0_i32_1 = arith.constant 0 : i32
    return %c0_i32, %c0_i32_0 : i32, i32
  }
  func.func @transform_6(%arg0: i32) -> (i32, i32) {
    %c0_i32 = arith.constant 0 : i32
    %c0_i32_0 = arith.constant 0 : i32
    %c0_i32_1 = arith.constant 0 : i32
    return %c0_i32, %c0_i32_0 : i32, i32
  }
  func.func @transform_7(%arg0: i32) -> (i32, i32) {
    %c0_i32 = arith.constant 0 : i32
    %c0_i32_0 = arith.constant 0 : i32
    %c0_i32_1 = arith.constant 0 : i32
    return %c0_i32, %c0_i32_0 : i32, i32
  }
  func.func @transform_8(%arg0: i32) -> (i32, i32) {
    %c0_i32 = arith.constant 0 : i32
    %c0_i32_0 = arith.constant 0 : i32
    %c0_i32_1 = arith.constant 0 : i32
    return %c0_i32, %c0_i32_0 : i32, i32
  }
  func.func @transform_9(%arg0: i32) -> (i32, i32) {
    %c0_i32 = arith.constant 0 : i32
    %c0_i32_0 = arith.constant 0 : i32
    %c0_i32_1 = arith.constant 0 : i32
    return %c0_i32, %c0_i32_0 : i32, i32
  }
  func.func @transform_10(%arg0: i32) -> (i32, i32) {
    %c0_i32 = arith.constant 0 : i32
    %c0_i32_0 = arith.constant 0 : i32
    %c0_i32_1 = arith.constant 0 : i32
    return %c0_i32, %c0_i32_0 : i32, i32
  }
  func.func @transform_11(%arg0: i32) -> (i32, i32) {
    %c0_i32 = arith.constant 0 : i32
    %c0_i32_0 = arith.constant 0 : i32
    %c0_i32_1 = arith.constant 0 : i32
    return %c0_i32, %c0_i32_0 : i32, i32
  }
  func.func @transform_12(%arg0: i32) -> (i32, i32) {
    %c0_i32 = arith.constant 0 : i32
    %c0_i32_0 = arith.constant 0 : i32
    %c0_i32_1 = arith.constant 0 : i32
    return %c0_i32, %c0_i32_0 : i32, i32
  }
  func.func @transform_13(%arg0: i32) -> (i32, i32) {
    %c0_i32 = arith.constant 0 : i32
    %c0_i32_0 = arith.constant 0 : i32
    return %arg0, %c0_i32 : i32, i32
  }
}

module attributes {stable_mosaic.version = 11 : i64} {
  func.func @_mamba_inner_kernel(%arg0: i32, %arg1: memref<1x32x64xbf16, #tpu.memory_space<vmem>>, %arg2: memref<1x32x64xbf16, #tpu.memory_space<vmem>>, %arg3: memref<1x32x32xf32, #tpu.memory_space<vmem>>, %arg4: memref<4x64xf32, #tpu.memory_space<vmem>>, %arg5: memref<1x64xf32, #tpu.memory_space<vmem>>, %arg6: memref<64x34xbf16, #tpu.memory_space<vmem>>, %arg7: memref<2x64xf32, #tpu.memory_space<vmem>>, %arg8: memref<1x64xf32, #tpu.memory_space<vmem>>, %arg9: memref<16x64xf32, #tpu.memory_space<vmem>>, %arg10: memref<1x64xf32, #tpu.memory_space<vmem>>, %arg11: memref<64x32xbf16, #tpu.memory_space<vmem>>, %arg12: memref<1x32x32xf32, #tpu.memory_space<vmem>>, %arg13: memref<32x64xf32, #tpu.memory_space<vmem>>, %arg14: memref<32x64xf32, #tpu.memory_space<vmem>>, %arg15: memref<32x16xf32, #tpu.memory_space<vmem>>, %arg16: memref<32x16xf32, #tpu.memory_space<vmem>>, %arg17: memref<32x64xf32, #tpu.memory_space<vmem>>) attributes {dimension_semantics = [#tpu.dimension_semantics<parallel>], iteration_bounds = array<i64: 2>, scalar_prefetch = 0 : i64, scratch_operands = 5 : i64, tpu.core_type = #tpu.core_type<tc>, window_params = [{transform_indices = @transform_0, window_bounds = array<i64: 1, 32, 64>}, {transform_indices = @transform_1, window_bounds = array<i64: 1, 32, 64>}, {transform_indices = @transform_2, window_bounds = array<i64: 1, 32, 32>}, {pipeline_mode = #tpu.pipeline_mode<synchronous>, transform_indices = @transform_3, window_bounds = array<i64: 4, 64>}, {pipeline_mode = #tpu.pipeline_mode<synchronous>, transform_indices = @transform_4, window_bounds = array<i64: 1, 64>}, {pipeline_mode = #tpu.pipeline_mode<synchronous>, transform_indices = @transform_5, window_bounds = array<i64: 64, 34>}, {pipeline_mode = #tpu.pipeline_mode<synchronous>, transform_indices = @transform_6, window_bounds = array<i64: 2, 64>}, {pipeline_mode = #tpu.pipeline_mode<synchronous>, transform_indices = @transform_7, window_bounds = array<i64: 1, 64>}, {pipeline_mode = #tpu.pipeline_mode<synchronous>, transform_indices = @transform_8, window_bounds = array<i64: 16, 64>}, {pipeline_mode = #tpu.pipeline_mode<synchronous>, transform_indices = @transform_9, window_bounds = array<i64: 1, 64>}, {pipeline_mode = #tpu.pipeline_mode<synchronous>, transform_indices = @transform_10, window_bounds = array<i64: 64, 32>}, {transform_indices = @transform_11, window_bounds = array<i64: 1, 32, 32>}]} {
    %c0 = arith.constant 0 : index
    %c0_0 = arith.constant 0 : index
    %c0_1 = arith.constant 0 : index
    %0 = vector.load %arg1[%c0, %c0_0, %c0_1] : memref<1x32x64xbf16, #tpu.memory_space<vmem>>, vector<1x32x64xbf16>
    %1 = vector.shape_cast %0 : vector<1x32x64xbf16> to vector<32x64xbf16>
    %2 = arith.extf %1 : vector<32x64xbf16> to vector<32x64xf32>
    %cst = arith.constant 0.000000e+00 : f32
    %3 = vector.broadcast %cst : f32 to vector<3x64xf32>
    %4 = tpu.concatenate %3, %2 in 0 : vector<3x64xf32>, vector<32x64xf32> -> vector<35x64xf32>
    %cst_2 = arith.constant 0.000000e+00 : f32
    %5 = vector.broadcast %cst_2 : f32 to vector<32x64xf32>
    %6 = vector.extract_strided_slice %4 {offsets = [0, 0], sizes = [32, 64], strides = [1, 1]} : vector<35x64xf32> to vector<32x64xf32>
    %c0_3 = arith.constant 0 : index
    %c0_4 = arith.constant 0 : index
    %7 = vector.load %arg4[%c0_3, %c0_4] : memref<4x64xf32, #tpu.memory_space<vmem>>, vector<1x64xf32>
    %8 = vector.broadcast %7 : vector<1x64xf32> to vector<32x64xf32>
    %9 = arith.mulf %6, %8 : vector<32x64xf32>
    %10 = arith.addf %5, %9 : vector<32x64xf32>
    %11 = vector.extract_strided_slice %4 {offsets = [1, 0], sizes = [32, 64], strides = [1, 1]} : vector<35x64xf32> to vector<32x64xf32>
    %c1 = arith.constant 1 : index
    %c0_5 = arith.constant 0 : index
    %12 = vector.load %arg4[%c1, %c0_5] : memref<4x64xf32, #tpu.memory_space<vmem>>, vector<1x64xf32>
    %13 = vector.broadcast %12 : vector<1x64xf32> to vector<32x64xf32>
    %14 = arith.mulf %11, %13 : vector<32x64xf32>
    %15 = arith.addf %10, %14 : vector<32x64xf32>
    %16 = vector.extract_strided_slice %4 {offsets = [2, 0], sizes = [32, 64], strides = [1, 1]} : vector<35x64xf32> to vector<32x64xf32>
    %c2 = arith.constant 2 : index
    %c0_6 = arith.constant 0 : index
    %17 = vector.load %arg4[%c2, %c0_6] : memref<4x64xf32, #tpu.memory_space<vmem>>, vector<1x64xf32>
    %18 = vector.broadcast %17 : vector<1x64xf32> to vector<32x64xf32>
    %19 = arith.mulf %16, %18 : vector<32x64xf32>
    %20 = arith.addf %15, %19 : vector<32x64xf32>
    %21 = vector.extract_strided_slice %4 {offsets = [3, 0], sizes = [32, 64], strides = [1, 1]} : vector<35x64xf32> to vector<32x64xf32>
    %c3 = arith.constant 3 : index
    %c0_7 = arith.constant 0 : index
    %22 = vector.load %arg4[%c3, %c0_7] : memref<4x64xf32, #tpu.memory_space<vmem>>, vector<1x64xf32>
    %23 = vector.broadcast %22 : vector<1x64xf32> to vector<32x64xf32>
    %24 = arith.mulf %21, %23 : vector<32x64xf32>
    %25 = arith.addf %20, %24 : vector<32x64xf32>
    %c0_8 = arith.constant 0 : index
    %c0_9 = arith.constant 0 : index
    %26 = vector.load %arg5[%c0_8, %c0_9] : memref<1x64xf32, #tpu.memory_space<vmem>>, vector<1x64xf32>
    %27 = vector.broadcast %26 : vector<1x64xf32> to vector<32x64xf32>
    %28 = arith.addf %25, %27 : vector<32x64xf32>
    %29 = arith.negf %28 : vector<32x64xf32>
    %30 = math.exp %29 : vector<32x64xf32>
    %cst_10 = arith.constant 1.000000e+00 : f32
    %31 = vector.broadcast %cst_10 : f32 to vector<32x64xf32>
    %32 = arith.addf %31, %30 : vector<32x64xf32>
    %33 = arith.divf %31, %32 : vector<32x64xf32>
    %34 = arith.mulf %28, %33 : vector<32x64xf32>
    %c0_11 = arith.constant 0 : index
    %c0_12 = arith.constant 0 : index
    %35 = vector.load %arg13[%c0_11, %c0_12] : memref<32x64xf32, #tpu.memory_space<vmem>>, vector<32x64xf32>
    tpu.vector_store %arg13[%c0_11, %c0_12], %34 {strides = array<i32>} : memref<32x64xf32, #tpu.memory_space<vmem>>, vector<32x64xf32>,
    %36 = arith.truncf %34 : vector<32x64xf32> to vector<32x64xbf16>
    %c0_13 = arith.constant 0 : index
    %c0_14 = arith.constant 0 : index
    %37 = vector.load %arg6[%c0_13, %c0_14] : memref<64x34xbf16, #tpu.memory_space<vmem>>, vector<64x34xbf16>
    %cst_15 = arith.constant dense<0.000000e+00> : vector<32x34xf32>
    %38 = tpu.matmul %36, %37, %cst_15 {dimension_numbers = #tpu.dot_dimension_numbers<[1], [0], [0], [1], [0, 0, 1, 1], [], []>} : vector<32x64xbf16>, vector<64x34xbf16>, vector<32x34xf32> -> vector<32x34xf32>
    %39 = vector.extract_strided_slice %38 {offsets = [0, 2], sizes = [32, 16], strides = [1, 1]} : vector<32x34xf32> to vector<32x16xf32>
    %c0_16 = arith.constant 0 : index
    %c0_17 = arith.constant 0 : index
    %40 = vector.load %arg15[%c0_16, %c0_17] : memref<32x16xf32, #tpu.memory_space<vmem>>, vector<32x16xf32>
    tpu.vector_store %arg15[%c0_16, %c0_17], %39 {strides = array<i32>} : memref<32x16xf32, #tpu.memory_space<vmem>>, vector<32x16xf32>,
    %41 = vector.extract_strided_slice %38 {offsets = [0, 18], sizes = [32, 16], strides = [1, 1]} : vector<32x34xf32> to vector<32x16xf32>
    %c0_18 = arith.constant 0 : index
    %c0_19 = arith.constant 0 : index
    %42 = vector.load %arg16[%c0_18, %c0_19] : memref<32x16xf32, #tpu.memory_space<vmem>>, vector<32x16xf32>
    tpu.vector_store %arg16[%c0_18, %c0_19], %41 {strides = array<i32>} : memref<32x16xf32, #tpu.memory_space<vmem>>, vector<32x16xf32>,
    %43 = vector.extract_strided_slice %38 {offsets = [0, 0], sizes = [32, 2], strides = [1, 1]} : vector<32x34xf32> to vector<32x2xf32>
    %c0_20 = arith.constant 0 : index
    %c0_21 = arith.constant 0 : index
    %44 = vector.load %arg7[%c0_20, %c0_21] : memref<2x64xf32, #tpu.memory_space<vmem>>, vector<2x64xf32>
    %cst_22 = arith.constant dense<0.000000e+00> : vector<32x64xf32>
    %45 = tpu.matmul %43, %44, %cst_22 {dimension_numbers = #tpu.dot_dimension_numbers<[1], [0], [0], [1], [0, 0, 1, 1], [], []>} : vector<32x2xf32>, vector<2x64xf32>, vector<32x64xf32> -> vector<32x64xf32>
    %c0_23 = arith.constant 0 : index
    %c0_24 = arith.constant 0 : index
    %46 = vector.load %arg8[%c0_23, %c0_24] : memref<1x64xf32, #tpu.memory_space<vmem>>, vector<1x64xf32>
    %47 = vector.broadcast %46 : vector<1x64xf32> to vector<32x64xf32>
    %48 = arith.addf %45, %47 : vector<32x64xf32>
    %cst_25 = arith.constant 0.000000e+00 : f32
    %49 = vector.broadcast %cst_25 : f32 to vector<32x64xf32>
    %50 = arith.maximumf %48, %49 : vector<32x64xf32>
    %51 = math.absf %48 : vector<32x64xf32>
    %cst_26 = arith.constant 0.000000e+00 : f32
    %52 = vector.broadcast %cst_26 : f32 to vector<32x64xf32>
    %53 = arith.subf %52, %51 : vector<32x64xf32>
    %54 = math.exp %53 : vector<32x64xf32>
    %55 = math.log1p %54 : vector<32x64xf32>
    %56 = arith.addf %50, %55 : vector<32x64xf32>
    %c0_27 = arith.constant 0 : index
    %c0_28 = arith.constant 0 : index
    %57 = vector.load %arg14[%c0_27, %c0_28] : memref<32x64xf32, #tpu.memory_space<vmem>>, vector<32x64xf32>
    tpu.vector_store %arg14[%c0_27, %c0_28], %56 {strides = array<i32>} : memref<32x64xf32, #tpu.memory_space<vmem>>, vector<32x64xf32>,
    %c0_29 = arith.constant 0 : index
    %c0_30 = arith.constant 0 : index
    %58 = vector.load %arg9[%c0_29, %c0_30] : memref<16x64xf32, #tpu.memory_space<vmem>>, vector<16x64xf32>
    %c0_31 = arith.constant 0 : index
    %c0_32 = arith.constant 0 : index
    %59 = vector.load %arg10[%c0_31, %c0_32] : memref<1x64xf32, #tpu.memory_space<vmem>>, vector<1x64xf32>
    %cst_33 = arith.constant 0.000000e+00 : f32
    %60 = vector.broadcast %cst_33 : f32 to vector<16x64xf32>
    %c0_i32 = arith.constant 0 : i32
    %c32_i32 = arith.constant 32 : i32
    %61 = arith.muli %c0_i32, %c32_i32 : i32
    %62 = tpu.assume_multiple %61, 32 : i32
    %63 = arith.index_cast %62 : i32 to index
    %c0_34 = arith.constant 0 : index
    %64 = vector.load %arg14[%63, %c0_34] : memref<32x64xf32, #tpu.memory_space<vmem>>, vector<32x64xf32>
    %65 = arith.index_cast %62 : i32 to index
    %c0_35 = arith.constant 0 : index
    %66 = vector.load %arg13[%65, %c0_35] : memref<32x64xf32, #tpu.memory_space<vmem>>, vector<32x64xf32>
    %67 = arith.index_cast %62 : i32 to index
    %c0_36 = arith.constant 0 : index
    %68 = vector.load %arg15[%67, %c0_36] : memref<32x16xf32, #tpu.memory_space<vmem>>, vector<32x16xf32>
    %69 = arith.index_cast %62 : i32 to index
    %c0_37 = arith.constant 0 : index
    %70 = vector.load %arg16[%69, %c0_37] : memref<32x16xf32, #tpu.memory_space<vmem>>, vector<32x16xf32>
    %71 = arith.mulf %64, %66 : vector<32x64xf32>
    %72 = vector.shape_cast %64 : vector<32x64xf32> to vector<32x1x64xf32>
    %73 = vector.shape_cast %58 : vector<16x64xf32> to vector<1x16x64xf32>
    %74 = vector.broadcast %72 : vector<32x1x64xf32> to vector<32x16x64xf32>
    %75 = vector.broadcast %73 : vector<1x16x64xf32> to vector<32x16x64xf32>
    %76 = arith.mulf %74, %75 : vector<32x16x64xf32>
    %77 = math.exp %76 : vector<32x16x64xf32>
    %78 = tpu.transpose %68, [1, 0] : vector<32x16xf32> -> vector<16x32xf32>
    %79 = tpu.transpose %70, [1, 0] : vector<32x16xf32> -> vector<16x32xf32>
    %80 = vector.extract_strided_slice %78 {offsets = [0, 0], sizes = [16, 1], strides = [1, 1]} : vector<16x32xf32> to vector<16x1xf32>
    %81 = vector.extract_strided_slice %71 {offsets = [0, 0], sizes = [1, 64], strides = [1, 1]} : vector<32x64xf32> to vector<1x64xf32>
    %82 = vector.broadcast %80 : vector<16x1xf32> to vector<16x64xf32>
    %83 = vector.broadcast %81 : vector<1x64xf32> to vector<16x64xf32>
    %84 = arith.mulf %82, %83 : vector<16x64xf32>
    %85 = vector.extract_strided_slice %77 {offsets = [0, 0, 0], sizes = [1, 16, 64], strides = [1, 1, 1]} : vector<32x16x64xf32> to vector<1x16x64xf32>
    %86 = vector.shape_cast %85 : vector<1x16x64xf32> to vector<16x64xf32>
    %87 = arith.mulf %86, %60 : vector<16x64xf32>
    %88 = arith.addf %87, %84 : vector<16x64xf32>
    %89 = vector.extract_strided_slice %79 {offsets = [0, 0], sizes = [16, 1], strides = [1, 1]} : vector<16x32xf32> to vector<16x1xf32>
    %90 = vector.broadcast %89 : vector<16x1xf32> to vector<16x64xf32>
    %91 = arith.mulf %88, %90 : vector<16x64xf32>
    %cst_38 = arith.constant dense<0.000000e+00> : vector<64xf32>
    %92 = vector.multi_reduction <add>, %91, %cst_38 [0] : vector<16x64xf32> to vector<64xf32>
    %93 = vector.shape_cast %92 : vector<64xf32> to vector<1x64xf32>
    %94 = vector.extract_strided_slice %78 {offsets = [0, 1], sizes = [16, 1], strides = [1, 1]} : vector<16x32xf32> to vector<16x1xf32>
    %95 = vector.extract_strided_slice %71 {offsets = [1, 0], sizes = [1, 64], strides = [1, 1]} : vector<32x64xf32> to vector<1x64xf32>
    %96 = vector.broadcast %94 : vector<16x1xf32> to vector<16x64xf32>
    %97 = vector.broadcast %95 : vector<1x64xf32> to vector<16x64xf32>
    %98 = arith.mulf %96, %97 : vector<16x64xf32>
    %99 = vector.extract_strided_slice %77 {offsets = [1, 0, 0], sizes = [1, 16, 64], strides = [1, 1, 1]} : vector<32x16x64xf32> to vector<1x16x64xf32>
    %100 = vector.shape_cast %99 : vector<1x16x64xf32> to vector<16x64xf32>
    %101 = arith.mulf %100, %88 : vector<16x64xf32>
    %102 = arith.addf %101, %98 : vector<16x64xf32>
    %103 = vector.extract_strided_slice %79 {offsets = [0, 1], sizes = [16, 1], strides = [1, 1]} : vector<16x32xf32> to vector<16x1xf32>
    %104 = vector.broadcast %103 : vector<16x1xf32> to vector<16x64xf32>
    %105 = arith.mulf %102, %104 : vector<16x64xf32>
    %cst_39 = arith.constant dense<0.000000e+00> : vector<64xf32>
    %106 = vector.multi_reduction <add>, %105, %cst_39 [0] : vector<16x64xf32> to vector<64xf32>
    %107 = vector.shape_cast %106 : vector<64xf32> to vector<1x64xf32>
    %108 = vector.extract_strided_slice %78 {offsets = [0, 2], sizes = [16, 1], strides = [1, 1]} : vector<16x32xf32> to vector<16x1xf32>
    %109 = vector.extract_strided_slice %71 {offsets = [2, 0], sizes = [1, 64], strides = [1, 1]} : vector<32x64xf32> to vector<1x64xf32>
    %110 = vector.broadcast %108 : vector<16x1xf32> to vector<16x64xf32>
    %111 = vector.broadcast %109 : vector<1x64xf32> to vector<16x64xf32>
    %112 = arith.mulf %110, %111 : vector<16x64xf32>
    %113 = vector.extract_strided_slice %77 {offsets = [2, 0, 0], sizes = [1, 16, 64], strides = [1, 1, 1]} : vector<32x16x64xf32> to vector<1x16x64xf32>
    %114 = vector.shape_cast %113 : vector<1x16x64xf32> to vector<16x64xf32>
    %115 = arith.mulf %114, %102 : vector<16x64xf32>
    %116 = arith.addf %115, %112 : vector<16x64xf32>
    %117 = vector.extract_strided_slice %79 {offsets = [0, 2], sizes = [16, 1], strides = [1, 1]} : vector<16x32xf32> to vector<16x1xf32>
    %118 = vector.broadcast %117 : vector<16x1xf32> to vector<16x64xf32>
    %119 = arith.mulf %116, %118 : vector<16x64xf32>
    %cst_40 = arith.constant dense<0.000000e+00> : vector<64xf32>
    %120 = vector.multi_reduction <add>, %119, %cst_40 [0] : vector<16x64xf32> to vector<64xf32>
    %121 = vector.shape_cast %120 : vector<64xf32> to vector<1x64xf32>
    %122 = vector.extract_strided_slice %78 {offsets = [0, 3], sizes = [16, 1], strides = [1, 1]} : vector<16x32xf32> to vector<16x1xf32>
    %123 = vector.extract_strided_slice %71 {offsets = [3, 0], sizes = [1, 64], strides = [1, 1]} : vector<32x64xf32> to vector<1x64xf32>
    %124 = vector.broadcast %122 : vector<16x1xf32> to vector<16x64xf32>
    %125 = vector.broadcast %123 : vector<1x64xf32> to vector<16x64xf32>
    %126 = arith.mulf %124, %125 : vector<16x64xf32>
    %127 = vector.extract_strided_slice %77 {offsets = [3, 0, 0], sizes = [1, 16, 64], strides = [1, 1, 1]} : vector<32x16x64xf32> to vector<1x16x64xf32>
    %128 = vector.shape_cast %127 : vector<1x16x64xf32> to vector<16x64xf32>
    %129 = arith.mulf %128, %116 : vector<16x64xf32>
    %130 = arith.addf %129, %126 : vector<16x64xf32>
    %131 = vector.extract_strided_slice %79 {offsets = [0, 3], sizes = [16, 1], strides = [1, 1]} : vector<16x32xf32> to vector<16x1xf32>
    %132 = vector.broadcast %131 : vector<16x1xf32> to vector<16x64xf32>
    %133 = arith.mulf %130, %132 : vector<16x64xf32>
    %cst_41 = arith.constant dense<0.000000e+00> : vector<64xf32>
    %134 = vector.multi_reduction <add>, %133, %cst_41 [0] : vector<16x64xf32> to vector<64xf32>
    %135 = vector.shape_cast %134 : vector<64xf32> to vector<1x64xf32>
    %136 = vector.extract_strided_slice %78 {offsets = [0, 4], sizes = [16, 1], strides = [1, 1]} : vector<16x32xf32> to vector<16x1xf32>
    %137 = vector.extract_strided_slice %71 {offsets = [4, 0], sizes = [1, 64], strides = [1, 1]} : vector<32x64xf32> to vector<1x64xf32>
    %138 = vector.broadcast %136 : vector<16x1xf32> to vector<16x64xf32>
    %139 = vector.broadcast %137 : vector<1x64xf32> to vector<16x64xf32>
    %140 = arith.mulf %138, %139 : vector<16x64xf32>
    %141 = vector.extract_strided_slice %77 {offsets = [4, 0, 0], sizes = [1, 16, 64], strides = [1, 1, 1]} : vector<32x16x64xf32> to vector<1x16x64xf32>
    %142 = vector.shape_cast %141 : vector<1x16x64xf32> to vector<16x64xf32>
    %143 = arith.mulf %142, %130 : vector<16x64xf32>
    %144 = arith.addf %143, %140 : vector<16x64xf32>
    %145 = vector.extract_strided_slice %79 {offsets = [0, 4], sizes = [16, 1], strides = [1, 1]} : vector<16x32xf32> to vector<16x1xf32>
    %146 = vector.broadcast %145 : vector<16x1xf32> to vector<16x64xf32>
    %147 = arith.mulf %144, %146 : vector<16x64xf32>
    %cst_42 = arith.constant dense<0.000000e+00> : vector<64xf32>
    %148 = vector.multi_reduction <add>, %147, %cst_42 [0] : vector<16x64xf32> to vector<64xf32>
    %149 = vector.shape_cast %148 : vector<64xf32> to vector<1x64xf32>
    %150 = vector.extract_strided_slice %78 {offsets = [0, 5], sizes = [16, 1], strides = [1, 1]} : vector<16x32xf32> to vector<16x1xf32>
    %151 = vector.extract_strided_slice %71 {offsets = [5, 0], sizes = [1, 64], strides = [1, 1]} : vector<32x64xf32> to vector<1x64xf32>
    %152 = vector.broadcast %150 : vector<16x1xf32> to vector<16x64xf32>
    %153 = vector.broadcast %151 : vector<1x64xf32> to vector<16x64xf32>
    %154 = arith.mulf %152, %153 : vector<16x64xf32>
    %155 = vector.extract_strided_slice %77 {offsets = [5, 0, 0], sizes = [1, 16, 64], strides = [1, 1, 1]} : vector<32x16x64xf32> to vector<1x16x64xf32>
    %156 = vector.shape_cast %155 : vector<1x16x64xf32> to vector<16x64xf32>
    %157 = arith.mulf %156, %144 : vector<16x64xf32>
    %158 = arith.addf %157, %154 : vector<16x64xf32>
    %159 = vector.extract_strided_slice %79 {offsets = [0, 5], sizes = [16, 1], strides = [1, 1]} : vector<16x32xf32> to vector<16x1xf32>
    %160 = vector.broadcast %159 : vector<16x1xf32> to vector<16x64xf32>
    %161 = arith.mulf %158, %160 : vector<16x64xf32>
    %cst_43 = arith.constant dense<0.000000e+00> : vector<64xf32>
    %162 = vector.multi_reduction <add>, %161, %cst_43 [0] : vector<16x64xf32> to vector<64xf32>
    %163 = vector.shape_cast %162 : vector<64xf32> to vector<1x64xf32>
    %164 = vector.extract_strided_slice %78 {offsets = [0, 6], sizes = [16, 1], strides = [1, 1]} : vector<16x32xf32> to vector<16x1xf32>
    %165 = vector.extract_strided_slice %71 {offsets = [6, 0], sizes = [1, 64], strides = [1, 1]} : vector<32x64xf32> to vector<1x64xf32>
    %166 = vector.broadcast %164 : vector<16x1xf32> to vector<16x64xf32>
    %167 = vector.broadcast %165 : vector<1x64xf32> to vector<16x64xf32>
    %168 = arith.mulf %166, %167 : vector<16x64xf32>
    %169 = vector.extract_strided_slice %77 {offsets = [6, 0, 0], sizes = [1, 16, 64], strides = [1, 1, 1]} : vector<32x16x64xf32> to vector<1x16x64xf32>
    %170 = vector.shape_cast %169 : vector<1x16x64xf32> to vector<16x64xf32>
    %171 = arith.mulf %170, %158 : vector<16x64xf32>
    %172 = arith.addf %171, %168 : vector<16x64xf32>
    %173 = vector.extract_strided_slice %79 {offsets = [0, 6], sizes = [16, 1], strides = [1, 1]} : vector<16x32xf32> to vector<16x1xf32>
    %174 = vector.broadcast %173 : vector<16x1xf32> to vector<16x64xf32>
    %175 = arith.mulf %172, %174 : vector<16x64xf32>
    %cst_44 = arith.constant dense<0.000000e+00> : vector<64xf32>
    %176 = vector.multi_reduction <add>, %175, %cst_44 [0] : vector<16x64xf32> to vector<64xf32>
    %177 = vector.shape_cast %176 : vector<64xf32> to vector<1x64xf32>
    %178 = vector.extract_strided_slice %78 {offsets = [0, 7], sizes = [16, 1], strides = [1, 1]} : vector<16x32xf32> to vector<16x1xf32>
    %179 = vector.extract_strided_slice %71 {offsets = [7, 0], sizes = [1, 64], strides = [1, 1]} : vector<32x64xf32> to vector<1x64xf32>
    %180 = vector.broadcast %178 : vector<16x1xf32> to vector<16x64xf32>
    %181 = vector.broadcast %179 : vector<1x64xf32> to vector<16x64xf32>
    %182 = arith.mulf %180, %181 : vector<16x64xf32>
    %183 = vector.extract_strided_slice %77 {offsets = [7, 0, 0], sizes = [1, 16, 64], strides = [1, 1, 1]} : vector<32x16x64xf32> to vector<1x16x64xf32>
    %184 = vector.shape_cast %183 : vector<1x16x64xf32> to vector<16x64xf32>
    %185 = arith.mulf %184, %172 : vector<16x64xf32>
    %186 = arith.addf %185, %182 : vector<16x64xf32>
    %187 = vector.extract_strided_slice %79 {offsets = [0, 7], sizes = [16, 1], strides = [1, 1]} : vector<16x32xf32> to vector<16x1xf32>
    %188 = vector.broadcast %187 : vector<16x1xf32> to vector<16x64xf32>
    %189 = arith.mulf %186, %188 : vector<16x64xf32>
    %cst_45 = arith.constant dense<0.000000e+00> : vector<64xf32>
    %190 = vector.multi_reduction <add>, %189, %cst_45 [0] : vector<16x64xf32> to vector<64xf32>
    %191 = vector.shape_cast %190 : vector<64xf32> to vector<1x64xf32>
    %192 = vector.extract_strided_slice %78 {offsets = [0, 8], sizes = [16, 1], strides = [1, 1]} : vector<16x32xf32> to vector<16x1xf32>
    %193 = vector.extract_strided_slice %71 {offsets = [8, 0], sizes = [1, 64], strides = [1, 1]} : vector<32x64xf32> to vector<1x64xf32>
    %194 = vector.broadcast %192 : vector<16x1xf32> to vector<16x64xf32>
    %195 = vector.broadcast %193 : vector<1x64xf32> to vector<16x64xf32>
    %196 = arith.mulf %194, %195 : vector<16x64xf32>
    %197 = vector.extract_strided_slice %77 {offsets = [8, 0, 0], sizes = [1, 16, 64], strides = [1, 1, 1]} : vector<32x16x64xf32> to vector<1x16x64xf32>
    %198 = vector.shape_cast %197 : vector<1x16x64xf32> to vector<16x64xf32>
    %199 = arith.mulf %198, %186 : vector<16x64xf32>
    %200 = arith.addf %199, %196 : vector<16x64xf32>
    %201 = vector.extract_strided_slice %79 {offsets = [0, 8], sizes = [16, 1], strides = [1, 1]} : vector<16x32xf32> to vector<16x1xf32>
    %202 = vector.broadcast %201 : vector<16x1xf32> to vector<16x64xf32>
    %203 = arith.mulf %200, %202 : vector<16x64xf32>
    %cst_46 = arith.constant dense<0.000000e+00> : vector<64xf32>
    %204 = vector.multi_reduction <add>, %203, %cst_46 [0] : vector<16x64xf32> to vector<64xf32>
    %205 = vector.shape_cast %204 : vector<64xf32> to vector<1x64xf32>
    %206 = vector.extract_strided_slice %78 {offsets = [0, 9], sizes = [16, 1], strides = [1, 1]} : vector<16x32xf32> to vector<16x1xf32>
    %207 = vector.extract_strided_slice %71 {offsets = [9, 0], sizes = [1, 64], strides = [1, 1]} : vector<32x64xf32> to vector<1x64xf32>
    %208 = vector.broadcast %206 : vector<16x1xf32> to vector<16x64xf32>
    %209 = vector.broadcast %207 : vector<1x64xf32> to vector<16x64xf32>
    %210 = arith.mulf %208, %209 : vector<16x64xf32>
    %211 = vector.extract_strided_slice %77 {offsets = [9, 0, 0], sizes = [1, 16, 64], strides = [1, 1, 1]} : vector<32x16x64xf32> to vector<1x16x64xf32>
    %212 = vector.shape_cast %211 : vector<1x16x64xf32> to vector<16x64xf32>
    %213 = arith.mulf %212, %200 : vector<16x64xf32>
    %214 = arith.addf %213, %210 : vector<16x64xf32>
    %215 = vector.extract_strided_slice %79 {offsets = [0, 9], sizes = [16, 1], strides = [1, 1]} : vector<16x32xf32> to vector<16x1xf32>
    %216 = vector.broadcast %215 : vector<16x1xf32> to vector<16x64xf32>
    %217 = arith.mulf %214, %216 : vector<16x64xf32>
    %cst_47 = arith.constant dense<0.000000e+00> : vector<64xf32>
    %218 = vector.multi_reduction <add>, %217, %cst_47 [0] : vector<16x64xf32> to vector<64xf32>
    %219 = vector.shape_cast %218 : vector<64xf32> to vector<1x64xf32>
    %220 = vector.extract_strided_slice %78 {offsets = [0, 10], sizes = [16, 1], strides = [1, 1]} : vector<16x32xf32> to vector<16x1xf32>
    %221 = vector.extract_strided_slice %71 {offsets = [10, 0], sizes = [1, 64], strides = [1, 1]} : vector<32x64xf32> to vector<1x64xf32>
    %222 = vector.broadcast %220 : vector<16x1xf32> to vector<16x64xf32>
    %223 = vector.broadcast %221 : vector<1x64xf32> to vector<16x64xf32>
    %224 = arith.mulf %222, %223 : vector<16x64xf32>
    %225 = vector.extract_strided_slice %77 {offsets = [10, 0, 0], sizes = [1, 16, 64], strides = [1, 1, 1]} : vector<32x16x64xf32> to vector<1x16x64xf32>
    %226 = vector.shape_cast %225 : vector<1x16x64xf32> to vector<16x64xf32>
    %227 = arith.mulf %226, %214 : vector<16x64xf32>
    %228 = arith.addf %227, %224 : vector<16x64xf32>
    %229 = vector.extract_strided_slice %79 {offsets = [0, 10], sizes = [16, 1], strides = [1, 1]} : vector<16x32xf32> to vector<16x1xf32>
    %230 = vector.broadcast %229 : vector<16x1xf32> to vector<16x64xf32>
    %231 = arith.mulf %228, %230 : vector<16x64xf32>
    %cst_48 = arith.constant dense<0.000000e+00> : vector<64xf32>
    %232 = vector.multi_reduction <add>, %231, %cst_48 [0] : vector<16x64xf32> to vector<64xf32>
    %233 = vector.shape_cast %232 : vector<64xf32> to vector<1x64xf32>
    %234 = vector.extract_strided_slice %78 {offsets = [0, 11], sizes = [16, 1], strides = [1, 1]} : vector<16x32xf32> to vector<16x1xf32>
    %235 = vector.extract_strided_slice %71 {offsets = [11, 0], sizes = [1, 64], strides = [1, 1]} : vector<32x64xf32> to vector<1x64xf32>
    %236 = vector.broadcast %234 : vector<16x1xf32> to vector<16x64xf32>
    %237 = vector.broadcast %235 : vector<1x64xf32> to vector<16x64xf32>
    %238 = arith.mulf %236, %237 : vector<16x64xf32>
    %239 = vector.extract_strided_slice %77 {offsets = [11, 0, 0], sizes = [1, 16, 64], strides = [1, 1, 1]} : vector<32x16x64xf32> to vector<1x16x64xf32>
    %240 = vector.shape_cast %239 : vector<1x16x64xf32> to vector<16x64xf32>
    %241 = arith.mulf %240, %228 : vector<16x64xf32>
    %242 = arith.addf %241, %238 : vector<16x64xf32>
    %243 = vector.extract_strided_slice %79 {offsets = [0, 11], sizes = [16, 1], strides = [1, 1]} : vector<16x32xf32> to vector<16x1xf32>
    %244 = vector.broadcast %243 : vector<16x1xf32> to vector<16x64xf32>
    %245 = arith.mulf %242, %244 : vector<16x64xf32>
    %cst_49 = arith.constant dense<0.000000e+00> : vector<64xf32>
    %246 = vector.multi_reduction <add>, %245, %cst_49 [0] : vector<16x64xf32> to vector<64xf32>
    %247 = vector.shape_cast %246 : vector<64xf32> to vector<1x64xf32>
    %248 = vector.extract_strided_slice %78 {offsets = [0, 12], sizes = [16, 1], strides = [1, 1]} : vector<16x32xf32> to vector<16x1xf32>
    %249 = vector.extract_strided_slice %71 {offsets = [12, 0], sizes = [1, 64], strides = [1, 1]} : vector<32x64xf32> to vector<1x64xf32>
    %250 = vector.broadcast %248 : vector<16x1xf32> to vector<16x64xf32>
    %251 = vector.broadcast %249 : vector<1x64xf32> to vector<16x64xf32>
    %252 = arith.mulf %250, %251 : vector<16x64xf32>
    %253 = vector.extract_strided_slice %77 {offsets = [12, 0, 0], sizes = [1, 16, 64], strides = [1, 1, 1]} : vector<32x16x64xf32> to vector<1x16x64xf32>
    %254 = vector.shape_cast %253 : vector<1x16x64xf32> to vector<16x64xf32>
    %255 = arith.mulf %254, %242 : vector<16x64xf32>
    %256 = arith.addf %255, %252 : vector<16x64xf32>
    %257 = vector.extract_strided_slice %79 {offsets = [0, 12], sizes = [16, 1], strides = [1, 1]} : vector<16x32xf32> to vector<16x1xf32>
    %258 = vector.broadcast %257 : vector<16x1xf32> to vector<16x64xf32>
    %259 = arith.mulf %256, %258 : vector<16x64xf32>
    %cst_50 = arith.constant dense<0.000000e+00> : vector<64xf32>
    %260 = vector.multi_reduction <add>, %259, %cst_50 [0] : vector<16x64xf32> to vector<64xf32>
    %261 = vector.shape_cast %260 : vector<64xf32> to vector<1x64xf32>
    %262 = vector.extract_strided_slice %78 {offsets = [0, 13], sizes = [16, 1], strides = [1, 1]} : vector<16x32xf32> to vector<16x1xf32>
    %263 = vector.extract_strided_slice %71 {offsets = [13, 0], sizes = [1, 64], strides = [1, 1]} : vector<32x64xf32> to vector<1x64xf32>
    %264 = vector.broadcast %262 : vector<16x1xf32> to vector<16x64xf32>
    %265 = vector.broadcast %263 : vector<1x64xf32> to vector<16x64xf32>
    %266 = arith.mulf %264, %265 : vector<16x64xf32>
    %267 = vector.extract_strided_slice %77 {offsets = [13, 0, 0], sizes = [1, 16, 64], strides = [1, 1, 1]} : vector<32x16x64xf32> to vector<1x16x64xf32>
    %268 = vector.shape_cast %267 : vector<1x16x64xf32> to vector<16x64xf32>
    %269 = arith.mulf %268, %256 : vector<16x64xf32>
    %270 = arith.addf %269, %266 : vector<16x64xf32>
    %271 = vector.extract_strided_slice %79 {offsets = [0, 13], sizes = [16, 1], strides = [1, 1]} : vector<16x32xf32> to vector<16x1xf32>
    %272 = vector.broadcast %271 : vector<16x1xf32> to vector<16x64xf32>
    %273 = arith.mulf %270, %272 : vector<16x64xf32>
    %cst_51 = arith.constant dense<0.000000e+00> : vector<64xf32>
    %274 = vector.multi_reduction <add>, %273, %cst_51 [0] : vector<16x64xf32> to vector<64xf32>
    %275 = vector.shape_cast %274 : vector<64xf32> to vector<1x64xf32>
    %276 = vector.extract_strided_slice %78 {offsets = [0, 14], sizes = [16, 1], strides = [1, 1]} : vector<16x32xf32> to vector<16x1xf32>
    %277 = vector.extract_strided_slice %71 {offsets = [14, 0], sizes = [1, 64], strides = [1, 1]} : vector<32x64xf32> to vector<1x64xf32>
    %278 = vector.broadcast %276 : vector<16x1xf32> to vector<16x64xf32>
    %279 = vector.broadcast %277 : vector<1x64xf32> to vector<16x64xf32>
    %280 = arith.mulf %278, %279 : vector<16x64xf32>
    %281 = vector.extract_strided_slice %77 {offsets = [14, 0, 0], sizes = [1, 16, 64], strides = [1, 1, 1]} : vector<32x16x64xf32> to vector<1x16x64xf32>
    %282 = vector.shape_cast %281 : vector<1x16x64xf32> to vector<16x64xf32>
    %283 = arith.mulf %282, %270 : vector<16x64xf32>
    %284 = arith.addf %283, %280 : vector<16x64xf32>
    %285 = vector.extract_strided_slice %79 {offsets = [0, 14], sizes = [16, 1], strides = [1, 1]} : vector<16x32xf32> to vector<16x1xf32>
    %286 = vector.broadcast %285 : vector<16x1xf32> to vector<16x64xf32>
    %287 = arith.mulf %284, %286 : vector<16x64xf32>
    %cst_52 = arith.constant dense<0.000000e+00> : vector<64xf32>
    %288 = vector.multi_reduction <add>, %287, %cst_52 [0] : vector<16x64xf32> to vector<64xf32>
    %289 = vector.shape_cast %288 : vector<64xf32> to vector<1x64xf32>
    %290 = vector.extract_strided_slice %78 {offsets = [0, 15], sizes = [16, 1], strides = [1, 1]} : vector<16x32xf32> to vector<16x1xf32>
    %291 = vector.extract_strided_slice %71 {offsets = [15, 0], sizes = [1, 64], strides = [1, 1]} : vector<32x64xf32> to vector<1x64xf32>
    %292 = vector.broadcast %290 : vector<16x1xf32> to vector<16x64xf32>
    %293 = vector.broadcast %291 : vector<1x64xf32> to vector<16x64xf32>
    %294 = arith.mulf %292, %293 : vector<16x64xf32>
    %295 = vector.extract_strided_slice %77 {offsets = [15, 0, 0], sizes = [1, 16, 64], strides = [1, 1, 1]} : vector<32x16x64xf32> to vector<1x16x64xf32>
    %296 = vector.shape_cast %295 : vector<1x16x64xf32> to vector<16x64xf32>
    %297 = arith.mulf %296, %284 : vector<16x64xf32>
    %298 = arith.addf %297, %294 : vector<16x64xf32>
    %299 = vector.extract_strided_slice %79 {offsets = [0, 15], sizes = [16, 1], strides = [1, 1]} : vector<16x32xf32> to vector<16x1xf32>
    %300 = vector.broadcast %299 : vector<16x1xf32> to vector<16x64xf32>
    %301 = arith.mulf %298, %300 : vector<16x64xf32>
    %cst_53 = arith.constant dense<0.000000e+00> : vector<64xf32>
    %302 = vector.multi_reduction <add>, %301, %cst_53 [0] : vector<16x64xf32> to vector<64xf32>
    %303 = vector.shape_cast %302 : vector<64xf32> to vector<1x64xf32>
    %304 = vector.extract_strided_slice %78 {offsets = [0, 16], sizes = [16, 1], strides = [1, 1]} : vector<16x32xf32> to vector<16x1xf32>
    %305 = vector.extract_strided_slice %71 {offsets = [16, 0], sizes = [1, 64], strides = [1, 1]} : vector<32x64xf32> to vector<1x64xf32>
    %306 = vector.broadcast %304 : vector<16x1xf32> to vector<16x64xf32>
    %307 = vector.broadcast %305 : vector<1x64xf32> to vector<16x64xf32>
    %308 = arith.mulf %306, %307 : vector<16x64xf32>
    %309 = vector.extract_strided_slice %77 {offsets = [16, 0, 0], sizes = [1, 16, 64], strides = [1, 1, 1]} : vector<32x16x64xf32> to vector<1x16x64xf32>
    %310 = vector.shape_cast %309 : vector<1x16x64xf32> to vector<16x64xf32>
    %311 = arith.mulf %310, %298 : vector<16x64xf32>
    %312 = arith.addf %311, %308 : vector<16x64xf32>
    %313 = vector.extract_strided_slice %79 {offsets = [0, 16], sizes = [16, 1], strides = [1, 1]} : vector<16x32xf32> to vector<16x1xf32>
    %314 = vector.broadcast %313 : vector<16x1xf32> to vector<16x64xf32>
    %315 = arith.mulf %312, %314 : vector<16x64xf32>
    %cst_54 = arith.constant dense<0.000000e+00> : vector<64xf32>
    %316 = vector.multi_reduction <add>, %315, %cst_54 [0] : vector<16x64xf32> to vector<64xf32>
    %317 = vector.shape_cast %316 : vector<64xf32> to vector<1x64xf32>
    %318 = vector.extract_strided_slice %78 {offsets = [0, 17], sizes = [16, 1], strides = [1, 1]} : vector<16x32xf32> to vector<16x1xf32>
    %319 = vector.extract_strided_slice %71 {offsets = [17, 0], sizes = [1, 64], strides = [1, 1]} : vector<32x64xf32> to vector<1x64xf32>
    %320 = vector.broadcast %318 : vector<16x1xf32> to vector<16x64xf32>
    %321 = vector.broadcast %319 : vector<1x64xf32> to vector<16x64xf32>
    %322 = arith.mulf %320, %321 : vector<16x64xf32>
    %323 = vector.extract_strided_slice %77 {offsets = [17, 0, 0], sizes = [1, 16, 64], strides = [1, 1, 1]} : vector<32x16x64xf32> to vector<1x16x64xf32>
    %324 = vector.shape_cast %323 : vector<1x16x64xf32> to vector<16x64xf32>
    %325 = arith.mulf %324, %312 : vector<16x64xf32>
    %326 = arith.addf %325, %322 : vector<16x64xf32>
    %327 = vector.extract_strided_slice %79 {offsets = [0, 17], sizes = [16, 1], strides = [1, 1]} : vector<16x32xf32> to vector<16x1xf32>
    %328 = vector.broadcast %327 : vector<16x1xf32> to vector<16x64xf32>
    %329 = arith.mulf %326, %328 : vector<16x64xf32>
    %cst_55 = arith.constant dense<0.000000e+00> : vector<64xf32>
    %330 = vector.multi_reduction <add>, %329, %cst_55 [0] : vector<16x64xf32> to vector<64xf32>
    %331 = vector.shape_cast %330 : vector<64xf32> to vector<1x64xf32>
    %332 = vector.extract_strided_slice %78 {offsets = [0, 18], sizes = [16, 1], strides = [1, 1]} : vector<16x32xf32> to vector<16x1xf32>
    %333 = vector.extract_strided_slice %71 {offsets = [18, 0], sizes = [1, 64], strides = [1, 1]} : vector<32x64xf32> to vector<1x64xf32>
    %334 = vector.broadcast %332 : vector<16x1xf32> to vector<16x64xf32>
    %335 = vector.broadcast %333 : vector<1x64xf32> to vector<16x64xf32>
    %336 = arith.mulf %334, %335 : vector<16x64xf32>
    %337 = vector.extract_strided_slice %77 {offsets = [18, 0, 0], sizes = [1, 16, 64], strides = [1, 1, 1]} : vector<32x16x64xf32> to vector<1x16x64xf32>
    %338 = vector.shape_cast %337 : vector<1x16x64xf32> to vector<16x64xf32>
    %339 = arith.mulf %338, %326 : vector<16x64xf32>
    %340 = arith.addf %339, %336 : vector<16x64xf32>
    %341 = vector.extract_strided_slice %79 {offsets = [0, 18], sizes = [16, 1], strides = [1, 1]} : vector<16x32xf32> to vector<16x1xf32>
    %342 = vector.broadcast %341 : vector<16x1xf32> to vector<16x64xf32>
    %343 = arith.mulf %340, %342 : vector<16x64xf32>
    %cst_56 = arith.constant dense<0.000000e+00> : vector<64xf32>
    %344 = vector.multi_reduction <add>, %343, %cst_56 [0] : vector<16x64xf32> to vector<64xf32>
    %345 = vector.shape_cast %344 : vector<64xf32> to vector<1x64xf32>
    %346 = vector.extract_strided_slice %78 {offsets = [0, 19], sizes = [16, 1], strides = [1, 1]} : vector<16x32xf32> to vector<16x1xf32>
    %347 = vector.extract_strided_slice %71 {offsets = [19, 0], sizes = [1, 64], strides = [1, 1]} : vector<32x64xf32> to vector<1x64xf32>
    %348 = vector.broadcast %346 : vector<16x1xf32> to vector<16x64xf32>
    %349 = vector.broadcast %347 : vector<1x64xf32> to vector<16x64xf32>
    %350 = arith.mulf %348, %349 : vector<16x64xf32>
    %351 = vector.extract_strided_slice %77 {offsets = [19, 0, 0], sizes = [1, 16, 64], strides = [1, 1, 1]} : vector<32x16x64xf32> to vector<1x16x64xf32>
    %352 = vector.shape_cast %351 : vector<1x16x64xf32> to vector<16x64xf32>
    %353 = arith.mulf %352, %340 : vector<16x64xf32>
    %354 = arith.addf %353, %350 : vector<16x64xf32>
    %355 = vector.extract_strided_slice %79 {offsets = [0, 19], sizes = [16, 1], strides = [1, 1]} : vector<16x32xf32> to vector<16x1xf32>
    %356 = vector.broadcast %355 : vector<16x1xf32> to vector<16x64xf32>
    %357 = arith.mulf %354, %356 : vector<16x64xf32>
    %cst_57 = arith.constant dense<0.000000e+00> : vector<64xf32>
    %358 = vector.multi_reduction <add>, %357, %cst_57 [0] : vector<16x64xf32> to vector<64xf32>
    %359 = vector.shape_cast %358 : vector<64xf32> to vector<1x64xf32>
    %360 = vector.extract_strided_slice %78 {offsets = [0, 20], sizes = [16, 1], strides = [1, 1]} : vector<16x32xf32> to vector<16x1xf32>
    %361 = vector.extract_strided_slice %71 {offsets = [20, 0], sizes = [1, 64], strides = [1, 1]} : vector<32x64xf32> to vector<1x64xf32>
    %362 = vector.broadcast %360 : vector<16x1xf32> to vector<16x64xf32>
    %363 = vector.broadcast %361 : vector<1x64xf32> to vector<16x64xf32>
    %364 = arith.mulf %362, %363 : vector<16x64xf32>
    %365 = vector.extract_strided_slice %77 {offsets = [20, 0, 0], sizes = [1, 16, 64], strides = [1, 1, 1]} : vector<32x16x64xf32> to vector<1x16x64xf32>
    %366 = vector.shape_cast %365 : vector<1x16x64xf32> to vector<16x64xf32>
    %367 = arith.mulf %366, %354 : vector<16x64xf32>
    %368 = arith.addf %367, %364 : vector<16x64xf32>
    %369 = vector.extract_strided_slice %79 {offsets = [0, 20], sizes = [16, 1], strides = [1, 1]} : vector<16x32xf32> to vector<16x1xf32>
    %370 = vector.broadcast %369 : vector<16x1xf32> to vector<16x64xf32>
    %371 = arith.mulf %368, %370 : vector<16x64xf32>
    %cst_58 = arith.constant dense<0.000000e+00> : vector<64xf32>
    %372 = vector.multi_reduction <add>, %371, %cst_58 [0] : vector<16x64xf32> to vector<64xf32>
    %373 = vector.shape_cast %372 : vector<64xf32> to vector<1x64xf32>
    %374 = vector.extract_strided_slice %78 {offsets = [0, 21], sizes = [16, 1], strides = [1, 1]} : vector<16x32xf32> to vector<16x1xf32>
    %375 = vector.extract_strided_slice %71 {offsets = [21, 0], sizes = [1, 64], strides = [1, 1]} : vector<32x64xf32> to vector<1x64xf32>
    %376 = vector.broadcast %374 : vector<16x1xf32> to vector<16x64xf32>
    %377 = vector.broadcast %375 : vector<1x64xf32> to vector<16x64xf32>
    %378 = arith.mulf %376, %377 : vector<16x64xf32>
    %379 = vector.extract_strided_slice %77 {offsets = [21, 0, 0], sizes = [1, 16, 64], strides = [1, 1, 1]} : vector<32x16x64xf32> to vector<1x16x64xf32>
    %380 = vector.shape_cast %379 : vector<1x16x64xf32> to vector<16x64xf32>
    %381 = arith.mulf %380, %368 : vector<16x64xf32>
    %382 = arith.addf %381, %378 : vector<16x64xf32>
    %383 = vector.extract_strided_slice %79 {offsets = [0, 21], sizes = [16, 1], strides = [1, 1]} : vector<16x32xf32> to vector<16x1xf32>
    %384 = vector.broadcast %383 : vector<16x1xf32> to vector<16x64xf32>
    %385 = arith.mulf %382, %384 : vector<16x64xf32>
    %cst_59 = arith.constant dense<0.000000e+00> : vector<64xf32>
    %386 = vector.multi_reduction <add>, %385, %cst_59 [0] : vector<16x64xf32> to vector<64xf32>
    %387 = vector.shape_cast %386 : vector<64xf32> to vector<1x64xf32>
    %388 = vector.extract_strided_slice %78 {offsets = [0, 22], sizes = [16, 1], strides = [1, 1]} : vector<16x32xf32> to vector<16x1xf32>
    %389 = vector.extract_strided_slice %71 {offsets = [22, 0], sizes = [1, 64], strides = [1, 1]} : vector<32x64xf32> to vector<1x64xf32>
    %390 = vector.broadcast %388 : vector<16x1xf32> to vector<16x64xf32>
    %391 = vector.broadcast %389 : vector<1x64xf32> to vector<16x64xf32>
    %392 = arith.mulf %390, %391 : vector<16x64xf32>
    %393 = vector.extract_strided_slice %77 {offsets = [22, 0, 0], sizes = [1, 16, 64], strides = [1, 1, 1]} : vector<32x16x64xf32> to vector<1x16x64xf32>
    %394 = vector.shape_cast %393 : vector<1x16x64xf32> to vector<16x64xf32>
    %395 = arith.mulf %394, %382 : vector<16x64xf32>
    %396 = arith.addf %395, %392 : vector<16x64xf32>
    %397 = vector.extract_strided_slice %79 {offsets = [0, 22], sizes = [16, 1], strides = [1, 1]} : vector<16x32xf32> to vector<16x1xf32>
    %398 = vector.broadcast %397 : vector<16x1xf32> to vector<16x64xf32>
    %399 = arith.mulf %396, %398 : vector<16x64xf32>
    %cst_60 = arith.constant dense<0.000000e+00> : vector<64xf32>
    %400 = vector.multi_reduction <add>, %399, %cst_60 [0] : vector<16x64xf32> to vector<64xf32>
    %401 = vector.shape_cast %400 : vector<64xf32> to vector<1x64xf32>
    %402 = vector.extract_strided_slice %78 {offsets = [0, 23], sizes = [16, 1], strides = [1, 1]} : vector<16x32xf32> to vector<16x1xf32>
    %403 = vector.extract_strided_slice %71 {offsets = [23, 0], sizes = [1, 64], strides = [1, 1]} : vector<32x64xf32> to vector<1x64xf32>
    %404 = vector.broadcast %402 : vector<16x1xf32> to vector<16x64xf32>
    %405 = vector.broadcast %403 : vector<1x64xf32> to vector<16x64xf32>
    %406 = arith.mulf %404, %405 : vector<16x64xf32>
    %407 = vector.extract_strided_slice %77 {offsets = [23, 0, 0], sizes = [1, 16, 64], strides = [1, 1, 1]} : vector<32x16x64xf32> to vector<1x16x64xf32>
    %408 = vector.shape_cast %407 : vector<1x16x64xf32> to vector<16x64xf32>
    %409 = arith.mulf %408, %396 : vector<16x64xf32>
    %410 = arith.addf %409, %406 : vector<16x64xf32>
    %411 = vector.extract_strided_slice %79 {offsets = [0, 23], sizes = [16, 1], strides = [1, 1]} : vector<16x32xf32> to vector<16x1xf32>
    %412 = vector.broadcast %411 : vector<16x1xf32> to vector<16x64xf32>
    %413 = arith.mulf %410, %412 : vector<16x64xf32>
    %cst_61 = arith.constant dense<0.000000e+00> : vector<64xf32>
    %414 = vector.multi_reduction <add>, %413, %cst_61 [0] : vector<16x64xf32> to vector<64xf32>
    %415 = vector.shape_cast %414 : vector<64xf32> to vector<1x64xf32>
    %416 = vector.extract_strided_slice %78 {offsets = [0, 24], sizes = [16, 1], strides = [1, 1]} : vector<16x32xf32> to vector<16x1xf32>
    %417 = vector.extract_strided_slice %71 {offsets = [24, 0], sizes = [1, 64], strides = [1, 1]} : vector<32x64xf32> to vector<1x64xf32>
    %418 = vector.broadcast %416 : vector<16x1xf32> to vector<16x64xf32>
    %419 = vector.broadcast %417 : vector<1x64xf32> to vector<16x64xf32>
    %420 = arith.mulf %418, %419 : vector<16x64xf32>
    %421 = vector.extract_strided_slice %77 {offsets = [24, 0, 0], sizes = [1, 16, 64], strides = [1, 1, 1]} : vector<32x16x64xf32> to vector<1x16x64xf32>
    %422 = vector.shape_cast %421 : vector<1x16x64xf32> to vector<16x64xf32>
    %423 = arith.mulf %422, %410 : vector<16x64xf32>
    %424 = arith.addf %423, %420 : vector<16x64xf32>
    %425 = vector.extract_strided_slice %79 {offsets = [0, 24], sizes = [16, 1], strides = [1, 1]} : vector<16x32xf32> to vector<16x1xf32>
    %426 = vector.broadcast %425 : vector<16x1xf32> to vector<16x64xf32>
    %427 = arith.mulf %424, %426 : vector<16x64xf32>
    %cst_62 = arith.constant dense<0.000000e+00> : vector<64xf32>
    %428 = vector.multi_reduction <add>, %427, %cst_62 [0] : vector<16x64xf32> to vector<64xf32>
    %429 = vector.shape_cast %428 : vector<64xf32> to vector<1x64xf32>
    %430 = vector.extract_strided_slice %78 {offsets = [0, 25], sizes = [16, 1], strides = [1, 1]} : vector<16x32xf32> to vector<16x1xf32>
    %431 = vector.extract_strided_slice %71 {offsets = [25, 0], sizes = [1, 64], strides = [1, 1]} : vector<32x64xf32> to vector<1x64xf32>
    %432 = vector.broadcast %430 : vector<16x1xf32> to vector<16x64xf32>
    %433 = vector.broadcast %431 : vector<1x64xf32> to vector<16x64xf32>
    %434 = arith.mulf %432, %433 : vector<16x64xf32>
    %435 = vector.extract_strided_slice %77 {offsets = [25, 0, 0], sizes = [1, 16, 64], strides = [1, 1, 1]} : vector<32x16x64xf32> to vector<1x16x64xf32>
    %436 = vector.shape_cast %435 : vector<1x16x64xf32> to vector<16x64xf32>
    %437 = arith.mulf %436, %424 : vector<16x64xf32>
    %438 = arith.addf %437, %434 : vector<16x64xf32>
    %439 = vector.extract_strided_slice %79 {offsets = [0, 25], sizes = [16, 1], strides = [1, 1]} : vector<16x32xf32> to vector<16x1xf32>
    %440 = vector.broadcast %439 : vector<16x1xf32> to vector<16x64xf32>
    %441 = arith.mulf %438, %440 : vector<16x64xf32>
    %cst_63 = arith.constant dense<0.000000e+00> : vector<64xf32>
    %442 = vector.multi_reduction <add>, %441, %cst_63 [0] : vector<16x64xf32> to vector<64xf32>
    %443 = vector.shape_cast %442 : vector<64xf32> to vector<1x64xf32>
    %444 = vector.extract_strided_slice %78 {offsets = [0, 26], sizes = [16, 1], strides = [1, 1]} : vector<16x32xf32> to vector<16x1xf32>
    %445 = vector.extract_strided_slice %71 {offsets = [26, 0], sizes = [1, 64], strides = [1, 1]} : vector<32x64xf32> to vector<1x64xf32>
    %446 = vector.broadcast %444 : vector<16x1xf32> to vector<16x64xf32>
    %447 = vector.broadcast %445 : vector<1x64xf32> to vector<16x64xf32>
    %448 = arith.mulf %446, %447 : vector<16x64xf32>
    %449 = vector.extract_strided_slice %77 {offsets = [26, 0, 0], sizes = [1, 16, 64], strides = [1, 1, 1]} : vector<32x16x64xf32> to vector<1x16x64xf32>
    %450 = vector.shape_cast %449 : vector<1x16x64xf32> to vector<16x64xf32>
    %451 = arith.mulf %450, %438 : vector<16x64xf32>
    %452 = arith.addf %451, %448 : vector<16x64xf32>
    %453 = vector.extract_strided_slice %79 {offsets = [0, 26], sizes = [16, 1], strides = [1, 1]} : vector<16x32xf32> to vector<16x1xf32>
    %454 = vector.broadcast %453 : vector<16x1xf32> to vector<16x64xf32>
    %455 = arith.mulf %452, %454 : vector<16x64xf32>
    %cst_64 = arith.constant dense<0.000000e+00> : vector<64xf32>
    %456 = vector.multi_reduction <add>, %455, %cst_64 [0] : vector<16x64xf32> to vector<64xf32>
    %457 = vector.shape_cast %456 : vector<64xf32> to vector<1x64xf32>
    %458 = vector.extract_strided_slice %78 {offsets = [0, 27], sizes = [16, 1], strides = [1, 1]} : vector<16x32xf32> to vector<16x1xf32>
    %459 = vector.extract_strided_slice %71 {offsets = [27, 0], sizes = [1, 64], strides = [1, 1]} : vector<32x64xf32> to vector<1x64xf32>
    %460 = vector.broadcast %458 : vector<16x1xf32> to vector<16x64xf32>
    %461 = vector.broadcast %459 : vector<1x64xf32> to vector<16x64xf32>
    %462 = arith.mulf %460, %461 : vector<16x64xf32>
    %463 = vector.extract_strided_slice %77 {offsets = [27, 0, 0], sizes = [1, 16, 64], strides = [1, 1, 1]} : vector<32x16x64xf32> to vector<1x16x64xf32>
    %464 = vector.shape_cast %463 : vector<1x16x64xf32> to vector<16x64xf32>
    %465 = arith.mulf %464, %452 : vector<16x64xf32>
    %466 = arith.addf %465, %462 : vector<16x64xf32>
    %467 = vector.extract_strided_slice %79 {offsets = [0, 27], sizes = [16, 1], strides = [1, 1]} : vector<16x32xf32> to vector<16x1xf32>
    %468 = vector.broadcast %467 : vector<16x1xf32> to vector<16x64xf32>
    %469 = arith.mulf %466, %468 : vector<16x64xf32>
    %cst_65 = arith.constant dense<0.000000e+00> : vector<64xf32>
    %470 = vector.multi_reduction <add>, %469, %cst_65 [0] : vector<16x64xf32> to vector<64xf32>
    %471 = vector.shape_cast %470 : vector<64xf32> to vector<1x64xf32>
    %472 = vector.extract_strided_slice %78 {offsets = [0, 28], sizes = [16, 1], strides = [1, 1]} : vector<16x32xf32> to vector<16x1xf32>
    %473 = vector.extract_strided_slice %71 {offsets = [28, 0], sizes = [1, 64], strides = [1, 1]} : vector<32x64xf32> to vector<1x64xf32>
    %474 = vector.broadcast %472 : vector<16x1xf32> to vector<16x64xf32>
    %475 = vector.broadcast %473 : vector<1x64xf32> to vector<16x64xf32>
    %476 = arith.mulf %474, %475 : vector<16x64xf32>
    %477 = vector.extract_strided_slice %77 {offsets = [28, 0, 0], sizes = [1, 16, 64], strides = [1, 1, 1]} : vector<32x16x64xf32> to vector<1x16x64xf32>
    %478 = vector.shape_cast %477 : vector<1x16x64xf32> to vector<16x64xf32>
    %479 = arith.mulf %478, %466 : vector<16x64xf32>
    %480 = arith.addf %479, %476 : vector<16x64xf32>
    %481 = vector.extract_strided_slice %79 {offsets = [0, 28], sizes = [16, 1], strides = [1, 1]} : vector<16x32xf32> to vector<16x1xf32>
    %482 = vector.broadcast %481 : vector<16x1xf32> to vector<16x64xf32>
    %483 = arith.mulf %480, %482 : vector<16x64xf32>
    %cst_66 = arith.constant dense<0.000000e+00> : vector<64xf32>
    %484 = vector.multi_reduction <add>, %483, %cst_66 [0] : vector<16x64xf32> to vector<64xf32>
    %485 = vector.shape_cast %484 : vector<64xf32> to vector<1x64xf32>
    %486 = vector.extract_strided_slice %78 {offsets = [0, 29], sizes = [16, 1], strides = [1, 1]} : vector<16x32xf32> to vector<16x1xf32>
    %487 = vector.extract_strided_slice %71 {offsets = [29, 0], sizes = [1, 64], strides = [1, 1]} : vector<32x64xf32> to vector<1x64xf32>
    %488 = vector.broadcast %486 : vector<16x1xf32> to vector<16x64xf32>
    %489 = vector.broadcast %487 : vector<1x64xf32> to vector<16x64xf32>
    %490 = arith.mulf %488, %489 : vector<16x64xf32>
    %491 = vector.extract_strided_slice %77 {offsets = [29, 0, 0], sizes = [1, 16, 64], strides = [1, 1, 1]} : vector<32x16x64xf32> to vector<1x16x64xf32>
    %492 = vector.shape_cast %491 : vector<1x16x64xf32> to vector<16x64xf32>
    %493 = arith.mulf %492, %480 : vector<16x64xf32>
    %494 = arith.addf %493, %490 : vector<16x64xf32>
    %495 = vector.extract_strided_slice %79 {offsets = [0, 29], sizes = [16, 1], strides = [1, 1]} : vector<16x32xf32> to vector<16x1xf32>
    %496 = vector.broadcast %495 : vector<16x1xf32> to vector<16x64xf32>
    %497 = arith.mulf %494, %496 : vector<16x64xf32>
    %cst_67 = arith.constant dense<0.000000e+00> : vector<64xf32>
    %498 = vector.multi_reduction <add>, %497, %cst_67 [0] : vector<16x64xf32> to vector<64xf32>
    %499 = vector.shape_cast %498 : vector<64xf32> to vector<1x64xf32>
    %500 = vector.extract_strided_slice %78 {offsets = [0, 30], sizes = [16, 1], strides = [1, 1]} : vector<16x32xf32> to vector<16x1xf32>
    %501 = vector.extract_strided_slice %71 {offsets = [30, 0], sizes = [1, 64], strides = [1, 1]} : vector<32x64xf32> to vector<1x64xf32>
    %502 = vector.broadcast %500 : vector<16x1xf32> to vector<16x64xf32>
    %503 = vector.broadcast %501 : vector<1x64xf32> to vector<16x64xf32>
    %504 = arith.mulf %502, %503 : vector<16x64xf32>
    %505 = vector.extract_strided_slice %77 {offsets = [30, 0, 0], sizes = [1, 16, 64], strides = [1, 1, 1]} : vector<32x16x64xf32> to vector<1x16x64xf32>
    %506 = vector.shape_cast %505 : vector<1x16x64xf32> to vector<16x64xf32>
    %507 = arith.mulf %506, %494 : vector<16x64xf32>
    %508 = arith.addf %507, %504 : vector<16x64xf32>
    %509 = vector.extract_strided_slice %79 {offsets = [0, 30], sizes = [16, 1], strides = [1, 1]} : vector<16x32xf32> to vector<16x1xf32>
    %510 = vector.broadcast %509 : vector<16x1xf32> to vector<16x64xf32>
    %511 = arith.mulf %508, %510 : vector<16x64xf32>
    %cst_68 = arith.constant dense<0.000000e+00> : vector<64xf32>
    %512 = vector.multi_reduction <add>, %511, %cst_68 [0] : vector<16x64xf32> to vector<64xf32>
    %513 = vector.shape_cast %512 : vector<64xf32> to vector<1x64xf32>
    %514 = vector.extract_strided_slice %78 {offsets = [0, 31], sizes = [16, 1], strides = [1, 1]} : vector<16x32xf32> to vector<16x1xf32>
    %515 = vector.extract_strided_slice %71 {offsets = [31, 0], sizes = [1, 64], strides = [1, 1]} : vector<32x64xf32> to vector<1x64xf32>
    %516 = vector.broadcast %514 : vector<16x1xf32> to vector<16x64xf32>
    %517 = vector.broadcast %515 : vector<1x64xf32> to vector<16x64xf32>
    %518 = arith.mulf %516, %517 : vector<16x64xf32>
    %519 = vector.extract_strided_slice %77 {offsets = [31, 0, 0], sizes = [1, 16, 64], strides = [1, 1, 1]} : vector<32x16x64xf32> to vector<1x16x64xf32>
    %520 = vector.shape_cast %519 : vector<1x16x64xf32> to vector<16x64xf32>
    %521 = arith.mulf %520, %508 : vector<16x64xf32>
    %522 = arith.addf %521, %518 : vector<16x64xf32>
    %523 = vector.extract_strided_slice %79 {offsets = [0, 31], sizes = [16, 1], strides = [1, 1]} : vector<16x32xf32> to vector<16x1xf32>
    %524 = vector.broadcast %523 : vector<16x1xf32> to vector<16x64xf32>
    %525 = arith.mulf %522, %524 : vector<16x64xf32>
    %cst_69 = arith.constant dense<0.000000e+00> : vector<64xf32>
    %526 = vector.multi_reduction <add>, %525, %cst_69 [0] : vector<16x64xf32> to vector<64xf32>
    %527 = vector.shape_cast %526 : vector<64xf32> to vector<1x64xf32>
    %528 = tpu.concatenate %93, %107, %121, %135, %149, %163, %177, %191, %205, %219, %233, %247, %261, %275, %289, %303 in 0 : vector<1x64xf32>, vector<1x64xf32>, vector<1x64xf32>, vector<1x64xf32>, vector<1x64xf32>, vector<1x64xf32>, vector<1x64xf32>, vector<1x64xf32>, vector<1x64xf32>, vector<1x64xf32>, vector<1x64xf32>, vector<1x64xf32>, vector<1x64xf32>, vector<1x64xf32>, vector<1x64xf32>, vector<1x64xf32> -> vector<16x64xf32>
    %529 = tpu.concatenate %317, %331, %345, %359, %373, %387, %401, %415, %429, %443, %457, %471, %485, %499, %513, %527 in 0 : vector<1x64xf32>, vector<1x64xf32>, vector<1x64xf32>, vector<1x64xf32>, vector<1x64xf32>, vector<1x64xf32>, vector<1x64xf32>, vector<1x64xf32>, vector<1x64xf32>, vector<1x64xf32>, vector<1x64xf32>, vector<1x64xf32>, vector<1x64xf32>, vector<1x64xf32>, vector<1x64xf32>, vector<1x64xf32> -> vector<16x64xf32>
    %530 = tpu.concatenate %528, %529 in 0 : vector<16x64xf32>, vector<16x64xf32> -> vector<32x64xf32>
    %531 = vector.broadcast %59 : vector<1x64xf32> to vector<32x64xf32>
    %532 = arith.mulf %531, %66 : vector<32x64xf32>
    %533 = arith.addf %530, %532 : vector<32x64xf32>
    %534 = arith.index_cast %62 : i32 to index
    %c0_70 = arith.constant 0 : index
    %535 = vector.load %arg17[%534, %c0_70] : memref<32x64xf32, #tpu.memory_space<vmem>>, vector<32x64xf32>
    tpu.vector_store %arg17[%534, %c0_70], %533 {strides = array<i32>} : memref<32x64xf32, #tpu.memory_space<vmem>>, vector<32x64xf32>,
    %c1_i32 = arith.constant 1 : i32
    %c0_71 = arith.constant 0 : index
    %c0_72 = arith.constant 0 : index
    %c0_73 = arith.constant 0 : index
    %536 = vector.load %arg2[%c0_71, %c0_72, %c0_73] : memref<1x32x64xbf16, #tpu.memory_space<vmem>>, vector<1x32x64xbf16>
    %537 = vector.shape_cast %536 : vector<1x32x64xbf16> to vector<32x64xbf16>
    %538 = arith.extf %537 : vector<32x64xbf16> to vector<32x64xf32>
    %c0_74 = arith.constant 0 : index
    %c0_75 = arith.constant 0 : index
    %539 = vector.load %arg17[%c0_74, %c0_75] : memref<32x64xf32, #tpu.memory_space<vmem>>, vector<32x64xf32>
    %540 = arith.negf %538 : vector<32x64xf32>
    %541 = math.exp %540 : vector<32x64xf32>
    %cst_76 = arith.constant 1.000000e+00 : f32
    %542 = vector.broadcast %cst_76 : f32 to vector<32x64xf32>
    %543 = arith.addf %542, %541 : vector<32x64xf32>
    %544 = arith.divf %542, %543 : vector<32x64xf32>
    %545 = arith.mulf %538, %544 : vector<32x64xf32>
    %546 = arith.mulf %539, %545 : vector<32x64xf32>
    %547 = arith.truncf %546 : vector<32x64xf32> to vector<32x64xbf16>
    %c0_77 = arith.constant 0 : index
    %c0_78 = arith.constant 0 : index
    %548 = vector.load %arg11[%c0_77, %c0_78] : memref<64x32xbf16, #tpu.memory_space<vmem>>, vector<64x32xbf16>
    %cst_79 = arith.constant dense<0.000000e+00> : vector<32x32xf32>
    %549 = tpu.matmul %547, %548, %cst_79 {dimension_numbers = #tpu.dot_dimension_numbers<[1], [0], [0], [1], [0, 0, 1, 1], [], []>} : vector<32x64xbf16>, vector<64x32xbf16>, vector<32x32xf32> -> vector<32x32xf32>
    %c0_80 = arith.constant 0 : index
    %c0_81 = arith.constant 0 : index
    %c0_82 = arith.constant 0 : index
    %550 = vector.load %arg3[%c0_80, %c0_81, %c0_82] : memref<1x32x32xf32, #tpu.memory_space<vmem>>, vector<1x32x32xf32>
    %551 = vector.shape_cast %550 : vector<1x32x32xf32> to vector<32x32xf32>
    %552 = arith.addf %549, %551 : vector<32x32xf32>
    %c0_83 = arith.constant 0 : index
    %c0_84 = arith.constant 0 : index
    %c0_85 = arith.constant 0 : index
    %553 = vector.load %arg12[%c0_83, %c0_84, %c0_85] : memref<1x32x32xf32, #tpu.memory_space<vmem>>, vector<1x32x32xf32>
    %554 = vector.shape_cast %553 : vector<1x32x32xf32> to vector<32x32xf32>
    %555 = vector.shape_cast %552 : vector<32x32xf32> to vector<1x32x32xf32>
    tpu.vector_store %arg12[%c0_83, %c0_84, %c0_85], %555 {strides = array<i32>} : memref<1x32x32xf32, #tpu.memory_space<vmem>>, vector<1x32x32xf32>,
    return
  }
  func.func @transform_0(%arg0: i32) -> (i32, i32, i32) {
    %c0_i32 = arith.constant 0 : i32
    %c0_i32_0 = arith.constant 0 : i32
    %c0_i32_1 = arith.constant 0 : i32
    return %arg0, %c0_i32, %c0_i32_0 : i32, i32, i32
  }
  func.func @transform_1(%arg0: i32) -> (i32, i32, i32) {
    %c0_i32 = arith.constant 0 : i32
    %c0_i32_0 = arith.constant 0 : i32
    %c0_i32_1 = arith.constant 0 : i32
    return %arg0, %c0_i32, %c0_i32_0 : i32, i32, i32
  }
  func.func @transform_2(%arg0: i32) -> (i32, i32, i32) {
    %c0_i32 = arith.constant 0 : i32
    %c0_i32_0 = arith.constant 0 : i32
    %c0_i32_1 = arith.constant 0 : i32
    return %arg0, %c0_i32, %c0_i32_0 : i32, i32, i32
  }
  func.func @transform_3(%arg0: i32) -> (i32, i32) {
    %c0_i32 = arith.constant 0 : i32
    %c0_i32_0 = arith.constant 0 : i32
    %c0_i32_1 = arith.constant 0 : i32
    return %c0_i32, %c0_i32_0 : i32, i32
  }
  func.func @transform_4(%arg0: i32) -> (i32, i32) {
    %c0_i32 = arith.constant 0 : i32
    %c0_i32_0 = arith.constant 0 : i32
    %c0_i32_1 = arith.constant 0 : i32
    return %c0_i32, %c0_i32_0 : i32, i32
  }
  func.func @transform_5(%arg0: i32) -> (i32, i32) {
    %c0_i32 = arith.constant 0 : i32
    %c0_i32_0 = arith.constant 0 : i32
    %c0_i32_1 = arith.constant 0 : i32
    return %c0_i32, %c0_i32_0 : i32, i32
  }
  func.func @transform_6(%arg0: i32) -> (i32, i32) {
    %c0_i32 = arith.constant 0 : i32
    %c0_i32_0 = arith.constant 0 : i32
    %c0_i32_1 = arith.constant 0 : i32
    return %c0_i32, %c0_i32_0 : i32, i32
  }
  func.func @transform_7(%arg0: i32) -> (i32, i32) {
    %c0_i32 = arith.constant 0 : i32
    %c0_i32_0 = arith.constant 0 : i32
    %c0_i32_1 = arith.constant 0 : i32
    return %c0_i32, %c0_i32_0 : i32, i32
  }
  func.func @transform_8(%arg0: i32) -> (i32, i32) {
    %c0_i32 = arith.constant 0 : i32
    %c0_i32_0 = arith.constant 0 : i32
    %c0_i32_1 = arith.constant 0 : i32
    return %c0_i32, %c0_i32_0 : i32, i32
  }
  func.func @transform_9(%arg0: i32) -> (i32, i32) {
    %c0_i32 = arith.constant 0 : i32
    %c0_i32_0 = arith.constant 0 : i32
    %c0_i32_1 = arith.constant 0 : i32
    return %c0_i32, %c0_i32_0 : i32, i32
  }
  func.func @transform_10(%arg0: i32) -> (i32, i32) {
    %c0_i32 = arith.constant 0 : i32
    %c0_i32_0 = arith.constant 0 : i32
    %c0_i32_1 = arith.constant 0 : i32
    return %c0_i32, %c0_i32_0 : i32, i32
  }
  func.func @transform_11(%arg0: i32) -> (i32, i32, i32) {
    %c0_i32 = arith.constant 0 : i32
    %c0_i32_0 = arith.constant 0 : i32
    %c0_i32_1 = arith.constant 0 : i32
    return %arg0, %c0_i32, %c0_i32_0 : i32, i32, i32
  }
}

module attributes {stable_mosaic.version = 11 : i64} {
  func.func @_rms_linear_kernel(%arg0: i32, %arg1: memref<16x32xf32, #tpu.memory_space<vmem>>, %arg2: memref<1x32xf32, #tpu.memory_space<vmem>>, %arg3: memref<32x8xbf16, #tpu.memory_space<vmem>>, %arg4: memref<1x8xf32, #tpu.memory_space<vmem>>, %arg5: memref<16x8xf32, #tpu.memory_space<vmem>>) attributes {dimension_semantics = [#tpu.dimension_semantics<parallel>], iteration_bounds = array<i64: 1>, scalar_prefetch = 0 : i64, scratch_operands = 0 : i64, tpu.core_type = #tpu.core_type<tc>, window_params = [{transform_indices = @transform_0, window_bounds = array<i64: 16, 32>}, {pipeline_mode = #tpu.pipeline_mode<synchronous>, transform_indices = @transform_1, window_bounds = array<i64: 1, 32>}, {pipeline_mode = #tpu.pipeline_mode<synchronous>, transform_indices = @transform_2, window_bounds = array<i64: 32, 8>}, {pipeline_mode = #tpu.pipeline_mode<synchronous>, transform_indices = @transform_3, window_bounds = array<i64: 1, 8>}, {transform_indices = @transform_4, window_bounds = array<i64: 16, 8>}]} {
    %c0 = arith.constant 0 : index
    %c0_0 = arith.constant 0 : index
    %0 = vector.load %arg1[%c0, %c0_0] : memref<16x32xf32, #tpu.memory_space<vmem>>, vector<16x32xf32>
    %1 = arith.mulf %0, %0 : vector<16x32xf32>
    %cst = arith.constant dense<0.000000e+00> : vector<16xf32>
    %2 = vector.multi_reduction <add>, %1, %cst [1] : vector<16x32xf32> to vector<16xf32>
    %3 = vector.shape_cast %2 : vector<16xf32> to vector<16x1xf32>
    %cst_1 = arith.constant 3.200000e+01 : f32
    %4 = vector.broadcast %cst_1 : f32 to vector<16x1xf32>
    %5 = arith.divf %3, %4 : vector<16x1xf32>
    %cst_2 = arith.constant 9.99999974E-6 : f32
    %6 = vector.broadcast %cst_2 : f32 to vector<16x1xf32>
    %7 = arith.addf %5, %6 : vector<16x1xf32>
    %8 = math.rsqrt %7 : vector<16x1xf32>
    %9 = vector.broadcast %8 : vector<16x1xf32> to vector<16x32xf32>
    %10 = arith.mulf %0, %9 : vector<16x32xf32>
    %c0_3 = arith.constant 0 : index
    %c0_4 = arith.constant 0 : index
    %11 = vector.load %arg2[%c0_3, %c0_4] : memref<1x32xf32, #tpu.memory_space<vmem>>, vector<1x32xf32>
    %12 = vector.broadcast %11 : vector<1x32xf32> to vector<16x32xf32>
    %13 = arith.mulf %10, %12 : vector<16x32xf32>
    %14 = arith.truncf %13 : vector<16x32xf32> to vector<16x32xbf16>
    %c0_5 = arith.constant 0 : index
    %c0_6 = arith.constant 0 : index
    %15 = vector.load %arg3[%c0_5, %c0_6] : memref<32x8xbf16, #tpu.memory_space<vmem>>, vector<32x8xbf16>
    %cst_7 = arith.constant dense<0.000000e+00> : vector<16x8xf32>
    %16 = tpu.matmul %14, %15, %cst_7 {dimension_numbers = #tpu.dot_dimension_numbers<[1], [0], [0], [1], [0, 0, 1, 1], [], []>} : vector<16x32xbf16>, vector<32x8xbf16>, vector<16x8xf32> -> vector<16x8xf32>
    %c0_8 = arith.constant 0 : index
    %c0_9 = arith.constant 0 : index
    %17 = vector.load %arg4[%c0_8, %c0_9] : memref<1x8xf32, #tpu.memory_space<vmem>>, vector<1x8xf32>
    %18 = vector.broadcast %17 : vector<1x8xf32> to vector<16x8xf32>
    %19 = arith.addf %16, %18 : vector<16x8xf32>
    %20 = math.tanh %19 : vector<16x8xf32>
    %c0_10 = arith.constant 0 : index
    %c0_11 = arith.constant 0 : index
    %21 = vector.load %arg5[%c0_10, %c0_11] : memref<16x8xf32, #tpu.memory_space<vmem>>, vector<16x8xf32>
    tpu.vector_store %arg5[%c0_10, %c0_11], %20 {strides = array<i32>} : memref<16x8xf32, #tpu.memory_space<vmem>>, vector<16x8xf32>,
    return
  }
  func.func @transform_0(%arg0: i32) -> (i32, i32) {
    %c0_i32 = arith.constant 0 : i32
    %c0_i32_0 = arith.constant 0 : i32
    return %arg0, %c0_i32 : i32, i32
  }
  func.func @transform_1(%arg0: i32) -> (i32, i32) {
    %c0_i32 = arith.constant 0 : i32
    %c0_i32_0 = arith.constant 0 : i32
    %c0_i32_1 = arith.constant 0 : i32
    return %c0_i32, %c0_i32_0 : i32, i32
  }
  func.func @transform_2(%arg0: i32) -> (i32, i32) {
    %c0_i32 = arith.constant 0 : i32
    %c0_i32_0 = arith.constant 0 : i32
    %c0_i32_1 = arith.constant 0 : i32
    return %c0_i32, %c0_i32_0 : i32, i32
  }
  func.func @transform_3(%arg0: i32) -> (i32, i32) {
    %c0_i32 = arith.constant 0 : i32
    %c0_i32_0 = arith.constant 0 : i32
    %c0_i32_1 = arith.constant 0 : i32
    return %c0_i32, %c0_i32_0 : i32, i32
  }
  func.func @transform_4(%arg0: i32) -> (i32, i32) {
    %c0_i32 = arith.constant 0 : i32
    %c0_i32_0 = arith.constant 0 : i32
    return %arg0, %c0_i32 : i32, i32
  }
}

</mosaic_0001>

<bundles_post_ra>
// kernel: decision_mamba_forward.11
= control target key start
LH: loop header
LB: loop body
LE: loop exit
PB: predicated region body
PF: predicated region fallthrough
CT: control target
= control target key end

     0   :  { %vm23_vm0 = vcmask 261120   ;;  %s244_s0 = inlined_call_operand.vmem [shape: f32[16,32], index: 0, kind: input, shape index: {}]   ;;  %s245_s1 = inlined_call_operand.vmem [shape: f32[1,32], index: 1, kind: input, shape index: {}]   ;;  %s246_s2 = inlined_call_operand.vmem [shape: bf16[32,8], index: 2, kind: input, shape index: {}]   ;;  %s247_s3 = inlined_call_operand.vmem [shape: f32[1,8], index: 3, kind: input, shape index: {}]   ;;  %s248_s4 = inlined_call_operand.hbm [shape: f32[16,8], index: 4, kind: output, shape index: {}]  }
   0x1   :  { %v19_v0 = vld [vmem:[%s244_s0] sm:$0xff]  ;;  %v20_v1 = vld [vmem:[%s244_s0 + $0x8] sm:$0xff] }
   0x2   :  { %v21_v2 = vmul.f32 %v19_v0, %v19_v0  ;;  %v22_v3 = vmul.f32 %v20_v1, %v20_v1 }
   0x3   :  { %9 = vsyncpa [#allocation3], 0  ;;  %v158_v6 = vld [vmem:[%s246_s2 + $0x8] sm:$0xff]   ;;  %v190_v7 = vmov 0.0   ;;  %vm191_vm1 = vmmov 0   ;;  %v159_v8 = vld [vmem:[%s246_s2] sm:$0xff]  }
   0x4   :  { %v24_v4 = vsel %vm23_vm0, %v21_v2, 0.0  ;;  %v27_v5 = vsel %vm23_vm0, %v22_v3, 0.0  ;;  %145 = vmatprep.subr.bf16.mxu0 %v190_v7  ;;  %149 = vmatprep.mubr.msk.bf16.mxu0 %vm191_vm1, %v190_v7  ;;  %v137_v18 = vld [vmem:[%s245_s1] ss:$0 sm:$0xff]  ;;  %vm118_vm2 = vcmask 64512   ;;  %s192_s1 = smov [#allocation2]  }
   0x5   :  { %25 = vadd.xlane.f32.xlu0 %v24_v4  ;;  %146 = vmatpush3.bf16.msra.mxu0 %v158_v6  ;;  %v138_v23 = vld [vmem:[%s247_s3] ss:$0 sm:$0xff]  ;;  %s126_s25 = sshll.u32 %s192_s1, 4  ;;  %s127_s25 = int_to_ptr.vmem [resolvable:$true] %s126_s25 }
   0x6   :  { %147 = vmatprep.subr.bf16.mxu0 %v190_v7  ;;  %s168_s26 = scalar_lea.vmem %s127_s25, 256  ;;  %p173_p1 = scmp.lt.s32.totalorder %s127_s25, %s127_s25 }
   0x7   :  { %p169_p0 = scmp.ne.s32.totalorder %s127_s25, %s168_s26  ;;  %p174_p2 = scmp.lt.s32.totalorder %s168_s26, %s168_s26 }
   0x9   :  { %28 = vadd.xlane.f32.xlu0 %v27_v5  ;;  %148 = vmatpush3.bf16.msra.mxu0 %v159_v8  ;;  %p175_p3 = por %p174_p2, %p173_p1 }
   0xb   :  { %p176_p4 = pnand %p175_p3, %p169_p0 }
  0x8e   :  { %v26_v9 = vpop.xlane.xlu0 %25 }
  0x8f   :  { %v31_v10 = vmul.f32 0.03125, %v26_v9 }
  0x91   :  { %v33_v11 = vadd.f32 1e-05, %v31_v10 }
  0x92   :  { %v29_v12 = vpop.xlane.xlu0 %28 }
  0x93   :  { %160 = vrsqrt.f32 %v33_v11  ;;  %v32_v13 = vmul.f32 0.03125, %v29_v12 }
  0x95   :  { %v34_v14 = vadd.f32 1e-05, %v32_v13 }
  0x97   :  { %162 = vrsqrt.f32 %v34_v14 }
  0xa0   :  { %v161_v15 = vpop.eup %160 }
  0xa1   :  { %v37_v16 = vmul.f32 %v161_v15, %v19_v0 }
  0xa3   :  { %v46_v20 = vmul.f32 %v137_v18, %v37_v16 }
  0xa4   :  { %v163_v17 = vpop.eup %162 }
  0xa5   :  { %v38_v19 = vmul.f32 %v163_v17, %v20_v1 }
  0xa7   :  { %v47_v21 = vmul.f32 %v137_v18, %v38_v19 }
  0xa9   :  { %v48_v22 = vpack.c.bf16 %v47_v21, %v46_v20 }
  0xab   :  { %150 = vmatmul.mubr.msk.bf16.vlgmr.msra.gmra.mxu0 %vm23_vm0, %v48_v22 }
 0x16b   :  { %v109_v24 = vpop.f32.mrf.mxu0 }
 0x16c   :  { %v110_v25 = vadd.f32 %v138_v23, %v109_v24 }
 0x16d   :  { %v151_v26 = vpop.f32.mrf.mxu0 }
 0x16e   :  { %164 = vtanh.f32 %v110_v25 }
 0x16f   :  { %v112_v27 = vpop.f32.mrf.mxu0 }
 0x170   :  { %v113_v28 = vadd.f32 %v138_v23, %v112_v27 }
 0x171   :  { %v152_v29 = vpop.f32.mrf.mxu0 }
 0x172   :  { %166 = vtanh.f32 %v113_v28 }
 0x17b   :  { %v165_v30 = vpop.eup %164 }
 0x17c   :  { %119 = vst.msk [vmem:[#allocation2] sm:$0xff] %vm118_vm2, %v165_v30 }
 0x17f   :  { %v167_v31 = vpop.eup %166 }
 0x180   :  { %120 = vst.msk [vmem:[#allocation2 + $0x8] sm:$0xff] %vm118_vm2, %v167_v31 }
 0x181   :  { %179 = shalt.err (!%p176_p4)
}
 0x182   :  { %s193_s3 = smov 128   ;;  %s194_s27 = smov 8  }
 0x183   :  { %132 = dma.vmem_to_hbm [thread:$0]  %s127_s25, 256, %s248_s4, [#allocation3], %s193_s3, %s193_s3, %s194_s27  }
 0x184   :  { %188 = dma.done.wait [#allocation3], 256  }
 0x185   :  { %189 = vsyncadd [#allocation3], 4294967040 }
 0x186   :  { %136 = vsyncpa [#allocation3], 1 }

// kernel: decision_mamba_forward.7
= control target key start
LH: loop header
LB: loop body
LE: loop exit
PB: predicated region body
PF: predicated region fallthrough
CT: control target
= control target key end

     0   :  { %vm31_vm0 = vcmask 261120   ;;  %s448_s0 = inlined_call_operand.vmem [shape: f32[64,32], index: 0, kind: input, shape index: {}]   ;;  %s449_s2 = inlined_call_operand.vmem [shape: bf16[32,128], index: 2, kind: input, shape index: {}]   ;;  %s450_s1 = inlined_call_operand.vmem [shape: f32[1,32], index: 1, kind: input, shape index: {}]   ;;  %s451_s3 = inlined_call_operand.vmem [shape: bf16[64,128], index: 3, kind: output, shape index: {}]  }
   0x1   :  { %v354_v0 = vld [vmem:[%s448_s0 + $0x20] sm:$0xff]  ;;  %v364_v2 = vld [vmem:[%s448_s0 + $0x28] sm:$0xff]  ;;  %v382_v8 = vld [vmem:[%s448_s0 + $0x18] sm:$0xff] }
   0x2   :  { %v359_v1 = vld [vmem:[%s448_s0] sm:$0xff]  ;;  %v27_v3 = vmul.f32 %v354_v0, %v354_v0  ;;  %v28_v5 = vmul.f32 %v364_v2, %v364_v2  ;;  %v375_v6 = vld [vmem:[%s448_s0 + $0x8] sm:$0xff]  ;;  %v387_v9 = vld [vmem:[%s448_s0 + $0x10] sm:$0xff]  ;;  %v26_v14 = vmul.f32 %v382_v8, %v382_v8 }
   0x3   :  { %v23_v4 = vmul.f32 %v359_v1, %v359_v1  ;;  %v24_v7 = vmul.f32 %v375_v6, %v375_v6  ;;  %v25_v15 = vmul.f32 %v387_v9, %v387_v9  ;;  %v400_v16 = vld [vmem:[%s448_s0 + $0x38] sm:$0xff]  ;;  %v405_v17 = vld [vmem:[%s448_s0 + $0x30] sm:$0xff]  ;;  %v313_v24 = vld [vmem:[%s449_s2 + $0x8] sm:$0xff]  }
   0x4   :  { %v44_v10 = vsel %vm31_vm0, %v27_v3, 0.0  ;;  %v47_v12 = vsel %vm31_vm0, %v28_v5, 0.0  ;;  %v41_v18 = vsel %vm31_vm0, %v26_v14, 0.0  ;;  %v30_v20 = vmul.f32 %v400_v16, %v400_v16  ;;  %v314_v25 = vld [vmem:[%s449_s2] sm:$0xff]   ;;  %297 = vmatprep.subr.bf16.mxu0 %v313_v24  ;;  %309 = vmatprep.subr.bf16.mxu1 %v313_v24 }
   0x5   :  { %v32_v11 = vsel %vm31_vm0, %v23_v4, 0.0  ;;  %45 = vadd.xlane.f32.xlu1 %v44_v10  ;;  %v35_v13 = vsel %vm31_vm0, %v24_v7, 0.0  ;;  %v38_v19 = vsel %vm31_vm0, %v25_v15, 0.0  ;;  %v29_v21 = vmul.f32 %v405_v17, %v405_v17  ;;  %298 = vmatpush3.bf16.msra.mxu0 %v313_v24  ;;  %v245_v55 = vld [vmem:[%s450_s1] ss:$0 sm:$0xff] }
   0x6   :  { %33 = vadd.xlane.f32.xlu0 %v32_v11  ;;  %v53_v22 = vsel %vm31_vm0, %v30_v20, 0.0  ;;  %311 = vmatpush3.bf16.msra.mxu1 %v313_v24 }
   0x7   :  { %v50_v23 = vsel %vm31_vm0, %v29_v21, 0.0  ;;  %299 = vmatprep.subr.bf16.mxu0 %v314_v25  ;;  %310 = vmatprep.subr.bf16.mxu1 %v314_v25 }
   0x9   :  { %48 = vadd.xlane.f32.xlu1 %v47_v12  ;;  %300 = vmatpush3.bf16.msra.mxu0 %v314_v25 }
   0xa   :  { %36 = vadd.xlane.f32.xlu0 %v35_v13  ;;  %312 = vmatpush3.bf16.msra.mxu1 %v314_v25 }
   0xd   :  { %42 = vadd.xlane.f32.xlu1 %v41_v18 }
   0xe   :  { %39 = vadd.xlane.f32.xlu0 %v38_v19 }
  0x11   :  { %54 = vadd.xlane.f32.xlu1 %v53_v22 }
  0x12   :  { %51 = vadd.xlane.f32.xlu0 %v50_v23 }
  0x8e   :  { %v46_v26 = vpop.xlane.xlu1 %45 }
  0x8f   :  { %v34_v27 = vpop.xlane.xlu0 %33  ;;  %v61_v28 = vmul.f32 0.03125, %v46_v26 }
  0x90   :  { %v57_v29 = vmul.f32 0.03125, %v34_v27 }
  0x91   :  { %v69_v30 = vadd.f32 1e-05, %v61_v28 }
  0x92   :  { %v65_v31 = vadd.f32 1e-05, %v57_v29  ;;  %v49_v32 = vpop.xlane.xlu1 %48 }
  0x93   :  { %v37_v33 = vpop.xlane.xlu0 %36  ;;  %315 = vrsqrt.f32 %v69_v30  ;;  %v62_v34 = vmul.f32 0.03125, %v49_v32 }
  0x94   :  { %v58_v35 = vmul.f32 0.03125, %v37_v33  ;;  %317 = vrsqrt.f32 %v65_v31 }
  0x95   :  { %v70_v36 = vadd.f32 1e-05, %v62_v34 }
  0x96   :  { %v66_v37 = vadd.f32 1e-05, %v58_v35  ;;  %v43_v38 = vpop.xlane.xlu1 %42 }
  0x97   :  { %v40_v39 = vpop.xlane.xlu0 %39  ;;  %319 = vrsqrt.f32 %v70_v36  ;;  %v60_v40 = vmul.f32 0.03125, %v43_v38 }
  0x98   :  { %v59_v41 = vmul.f32 0.03125, %v40_v39  ;;  %321 = vrsqrt.f32 %v66_v37 }
  0x99   :  { %v68_v42 = vadd.f32 1e-05, %v60_v40 }
  0x9a   :  { %v67_v43 = vadd.f32 1e-05, %v59_v41  ;;  %v55_v44 = vpop.xlane.xlu1 %54 }
  0x9b   :  { %v52_v45 = vpop.xlane.xlu0 %51  ;;  %323 = vrsqrt.f32 %v68_v42  ;;  %v64_v46 = vmul.f32 0.03125, %v55_v44 }
  0x9c   :  { %v63_v47 = vmul.f32 0.03125, %v52_v45  ;;  %325 = vrsqrt.f32 %v67_v43 }
  0x9d   :  { %v72_v48 = vadd.f32 1e-05, %v64_v46 }
  0x9e   :  { %v71_v49 = vadd.f32 1e-05, %v63_v47 }
  0x9f   :  { %327 = vrsqrt.f32 %v72_v48 }
  0xa0   :  { %v316_v50 = vpop.eup %315  ;;  %329 = vrsqrt.f32 %v71_v49 }
  0xa1   :  { %v318_v51 = vpop.eup %317  ;;  %v85_v52 = vmul.f32 %v316_v50, %v354_v0 }
  0xa2   :  { %v81_v54 = vmul.f32 %v318_v51, %v359_v1 }
  0xa3   :  { %v100_v59 = vmul.f32 %v245_v55, %v85_v52 }
  0xa4   :  { %v320_v53 = vpop.eup %319  ;;  %v96_v62 = vmul.f32 %v245_v55, %v81_v54 }
  0xa5   :  { %v322_v56 = vpop.eup %321  ;;  %v86_v57 = vmul.f32 %v320_v53, %v364_v2 }
  0xa6   :  { %v82_v58 = vmul.f32 %v322_v56, %v375_v6 }
  0xa7   :  { %v101_v60 = vmul.f32 %v245_v55, %v86_v57 }
  0xa8   :  { %v324_v61 = vpop.eup %323  ;;  %v97_v63 = vmul.f32 %v245_v55, %v82_v58 }
  0xa9   :  { %v326_v3 = vpop.eup %325  ;;  %v106_v4 = vpack.c.bf16 %v101_v60, %v100_v59  ;;  %v84_v0 = vmul.f32 %v324_v61, %v382_v8 }
  0xaa   :  { %v104_v5 = vpack.c.bf16 %v97_v63, %v96_v62  ;;  %v83_v1 = vmul.f32 %v326_v3, %v387_v9 }
  0xab   :  { %305 = vmatprep.mubr.msk.bf16.mxu1 %vm31_vm0, %v106_v4  ;;  %v99_v7 = vmul.f32 %v245_v55, %v84_v0 }
  0xac   :  { %v328_v10 = vpop.eup %327  ;;  %301 = vmatprep.mubr.msk.bf16.mxu0 %vm31_vm0, %v104_v5  ;;  %v98_v2 = vmul.f32 %v245_v55, %v83_v1 }
  0xad   :  { %v330_v6 = vpop.eup %329  ;;  %v88_v11 = vmul.f32 %v328_v10, %v400_v16 }
  0xae   :  { %v105_v12 = vpack.c.bf16 %v99_v7, %v98_v2  ;;  %v87_v13 = vmul.f32 %v330_v6, %v405_v17 }
  0xaf   :  { %v103_v14 = vmul.f32 %v245_v55, %v88_v11 }
  0xb0   :  { %302 = vmatmul.mubr.msk.bf16.vlgmr.msra.gmra.mxu0 %vm31_vm0, %v105_v12  ;;  %v102_v8 = vmul.f32 %v245_v55, %v87_v13 }
  0xb2   :  { %v107_v15 = vpack.c.bf16 %v103_v14, %v102_v8 }
  0xb4   :  { %306 = vmatmul.mubr.msk.bf16.vlgmr.msra.gmra.mxu1 %vm31_vm0, %v107_v15 }
 0x170   :  { %v303_v9 = vpop.f32.mrf.mxu0 }
 0x172   :  { %v170_v18 = vpop.f32.mrf.mxu0 }
 0x174   :  { %v304_v19 = vpop.f32.mrf.mxu0  ;;  %v307_v20 = vpop.f32.mrf.mxu1 }
 0x175   :  { %v276_v21 = vpack.c.bf16 %v304_v19, %v303_v9 }
 0x176   :  { %v173_v22 = vpop.f32.mrf.mxu0  ;;  %v186_v23 = vpop.f32.mrf.mxu1 }
 0x177   :  { %288 = vst [vmem:[%s451_s3 + $0x8] sm:$0xff] %v276_v21   ;;  %v271_v16 = vpack.c.bf16 %v173_v22, %v170_v18 }
 0x178   :  { %v308_v17 = vpop.f32.mrf.mxu1 }
 0x179   :  { %272 = vst [vmem:[%s451_s3] sm:$0xff] %v271_v16   ;;  %v286_v24 = vpack.c.bf16 %v308_v17, %v307_v20 }
 0x17a   :  { %v189_v25 = vpop.f32.mrf.mxu1 }
 0x17b   :  { %290 = vst [vmem:[%s451_s3 + $0x18] sm:$0xff] %v286_v24   ;;  %v281_v26 = vpack.c.bf16 %v189_v25, %v186_v23 }
 0x17d   :  { %289 = vst [vmem:[%s451_s3 + $0x10] sm:$0xff] %v281_v26  }

// kernel: decision_mamba_forward.6
= control target key start
LH: loop header
LB: loop body
LE: loop exit
PB: predicated region body
PF: predicated region fallthrough
CT: control target
= control target key end

     0   :  { %v429_v0 = vmov 0   ;;  %v430_v2 = vmov 0.0   ;;  %vm63_vm0 = vcmask 1043456   ;;  %vm431_vm1 = vmmov 0   ;;  %s432_s18 = smov 64   ;;  %s654_s2 = inlined_call_operand.vmem [shape: f32[16,1], index: 2, kind: input, shape index: {}]   ;;  %s655_s4 = inlined_call_operand.vmem [shape: f32[8,32], index: 4, kind: input, shape index: {}]   ;;  %s656_s0 = inlined_call_operand.vmem [shape: f32[16,8], index: 0, kind: input, shape index: {}]   ;;  %s657_s3 = inlined_call_operand.vmem [shape: s32[16,1], index: 3, kind: input, shape index: {}]   ;;  %s658_s1 = inlined_call_operand.vmem [shape: f32[16,1], index: 1, kind: input, shape index: {}]   ;;  %s659_s8 = inlined_call_operand.vmem [shape: f32[1,32], index: 8, kind: input, shape index: {}]   ;;  %s660_s9 = inlined_call_operand.vmem [shape: f32[1,32], index: 9, kind: input, shape index: {}]   ;;  %s661_s5 = inlined_call_operand.vmem [shape: f32[1,32], index: 5, kind: input, shape index: {}]   ;;  %s662_s10 = inlined_call_operand.vmem [shape: f32[3,32], index: 10, kind: input, shape index: {}]   ;;  %s663_s6 = inlined_call_operand.vmem [shape: f32[1,32], index: 6, kind: input, shape index: {}]   ;;  %s664_s7 = inlined_call_operand.vmem [shape: f32[1,32], index: 7, kind: input, shape index: {}]   ;;  %s665_s11 = inlined_call_operand.vmem [shape: f32[1,32], index: 11, kind: input, shape index: {}]   ;;  %s666_s12 = inlined_call_operand.vmem [shape: f32[1,32], index: 12, kind: input, shape index: {}]   ;;  %s667_s13 = inlined_call_operand.vmem [shape: f32[16,128], index: 13, kind: output, shape index: {}]  }
   0x1   :  { %411 = vset.pattern.permute.xlu0 %v429_v0  ;;  %v138_v1 = vld [vmem:[%s654_s2] sm:$0xff]  ;;  %399 = vmatprep.subr.bf16.mxu0 %v430_v2  ;;  %v48_v6 = vld [vmem:[%s656_s0 + $0x8] sm:$0xff]  ;;  %vm59_vm5 = vcmask 64512   ;;  %vm213_vm7 = vcmask 261120   ;;  %vm297_vm12 = vcmask 523520   ;;  %vm338_vm13 = vcmask 785920  }
   0x2   :  { %v50_v3 = vld [vmem:[%s655_s4] sm:$0xff]  ;;  %143 = vperm.xlu0 %411, %v138_v1   ;;  %401 = vmatprep.mubr.msk.bf16.mxu0 %vm431_vm1, %v430_v2  ;;  %v139_v8 = vld [vmem:[%s654_s2 + $0x8] sm:$0xff]  ;;  %vm379_vm14 = vcmask 1048320  }
   0x3   :  { %v51_v4 = vpack.c.bf16 %v50_v3, %v50_v3  ;;  %v47_v5 = vld [vmem:[%s656_s0] sm:$0xff]  ;;  %412 = vset.pattern.permute.xlu1 %v429_v0  ;;  %v169_v10 = vld [vmem:[%s657_s3 + $0x8] sm:$0xff] }
   0x4   :  { %v168_v7 = vld [vmem:[%s657_s3] sm:$0xff]  ;;  %v49_v9 = vpack.c.bf16 %v48_v6, %v47_v5  ;;  %vm174_vm4 = vcmp.eq.s32.totalorder %v169_v10, 1  ;;  %vm171_vm6 = vcmp.eq.s32.totalorder %v169_v10, 0  ;;  %v109_v17 = vld [vmem:[%s658_s1 + $0x8] sm:$0xff] }
   0x5   :  { %vm173_vm2 = vcmp.eq.s32.totalorder %v168_v7, 1  ;;  %v65_v11 = vsel %vm63_vm0, %v51_v4, 0  ;;  %vm170_vm3 = vcmp.eq.s32.totalorder %v168_v7, 0  ;;  %v178_v13 = vsel %vm174_vm4, 1, %v429_v0  ;;  %v108_v16 = vld [vmem:[%s658_s1] sm:$0xff] }
   0x6   :  { %v177_v12 = vsel %vm173_vm2, 1, %v429_v0  ;;  %400 = vmatpush3.bf16.msra.mxu0 %v65_v11  ;;  %148 = vperm.xlu0 %411, %v139_v8   ;;  %v197_v14 = vsel %vm170_vm3, 1, %v429_v0  ;;  %v198_v15 = vsel %vm171_vm6, 1, %v429_v0  ;;  %v390_v18 = vld [vmem:[%s659_s8] ss:$0 sm:$0xff] }
   0x7   :  { %180 = vperm.xlu1 %412, %v177_v12   ;;  %v391_v20 = vld [vmem:[%s660_s9] ss:$0 sm:$0xff]  ;;  %v392_v33 = vld [vmem:[%s662_s10 + $0x1] ss:$0 sm:$0xff]  ;;  %v393_v34 = vld [vmem:[%s662_s10 + $0x2] ss:$0 sm:$0xff] }
   0x8   :  { %v386_v32 = vld [vmem:[%s661_s5] ss:$0 sm:$0xff] }
   0x9   :  { %402 = vmatmul.mubr.msk.bf16.vlgmr.msra.gmra.mxu0 %vm59_vm5, %v49_v9  ;;  %v388_v39 = vld [vmem:[%s663_s6] ss:$0 sm:$0xff] }
   0xa   :  { %200 = vperm.xlu0 %411, %v197_v14   ;;  %v394_v43 = vld [vmem:[%s662_s10] ss:$0 sm:$0xff] }
   0xb   :  { %183 = vperm.xlu1 %412, %v178_v13   ;;  %v389_v50 = vld [vmem:[%s664_s7] ss:$0 sm:$0xff] }
   0xe   :  { %113 = vperm.xlu0 %411, %v108_v16  }
   0xf   :  { %203 = vperm.xlu1 %412, %v198_v15  }
  0x13   :  { %118 = vperm.xlu1 %412, %v109_v17  }
  0x7d   :  { %v144_v19 = vpop.permute.xlu0 %143 }
  0x7e   :  { %v157_v21 = vmul.f32 %v390_v18, %v144_v19 }
  0x80   :  { %v166_v22 = vadd.f32 %v391_v20, %v157_v21 }
  0x81   :  { %v149_v23 = vpop.permute.xlu0 %148 }
  0x82   :  { %v158_v24 = vmul.f32 %v390_v18, %v149_v23  ;;  %v300_v25 = vsel %vm213_vm7, %v166_v22, 0.0  ;;  %v181_v28 = vpop.permute.xlu1 %180 }
  0x83   :  { %301 = vadd.xlane.f32.xlu0 %v300_v25  ;;  %vm185_vm10 = vcmp.eq.s32.totalorder %v181_v28, 1 }
  0x84   :  { %v167_v26 = vadd.f32 %v391_v20, %v158_v24  ;;  %v195_v47 = vsel %vm185_vm10, %v392_v33, %v393_v34 }
  0x85   :  { %v201_v31 = vpop.permute.xlu0 %200 }
  0x86   :  { %v303_v27 = vsel %vm213_vm7, %v167_v26, 0.0  ;;  %v184_v29 = vpop.permute.xlu1 %183  ;;  %vm205_vm11 = vcmp.eq.s32.totalorder %v201_v31, 1 }
  0x87   :  { %304 = vadd.xlane.f32.xlu0 %v303_v27  ;;  %vm186_vm8 = vcmp.eq.s32.totalorder %v184_v29, 1  ;;  %v211_v55 = vsel %vm205_vm11, %v394_v43, %v195_v47 }
  0x88   :  { %v196_v37 = vsel %vm186_vm8, %v392_v33, %v393_v34  ;;  %v341_v57 = vsel %vm213_vm7, %v211_v55, 0.0 }
  0x89   :  { %v114_v44 = vpop.permute.xlu0 %113 }
  0x8a   :  { %v204_v30 = vpop.permute.xlu1 %203  ;;  %v127_v51 = vmul.f32 %v388_v39, %v114_v44 }
  0x8b   :  { %vm206_vm9 = vcmp.eq.s32.totalorder %v204_v30, 1 }
  0x8c   :  { %v212_v46 = vsel %vm206_vm9, %v394_v43, %v196_v37  ;;  %v136_v58 = vadd.f32 %v389_v50, %v127_v51  ;;  %v599_v43 = vld [vmem:[%s665_s11] ss:$0 sm:$0xff]  ;;  %s433_s11 = smov 32  }
  0x8d   :  { %v344_v52 = vsel %vm213_vm7, %v212_v46, 0.0 }
  0x8e   :  { %v119_v35 = vpop.permute.xlu1 %118  ;;  %v214_v59 = vsel %vm213_vm7, %v136_v58, 0.0 }
  0x8f   :  { %v128_v41 = vmul.f32 %v388_v39, %v119_v35 }
  0x91   :  { %v137_v54 = vadd.f32 %v389_v50, %v128_v41 }
  0x93   :  { %v217_v56 = vsel %vm213_vm7, %v137_v54, 0.0 }
  0xc9   :  { %v101_v36 = vpop.f32.mrf.mxu0 }
  0xca   :  { %v102_v38 = vadd.f32 %v386_v32, %v101_v36 }
  0xcb   :  { %v403_v40 = vpop.f32.mrf.mxu0 }
  0xcc   :  { %v259_v42 = vsel %vm213_vm7, %v102_v38, 0.0 }
  0xcd   :  { %260 = vadd.xlane.f32.xlu0 %v259_v42  ;;  %v104_v45 = vpop.f32.mrf.mxu0 }
  0xce   :  { %v105_v48 = vadd.f32 %v386_v32, %v104_v45  ;;  %v604_v45 = vld [vmem:[%s666_s12] ss:$0 sm:$0xff]  ;;  %s434_s12 = smov 96  }
  0xcf   :  { %v404_v49 = vpop.f32.mrf.mxu0 }
  0xd0   :  { %v262_v53 = vsel %vm213_vm7, %v105_v48, 0.0 }
  0xd1   :  { %345 = vadd.xlane.f32.xlu0 %v344_v52  ;;  %263 = vadd.xlane.f32.xlu1 %v262_v53 }
  0xd5   :  { %218 = vadd.xlane.f32.xlu0 %v217_v56  ;;  %342 = vadd.xlane.f32.xlu1 %v341_v57 }
  0xd9   :  { %215 = vadd.xlane.f32.xlu1 %v214_v59 }
 0x10c   :  { %v302_v60 = vpop.xlane.xlu0 %301 }
 0x10d   :  { %v306_v61 = vmul.f32 0.03125, %v302_v60 }
 0x10f   :  { %v308_v62 = vsub.f32 %v166_v22, %v306_v61 }
 0x110   :  { %v305_v63 = vpop.xlane.xlu0 %304 }
 0x111   :  { %v307_v0 = vmul.f32 0.03125, %v305_v63  ;;  %v310_v1 = vmul.f32 %v308_v62, %v308_v62 }
 0x113   :  { %v309_v2 = vsub.f32 %v167_v26, %v307_v0  ;;  %v312_v3 = vsel %vm213_vm7, %v310_v1, 0.0 }
 0x114   :  { %313 = vadd.xlane.f32.xlu1 %v312_v3 }
 0x115   :  { %v311_v4 = vmul.f32 %v309_v2, %v309_v2 }
 0x117   :  { %v315_v5 = vsel %vm213_vm7, %v311_v4, 0.0 }
 0x118   :  { %316 = vadd.xlane.f32.xlu0 %v315_v5 }
 0x156   :  { %v261_v6 = vpop.xlane.xlu0 %260 }
 0x157   :  { %v265_v7 = vmul.f32 0.03125, %v261_v6 }
 0x159   :  { %v566_v8 = vsub.f32 %v102_v38, %v265_v7 }
 0x15a   :  { %v346_v9 = vpop.xlane.xlu0 %345  ;;  %v264_v10 = vpop.xlane.xlu1 %263 }
 0x15b   :  { %v348_v11 = vmul.f32 0.03125, %v346_v9  ;;  %v266_v12 = vmul.f32 0.03125, %v264_v10  ;;  %v269_v13 = vmul.f32 %v566_v8, %v566_v8 }
 0x15d   :  { %v570_v14 = vsub.f32 %v212_v46, %v348_v11  ;;  %v572_v15 = vsub.f32 %v105_v48, %v266_v12  ;;  %v271_v16 = vsel %vm213_vm7, %v269_v13, 0.0 }
 0x15e   :  { %v219_v17 = vpop.xlane.xlu0 %218  ;;  %272 = vadd.xlane.f32.xlu1 %v271_v16  ;;  %v343_v18 = vpop.xlane.xlu1 %342 }
 0x15f   :  { %v222_v19 = vmul.f32 0.03125, %v219_v17  ;;  %v347_v20 = vmul.f32 0.03125, %v343_v18  ;;  %v270_v21 = vmul.f32 %v572_v15, %v572_v15  ;;  %v352_v25 = vmul.f32 %v570_v14, %v570_v14 }
 0x161   :  { %v577_v22 = vsub.f32 %v137_v54, %v222_v19  ;;  %v579_v23 = vsub.f32 %v211_v55, %v347_v20  ;;  %v274_v24 = vsel %vm213_vm7, %v270_v21, 0.0  ;;  %v356_v30 = vsel %vm213_vm7, %v352_v25, 0.0 }
 0x162   :  { %275 = vadd.xlane.f32.xlu0 %v274_v24  ;;  %v216_v26 = vpop.xlane.xlu1 %215 }
 0x163   :  { %v221_v27 = vmul.f32 0.03125, %v216_v26  ;;  %v351_v28 = vmul.f32 %v579_v23, %v579_v23  ;;  %v226_v32 = vmul.f32 %v577_v22, %v577_v22 }
 0x165   :  { %v586_v29 = vsub.f32 %v136_v58, %v221_v27  ;;  %v353_v31 = vsel %vm213_vm7, %v351_v28, 0.0  ;;  %v230_v34 = vsel %vm213_vm7, %v226_v32, 0.0 }
 0x166   :  { %357 = vadd.xlane.f32.xlu0 %v356_v30  ;;  %354 = vadd.xlane.f32.xlu1 %v353_v31 }
 0x167   :  { %v225_v33 = vmul.f32 %v586_v29, %v586_v29 }
 0x169   :  { %v227_v35 = vsel %vm213_vm7, %v225_v33, 0.0 }
 0x16a   :  { %231 = vadd.xlane.f32.xlu0 %v230_v34  ;;  %228 = vadd.xlane.f32.xlu1 %v227_v35 }
 0x19d   :  { %v314_v36 = vpop.xlane.xlu1 %313 }
 0x19e   :  { %v318_v37 = vmul.f32 0.03125, %v314_v36 }
 0x1a0   :  { %v320_v38 = vadd.f32 1e-05, %v318_v37 }
 0x1a1   :  { %v317_v39 = vpop.xlane.xlu0 %316 }
 0x1a2   :  { %413 = vrsqrt.f32 %v320_v38  ;;  %v319_v40 = vmul.f32 0.03125, %v317_v39 }
 0x1a4   :  { %v321_v41 = vadd.f32 1e-05, %v319_v40 }
 0x1a6   :  { %415 = vrsqrt.f32 %v321_v41 }
 0x1af   :  { %v414_v42 = vpop.eup %413 }
 0x1b0   :  { %v324_v44 = vmul.f32 %v414_v42, %v308_v62 }
 0x1b2   :  { %v326_v46 = vmul.f32 %v599_v43, %v324_v44 }
 0x1b3   :  { %v416_v47 = vpop.eup %415 }
 0x1b4   :  { %v328_v48 = vadd.f32 %v604_v45, %v326_v46  ;;  %v325_v49 = vmul.f32 %v416_v47, %v309_v2 }
 0x1b6   :  { %332 = vrot.lane.b32.xlu1 %v328_v48, %s432_s18  ;;  %v327_v50 = vmul.f32 %v599_v43, %v325_v49 }
 0x1b8   :  { %v329_v51 = vadd.f32 %v604_v45, %v327_v50 }
 0x1ba   :  { %334 = vrot.lane.b32.xlu1 %v329_v51, %s432_s18 }
 0x1e7   :  { %v273_v52 = vpop.xlane.xlu1 %272 }
 0x1e8   :  { %v277_v53 = vmul.f32 0.03125, %v273_v52 }
 0x1ea   :  { %v279_v54 = vadd.f32 1e-05, %v277_v53 }
 0x1eb   :  { %v276_v55 = vpop.xlane.xlu0 %275 }
 0x1ec   :  { %417 = vrsqrt.f32 %v279_v54  ;;  %v278_v56 = vmul.f32 0.03125, %v276_v55 }
 0x1ee   :  { %v280_v57 = vadd.f32 1e-05, %v278_v56 }
 0x1ef   :  { %v358_v58 = vpop.xlane.xlu0 %357  ;;  %v355_v59 = vpop.xlane.xlu1 %354 }
 0x1f0   :  { %419 = vrsqrt.f32 %v280_v57  ;;  %v360_v60 = vmul.f32 0.03125, %v358_v58  ;;  %v359_v61 = vmul.f32 0.03125, %v355_v59 }
 0x1f2   :  { %v362_v62 = vadd.f32 1e-05, %v360_v60  ;;  %v361_v63 = vadd.f32 1e-05, %v359_v61 }
 0x1f3   :  { %v232_v0 = vpop.xlane.xlu0 %231  ;;  %v229_v1 = vpop.xlane.xlu1 %228 }
 0x1f4   :  { %421 = vrsqrt.f32 %v362_v62  ;;  %v234_v2 = vmul.f32 0.03125, %v232_v0  ;;  %v233_v3 = vmul.f32 0.03125, %v229_v1 }
 0x1f5   :  { %423 = vrsqrt.f32 %v361_v63 }
 0x1f6   :  { %v236_v4 = vadd.f32 1e-05, %v234_v2  ;;  %v235_v5 = vadd.f32 1e-05, %v233_v3 }
 0x1f8   :  { %425 = vrsqrt.f32 %v236_v4 }
 0x1f9   :  { %v418_v6 = vpop.eup %417  ;;  %427 = vrsqrt.f32 %v235_v5 }
 0x1fa   :  { %v283_v7 = vmul.f32 %v418_v6, %v566_v8 }
 0x1fc   :  { %v285_v9 = vmul.f32 %v599_v43, %v283_v7 }
 0x1fd   :  { %v420_v10 = vpop.eup %419 }
 0x1fe   :  { %v287_v11 = vadd.f32 %v604_v45, %v285_v9  ;;  %v284_v12 = vmul.f32 %v420_v10, %v572_v15 }
 0x200   :  { %291 = vrot.lane.b32.xlu1 %v287_v11, %s433_s11  ;;  %v286_v13 = vmul.f32 %v599_v43, %v284_v12 }
 0x201   :  { %v422_v16 = vpop.eup %421 }
 0x202   :  { %v424_v17 = vpop.eup %423  ;;  %v288_v18 = vadd.f32 %v604_v45, %v286_v13  ;;  %v366_v19 = vmul.f32 %v422_v16, %v570_v14 }
 0x203   :  { %v365_v20 = vmul.f32 %v424_v17, %v579_v23 }
 0x204   :  { %293 = vrot.lane.b32.xlu0 %v288_v18, %s433_s11  ;;  %v368_v8 = vmul.f32 %v599_v43, %v366_v19 }
 0x205   :  { %v426_v21 = vpop.eup %425  ;;  %v367_v24 = vmul.f32 %v599_v43, %v365_v20 }
 0x206   :  { %v428_v25 = vpop.eup %427  ;;  %v240_v15 = vmul.f32 %v426_v21, %v577_v22  ;;  %v370_v26 = vadd.f32 %v604_v45, %v368_v8 }
 0x207   :  { %v239_v27 = vmul.f32 %v428_v25, %v586_v29  ;;  %v369_v28 = vadd.f32 %v604_v45, %v367_v24 }
 0x208   :  { %375 = vrot.lane.b32.xlu1 %v370_v26, %s434_s12  ;;  %v248_v14 = vmul.f32 %v599_v43, %v240_v15 }
 0x209   :  { %373 = vrot.lane.b32.xlu0 %v369_v28, %s434_s12  ;;  %v247_v23 = vmul.f32 %v599_v43, %v239_v27 }
 0x20a   :  { %v256_v30 = vadd.f32 %v604_v45, %v248_v14 }
 0x20b   :  { %v255_v31 = vadd.f32 %v604_v45, %v247_v23 }
 0x20c   :  { %258 = vst.msk [vmem:[%s667_s13 + $0x8] sm:$0xff] %vm213_vm7, %v256_v30 }
 0x20d   :  { %257 = vst.msk [vmem:[%s667_s13] sm:$0xff] %vm213_vm7, %v255_v31 }
 0x228   :  { %v333_v22 = vpop.permute.xlu1 %332 }
 0x22c   :  { %v335_v29 = vpop.permute.xlu1 %334 }
 0x272   :  { %v292_v32 = vpop.permute.xlu1 %291 }
 0x273   :  { %298 = vst.msk [vmem:[%s667_s13] sm:$0xff] %vm297_vm12, %v292_v32 }
 0x274   :  { %339 = vst.msk [vmem:[%s667_s13] sm:$0xff] %vm338_vm13, %v333_v22 }
 0x276   :  { %v294_v33 = vpop.permute.xlu0 %293 }
 0x277   :  { %299 = vst.msk [vmem:[%s667_s13 + $0x8] sm:$0xff] %vm297_vm12, %v294_v33 }
 0x278   :  { %340 = vst.msk [vmem:[%s667_s13 + $0x8] sm:$0xff] %vm338_vm13, %v335_v29 }
 0x27a   :  { %v376_v34 = vpop.permute.xlu1 %375 }
 0x27b   :  { %v374_v35 = vpop.permute.xlu0 %373  ;;  %381 = vst.msk [vmem:[%s667_s13 + $0x8] sm:$0xff] %vm379_vm14, %v376_v34 }
 0x27c   :  { %380 = vst.msk [vmem:[%s667_s13] sm:$0xff] %vm379_vm14, %v374_v35 }

// kernel: decision_mamba_forward.8
= control target key start
LH: loop header
LB: loop body
LE: loop exit
PB: predicated region body
PF: predicated region fallthrough
CT: control target
= control target key end

     0   :  { %s3582_s17 = smov 0   ;;  %s4975_s0 = inlined_call_operand.vmem [shape: bf16[2,32,64], index: 0, kind: input, shape index: {}]   ;;  %s4976_s1 = inlined_call_operand.vmem [shape: bf16[2,32,64], index: 1, kind: input, shape index: {}]   ;;  %s4977_s2 = inlined_call_operand.vmem [shape: f32[2,32,32], index: 2, kind: input, shape index: {}]   ;;  %s4978_s3 = inlined_call_operand.vmem [shape: f32[4,64], index: 3, kind: input, shape index: {}]   ;;  %s4979_s4 = inlined_call_operand.vmem [shape: f32[1,64], index: 4, kind: input, shape index: {}]   ;;  %s4980_s5 = inlined_call_operand.vmem [shape: bf16[64,34], index: 5, kind: input, shape index: {}]   ;;  %s4981_s6 = inlined_call_operand.vmem [shape: f32[2,64], index: 6, kind: input, shape index: {}]   ;;  %s4982_s7 = inlined_call_operand.vmem [shape: f32[1,64], index: 7, kind: input, shape index: {}]   ;;  %s4983_s8 = inlined_call_operand.vmem [shape: f32[16,64], index: 8, kind: input, shape index: {}]   ;;  %s4984_s9 = inlined_call_operand.vmem [shape: f32[1,64], index: 9, kind: input, shape index: {}]   ;;  %s4985_s10 = inlined_call_operand.vmem [shape: bf16[64,32], index: 10, kind: input, shape index: {}]   ;;  %s4986_s11 = inlined_call_operand.vmem [shape: f32[2,32,32], index: 11, kind: output, shape index: {}]  }
   0x1 LB: > { %s3002_s18 = sadd.s32 4294967295, %s3485_s17   ;;  %p3006_p0 = scmp.ge.s32.totalorder %s3485_s17, 1  ;;  %s3485_s17 = sphi %s3582_s17, %s21_s17  }
   0x2   : > { %p357_p1 = scmp.lt.s32.totalorder %s3485_s17, 3 }
   0x4   : > { %p358_p2 = pnand %p3006_p0, %p357_p1 }
   0x6   : > { %361 = sbr.rel (%p358_p2) target bundleno = 1292 (0x50c), region = 64 }
   0xb   : > { %v3287_v0 = vld [vmem:[%s4980_s5 + $0x18] sm:$0xff]   ;;  %p407_p3 = scmp.lt.s32.totalorder %s3002_s18, 1  ;;  %v3288_v1 = vld [vmem:[%s4980_s5 + $0x10] sm:$0xff]   ;;  %v3289_v2 = vld [vmem:[%s4980_s5 + $0x8] sm:$0xff]   ;;  %vm440_vm0 = vcmask 1042432   ;;  %vm482_vm1 = vcmask 1046528  }
   0xc   : > { %3088 = vmatprep.subr.bf16.mxu0 %v3287_v0  ;;  %v3290_v3 = vld [vmem:[%s4980_s5] sm:$0xff]   ;;  %vm515_vm2 = vcmask 1045504   ;;  %vm548_vm3 = vcmask 1044480   ;;  %vm605_vm4 = vcmask 523264   ;;  %vm753_vm5 = vcmask 1041408   ;;  %s3487_s27 = smov 110  }
   0xd   : > { %s5293_s18 = smov (!%p407_p3, %s3002_s18), 1  ;;  %3089 = vmatpush3.bf16.msra.mxu0 %v3287_v0  ;;  %v3015_v10 = vld [vmem:[%s4978_s3] ss:$0 sm:$0xff]  ;;  %v3016_v11 = vld [vmem:[%s4978_s3 + $0x1] ss:$0 sm:$0xff]  ;;  %vm744_vm6 = vcmask 15360  }
   0xe   : > { %3090 = vmatprep.subr.bf16.mxu0 %v3288_v1  ;;  %s3049_s25 = sshll.u32 %s5293_s18, 4  ;;  %v3017_v16 = vld [vmem:[%s4978_s3 + $0x2] ss:$0 sm:$0xff]  ;;  %v3018_v20 = vld [vmem:[%s4978_s3 + $0x3] ss:$0 sm:$0xff]  ;;  %vm715_vm7 = vcmask 130048  }
   0xf   : > { %s411_s28 = scalar_lea.vmem %s4975_s0, %s3049_s25  ;;  %v3019_v56 = vld [vmem:[%s4979_s4] ss:$0 sm:$0xff]  ;;  %vm2733_vm12 = vcmask 1040384   ;;  %vm2737_vm13 = vcmask 1043456   ;;  %s4859_s29 = scalar_lea.vmem %s4976_s1, %s3049_s25  ;;  %vm2918_vm14 = vcmask 261120  }
  0x10   : > { %v3054_v4 = vld [vmem:[%s411_s28] sm:$0xff]   ;;  %v3069_v5 = vld [vmem:[%s411_s28 + $0x8] sm:$0xff]   ;;  %s3488_s28 = smov 126   ;;  %s3051_s12 = sshll.u32 %s5293_s18, 5 }
  0x11   : > { %3091 = vmatpush3.bf16.msra.mxu0 %v3288_v1  ;;  %v3055_v6 = vunpack.c.l.bf16 %v3054_v4  ;;  %v3056_v7 = vunpack.c.h.bf16 %v3054_v4  ;;  %v3059_v8 = vunpack.c.l.bf16 %v3069_v5  ;;  %v3060_v9 = vunpack.c.h.bf16 %v3069_v5  ;;  %s421_s15 = scalar_lea.vmem %s4977_s2, %s3051_s12  ;;  %s426_s20 = scalar_lea.vmem %s4986_s11, %s3051_s12 }
  0x12   : > { %3092 = vmatprep.subr.bf16.mxu0 %v3289_v2 }
  0x13   : > { %v441_v12 = vrot.slane %v3055_v6, 5  ;;  %v442_v13 = vrot.slane %v3056_v7, 5  ;;  %v444_v14 = vrot.slane %v3059_v8, 5  ;;  %v446_v15 = vrot.slane %v3060_v9, 5 }
  0x15   : > { %3093 = vmatpush3.bf16.msra.mxu0 %v3289_v2  ;;  %v443_v17 = vsel %vm440_vm0, %v441_v12, %v442_v13  ;;  %v445_v18 = vsel %vm440_vm0, %v442_v13, %v444_v14  ;;  %v453_v19 = vsel %vm440_vm0, 0.0, %v441_v12  ;;  %v447_v21 = vsel %vm440_vm0, %v444_v14, %v446_v15 }
  0x16   : > { %3094 = vmatprep.subr.bf16.mxu0 %v3290_v3  ;;  %v459_v22 = vmul.f32 %v3015_v10, %v453_v19  ;;  %v460_v23 = vmul.f32 %v3015_v10, %v443_v17  ;;  %v472_v24 = vmul.f32 %v3016_v11, %v453_v19  ;;  %v473_v25 = vmul.f32 %v3016_v11, %v443_v17 }
  0x17   : > { %v474_v26 = vmul.f32 %v3016_v11, %v445_v18  ;;  %v505_v27 = vmul.f32 %v3017_v16, %v453_v19  ;;  %v506_v28 = vmul.f32 %v3017_v16, %v443_v17  ;;  %v507_v29 = vmul.f32 %v3017_v16, %v445_v18 }
  0x18   : > { %v483_v30 = vrot.slane %v472_v24, 1  ;;  %v484_v31 = vrot.slane %v473_v25, 1  ;;  %v538_v32 = vmul.f32 %v3018_v20, %v453_v19  ;;  %v539_v33 = vmul.f32 %v3018_v20, %v443_v17 }
  0x19   : > { %3095 = vmatpush3.bf16.msra.mxu0 %v3290_v3  ;;  %v486_v34 = vrot.slane %v474_v26, 1  ;;  %v516_v35 = vrot.slane %v505_v27, 2  ;;  %v517_v36 = vrot.slane %v506_v28, 2  ;;  %v519_v37 = vrot.slane %v507_v29, 2 }
  0x1a   : > { %v485_v38 = vsel %vm482_vm1, %v483_v30, %v484_v31  ;;  %v540_v39 = vmul.f32 %v3018_v20, %v445_v18  ;;  %v549_v40 = vrot.slane %v538_v32, 3  ;;  %v550_v41 = vrot.slane %v539_v33, 3 }
  0x1b   : > { %v487_v42 = vsel %vm482_vm1, %v484_v31, %v486_v34  ;;  %v496_v43 = vadd.f32 %v485_v38, %v459_v22  ;;  %v518_v44 = vsel %vm515_vm2, %v516_v35, %v517_v36  ;;  %v520_v45 = vsel %vm515_vm2, %v517_v36, %v519_v37 }
  0x1c   : > { %v497_v46 = vadd.f32 %v487_v42, %v460_v23  ;;  %v551_v47 = vsel %vm548_vm3, %v549_v40, %v550_v41  ;;  %v552_v48 = vrot.slane %v540_v39, 3  ;;  %v461_v49 = vmul.f32 %v3015_v10, %v445_v18 }
  0x1d   : > { %v529_v50 = vadd.f32 %v518_v44, %v496_v43  ;;  %v462_v51 = vmul.f32 %v3015_v10, %v447_v21  ;;  %v475_v52 = vmul.f32 %v3016_v11, %v447_v21  ;;  %v476_v53 = vmul.f32 %v3016_v11, %v446_v15  ;;  %v736_v43 = vld [vmem:[%s4981_s6] sm:$0x3] }
  0x1e   : > { %v530_v54 = vadd.f32 %v520_v45, %v497_v46  ;;  %v553_v55 = vsel %vm548_vm3, %v550_v41, %v552_v48  ;;  %v508_v57 = vmul.f32 %v3017_v16, %v447_v21  ;;  %v509_v58 = vmul.f32 %v3017_v16, %v446_v15  ;;  %3100 = vmatprep.subr.msk.mxu1 %vm753_vm5, %v736_v43 }
  0x1f   : > { %v562_v59 = vadd.f32 %v551_v47, %v529_v50  ;;  %v488_v60 = vrot.slane %v475_v52, 1  ;;  %v490_v61 = vrot.slane %v476_v53, 1  ;;  %v541_v62 = vmul.f32 %v3018_v20, %v447_v21  ;;  %3101 = vmatpush3.msk.msra.mxu1 %vm753_vm5, %v736_v43 }
  0x20   : > { %v563_v63 = vadd.f32 %v553_v55, %v530_v54  ;;  %v521_v0 = vrot.slane %v508_v57, 2  ;;  %v523_v1 = vrot.slane %v509_v58, 2  ;;  %v542_v2 = vmul.f32 %v3018_v20, %v446_v15 }
  0x21   : > { %v573_v3 = vadd.f32 %v3019_v56, %v562_v59  ;;  %v489_v4 = vsel %vm482_vm1, %v486_v34, %v488_v60  ;;  %v491_v5 = vsel %vm482_vm1, %v488_v60, %v490_v61  ;;  %v554_v6 = vrot.slane %v541_v62, 3 }
  0x22   : > { %v574_v7 = vadd.f32 %v3019_v56, %v563_v63  ;;  %v498_v8 = vadd.f32 %v489_v4, %v461_v49  ;;  %v499_v9 = vadd.f32 %v491_v5, %v462_v51  ;;  %v522_v10 = vsel %vm515_vm2, %v519_v37, %v521_v0 }
  0x23   : > { %v3020_v11 = vmul.f32 -1.442695, %v573_v3  ;;  %v524_v12 = vsel %vm515_vm2, %v521_v0, %v523_v1  ;;  %v555_v13 = vsel %vm548_vm3, %v552_v48, %v554_v6  ;;  %v556_v14 = vrot.slane %v542_v2, 3  ;;  %v3030_v2 = vld [vmem:[%s4982_s7] ss:$0 sm:$0xff] }
  0x24   : > { %v3021_v16 = vmul.f32 -1.442695, %v574_v7  ;;  %v531_v17 = vadd.f32 %v522_v10, %v498_v8  ;;  %v532_v15 = vadd.f32 %v524_v12, %v499_v9  ;;  %v5007_v0 = vmov 1  }
  0x25   : > { %3299 = vpow2.f32 %v3020_v11  ;;  %v557_v18 = vsel %vm548_vm3, %v554_v6, %v556_v14  ;;  %v5008_v1 = vmov 0  }
  0x26   : > { %3301 = vpow2.f32 %v3021_v16  ;;  %v564_v19 = vadd.f32 %v555_v13, %v531_v17  ;;  %v565_v20 = vadd.f32 %v557_v18, %v532_v15 }
  0x28   : > { %v575_v21 = vadd.f32 %v3019_v56, %v564_v19  ;;  %v576_v22 = vadd.f32 %v3019_v56, %v565_v20 }
  0x2a   : > { %v3022_v23 = vmul.f32 -1.442695, %v575_v21  ;;  %v3023_v24 = vmul.f32 -1.442695, %v576_v22 }
  0x2c   : > { %3303 = vpow2.f32 %v3022_v23 }
  0x2d   : > { %3305 = vpow2.f32 %v3023_v24 }
  0x32   : > { %v3300_v25 = vpop.eup %3299 }
  0x33   : > { %v3302_v26 = vpop.eup %3301  ;;  %v589_v27 = vadd.f32 1.0, %v3300_v25 }
  0x34   : > { %v590_v28 = vadd.f32 1.0, %v3302_v26 }
  0x35   : > { %3307 = vrcp.f32 %v589_v27 }
  0x36   : > { %3309 = vrcp.f32 %v590_v28 }
  0x39   : > { %v3304_v29 = vpop.eup %3303 }
  0x3a   : > { %v3306_v30 = vpop.eup %3305  ;;  %v591_v31 = vadd.f32 1.0, %v3304_v29 }
  0x3b   : > { %v592_v32 = vadd.f32 1.0, %v3306_v30 }
  0x3c   : > { %3311 = vrcp.f32 %v591_v31 }
  0x3d   : > { %3313 = vrcp.f32 %v592_v32 }
  0x42   : > { %v3308_v33 = vpop.eup %3307 }
  0x43   : > { %v3310_v34 = vpop.eup %3309  ;;  %v601_v35 = vmul.f32 %v3308_v33, %v573_v3 }
  0x44   : > { %v602_v36 = vmul.f32 %v3310_v34, %v574_v7 }
  0x45   : > { %606 = vst.msk [vmem:[#allocation2] sm:$0xff] %vm605_vm4, %v601_v35 }
  0x46   : > { %607 = vst.msk [vmem:[#allocation2 + $0x8] sm:$0xff] %vm605_vm4, %v602_v36  ;;  %v610_v37 = vpack.c.bf16 %v602_v36, %v601_v35 }
  0x48   : > { %3096 = vmatprep.mubr.msk.bf16.mxu0 %vm605_vm4, %v610_v37 }
  0x49   : > { %v3312_v38 = vpop.eup %3311 }
  0x4a   : > { %v3314_v39 = vpop.eup %3313  ;;  %v603_v40 = vmul.f32 %v3312_v38, %v575_v21 }
  0x4b   : > { %v604_v41 = vmul.f32 %v3314_v39, %v576_v22 }
  0x4c   : > { %608 = vst.msk [vmem:[#allocation2 + $0x10] sm:$0xff] %vm605_vm4, %v603_v40 }
  0x4d   : > { %609 = vst.msk [vmem:[#allocation2 + $0x18] sm:$0xff] %vm605_vm4, %v604_v41  ;;  %v611_v42 = vpack.c.bf16 %v604_v41, %v603_v40 }
  0x4f   : > { %3097 = vmatmul.mubr.msk.bf16.vlgmr.msra.gmra.mxu0 %vm605_vm4, %v611_v42 }
 0x10f   : > { %v3098_v44 = vpop.f32.mrf.mxu0 }
 0x110   : > { %724 = vrot.lane.b32.xlu0 %v3098_v44, %s3487_s27  ;;  %707 = vrot.lane.b32.xlu1 %v3098_v44, %s3488_s28 }
 0x111   : > { %v684_v45 = vpop.f32.mrf.mxu0 }
 0x112   : > { %3102 = vmatprep.mubr.msk.f32.mxu1 %vm744_vm6, %v684_v45 }
 0x113   : > { %v3099_v46 = vpop.f32.mrf.mxu0 }
 0x114   : > { %703 = vrot.lane.b32.xlu0 %v684_v45, %s3488_s28  ;;  %709 = vrot.lane.b32.xlu1 %v3099_v46, %s3488_s28 }
 0x115   : > { %v687_v47 = vpop.f32.mrf.mxu0 }
 0x116   : > { %3103 = vmatmul.mubr.msk.f32.vlgmr.msra.gmra.mxu1 %vm744_vm6, %v687_v47 }
 0x117   : > { %3105 = vmatprep.mubr.msk.f32.mxu1 %vm744_vm6, %v3098_v44 }
 0x118   : > { %720 = vrot.lane.b32.xlu0 %v684_v45, %s3487_s27  ;;  %726 = vrot.lane.b32.xlu1 %v3099_v46, %s3487_s27 }
 0x11a   : > { %3106 = vmatmul.mubr.msk.f32.gmra.mxu1 %vm744_vm6, %v3099_v46 }
 0x11c   : > { %722 = vrot.lane.b32.xlu1 %v687_v47, %s3487_s27  ;;  %705 = vrot.lane.b32.xlu0 %v687_v47, %s3488_s28 }
 0x182   : > { %v725_v48 = vpop.permute.xlu0 %724  ;;  %v708_v49 = vpop.permute.xlu1 %707 }
 0x183   : > { %734 = vst.msk [vmem:[#allocation5 + $0x10] sm:$0xff] %vm715_vm7, %v725_v48  ;;  %718 = vst.msk [vmem:[#allocation4 + $0x10] sm:$0xff] %vm715_vm7, %v708_v49 }
 0x186   : > { %v704_v50 = vpop.permute.xlu0 %703  ;;  %v710_v51 = vpop.permute.xlu1 %709 }
 0x187   : > { %716 = vst.msk [vmem:[#allocation4] sm:$0xff] %vm715_vm7, %v704_v50  ;;  %719 = vst.msk [vmem:[#allocation4 + $0x18] sm:$0xff] %vm715_vm7, %v710_v51 }
 0x18a   : > { %v721_v52 = vpop.permute.xlu0 %720  ;;  %v727_v53 = vpop.permute.xlu1 %726  ;;  %v923_v60 = vld [vmem:[#allocation5 + $0x10] sm:$0xff] }
 0x18b   : > { %732 = vst.msk [vmem:[#allocation5] sm:$0xff] %vm715_vm7, %v721_v52  ;;  %735 = vst.msk [vmem:[#allocation5 + $0x18] sm:$0xff] %vm715_vm7, %v727_v53  ;;  %v919_v61 = vld [vmem:[#allocation4 + $0x10] sm:$0xff] }
 0x18e   : > { %v723_v54 = vpop.permute.xlu1 %722  ;;  %v706_v55 = vpop.permute.xlu0 %705  ;;  %v917_v56 = vld [vmem:[#allocation4] sm:$0xff]  ;;  %v920_v63 = vld [vmem:[#allocation4 + $0x18] sm:$0xff] }
 0x18f   : > { %733 = vst.msk [vmem:[#allocation5 + $0x8] sm:$0xff] %vm715_vm7, %v723_v54  ;;  %717 = vst.msk [vmem:[#allocation4 + $0x8] sm:$0xff] %vm715_vm7, %v706_v55  ;;  %1481 = vxpose.xlu0.b32.start [1/4] (short) (narrow) %v917_v56, 16 }
 0x192   : > { %v921_v57 = vld [vmem:[#allocation5] sm:$0xff]  ;;  %v924_v62 = vld [vmem:[#allocation5 + $0x18] sm:$0xff] }
 0x193   : > { %1513 = vxpose.xlu1.b32.start [1/4] (short) (narrow) %v921_v57, 16 }
 0x196   : > { %v922_v58 = vld [vmem:[#allocation5 + $0x8] sm:$0xff] }
 0x197   : > { %v918_v59 = vld [vmem:[#allocation4 + $0x8] sm:$0xff]  ;;  %1514 = vxpose.xlu1.b32.cont [2/4] (short) (narrow) %v922_v58, 16 }
 0x198   : > { %1482 = vxpose.xlu0.b32.cont [2/4] (short) (narrow) %v918_v59, 16 }
 0x19b   : > { %1515 = vxpose.xlu1.b32.cont [3/4] (short) (narrow) %v923_v60, 16 }
 0x19c   : > { %1483 = vxpose.xlu0.b32.cont [3/4] (short) (narrow) %v919_v61, 16 }
 0x19f   : > { %1516 = vxpose.xlu1.b32.end [4/4] (short) (narrow) %v924_v62, 16 }
 0x1a0   : > { %1484 = vxpose.xlu0.b32.end [4/4] (short) (narrow) %v920_v63, 16 }
 0x1bd   : > { %3166 = vset.pattern.permute.xlu1 %v5007_v0 }
 0x1c9   : > { %3164 = vset.pattern.permute.xlu0 %v5008_v1 }
 0x1d6   : > { %v3104_v3 = vpop.f32.mrf.mxu1 }
 0x1d7   : > { %v829_v4 = vadd.f32 %v3104_v3, %v3030_v2 }
 0x1d8   : > { %v823_v5 = vpop.f32.mrf.mxu1 }
 0x1d9   : > { %v847_v6 = vand.u32 2147483647, %v829_v4  ;;  %v824_v7 = vadd.f32 %v3030_v2, %v823_v5  ;;  %v843_v44 = vmax.f32 %v829_v4, 0.0 }
 0x1da   : > { %v3107_v8 = vpop.f32.mrf.mxu1 }
 0x1db   : > { %v851_v9 = vsub.f32 0.0, %v847_v6  ;;  %v846_v10 = vand.u32 2147483647, %v824_v7  ;;  %v3665_v11 = vadd.f32 %v3107_v8, %v3030_v2  ;;  %v842_v51 = vmax.f32 %v824_v7, 0.0 }
 0x1dc   : > { %v833_v12 = vpop.f32.mrf.mxu1  ;;  %v5006_v7 = vmov 2   ;;  %v5004_v8 = vmov 3  }
 0x1dd   : > { %v856_v13 = vmul.f32 1.442695, %v851_v9  ;;  %v850_v14 = vsub.f32 0.0, %v846_v10  ;;  %v849_v16 = vand.u32 2147483647, %v3665_v11  ;;  %v3668_v17 = vadd.f32 %v3030_v2, %v833_v12 }
 0x1de   : > { %v845_v58 = vmax.f32 %v3665_v11, 0.0  ;;  %v5003_v9 = vmov 4   ;;  %v5002_v10 = vmov 5   ;;  %v5014_v11 = vmov 7  }
 0x1df   : > { %3315 = vpow2.f32 %v856_v13  ;;  %v854_v15 = vmul.f32 1.442695, %v850_v14  ;;  %v853_v18 = vsub.f32 0.0, %v849_v16  ;;  %v848_v19 = vand.u32 2147483647, %v3668_v17 }
 0x1e0   : > { %v844_v2 = vmax.f32 %v3668_v17, 0.0  ;;  %v4997_v12 = vmov 10   ;;  %v5001_v13 = vmov 6   ;;  %v5031_v14 = vmov 13  }
 0x1e1   : > { %3317 = vpow2.f32 %v854_v15  ;;  %v860_v20 = vmul.f32 1.442695, %v853_v18  ;;  %v852_v21 = vsub.f32 0.0, %v848_v19  ;;  %v4993_v16 = vmov 16  }
 0x1e2   : > { %v5005_v17 = vmov 8   ;;  %v5033_v15 = vmov 19   ;;  %v5018_v18 = vmov 9   ;;  %v5011_v19 = vmov 22  }
 0x1e3   : > { %3319 = vpow2.f32 %v860_v20  ;;  %v858_v22 = vmul.f32 1.442695, %v852_v21  ;;  %v5013_v20 = vmov 11   ;;  %v4989_v21 = vmov 25  }
 0x1e5   : > { %3321 = vpow2.f32 %v858_v22  ;;  %v5024_v22 = vmov 12  }
 0x1ec   : > { %v3316_v23 = vpop.eup %3315 }
 0x1ed   : > { %v871_v24 = vadd.f32 1.0, %v3316_v23  ;;  %v874_v31 = vmul.f32 -0.5, %v3316_v23  ;;  %v877_v35 = vand.u32 2147483647, %v3316_v23 }
 0x1ee   : > { %v3318_v25 = vpop.eup %3317 }
 0x1ef   : > { %3323 = vlog2.f32 %v871_v24  ;;  %v862_v26 = vadd.f32 1.0, %v3318_v25  ;;  %v865_v32 = vmul.f32 -0.5, %v3318_v25  ;;  %v875_v33 = vadd.f32 1.0, %v874_v31 }
 0x1f0   : > { %v3320_v27 = vpop.eup %3319  ;;  %v868_v38 = vand.u32 2147483647, %v3318_v25  ;;  %vm878_vm8 = vcmp.lt.f32.partialorder %v877_v35, 0.0004427343  ;;  %v5022_v24 = vmov 14   ;;  %v4987_v35 = vmov 27  }
 0x1f1   : > { %3325 = vlog2.f32 %v862_v26  ;;  %v889_v28 = vadd.f32 1.0, %v3320_v27  ;;  %v892_v34 = vmul.f32 -0.5, %v3320_v27  ;;  %v866_v36 = vadd.f32 1.0, %v865_v32 }
 0x1f2   : > { %v3322_v29 = vpop.eup %3321  ;;  %v876_v41 = vmul.f32 %v3316_v23, %v875_v33  ;;  %v895_v45 = vand.u32 2147483647, %v3320_v27  ;;  %vm869_vm9 = vcmp.lt.f32.partialorder %v868_v38, 0.0004427343  ;;  %v5027_v23 = vmov 28  }
 0x1f3   : > { %3327 = vlog2.f32 %v889_v28  ;;  %v880_v30 = vadd.f32 1.0, %v3322_v29  ;;  %v883_v39 = vmul.f32 -0.5, %v3322_v29  ;;  %v893_v42 = vadd.f32 1.0, %v892_v34 }
 0x1f4   : > { %v867_v48 = vmul.f32 %v3318_v25, %v866_v36  ;;  %v886_v56 = vand.u32 2147483647, %v3322_v29  ;;  %vm896_vm10 = vcmp.lt.f32.partialorder %v895_v45, 0.0004427343  ;;  %v4995_v25 = vmov 15   ;;  %v3775_v45 = vld [vmem:[%s4983_s8] sm:$0xff] }
 0x1f5   : > { %3329 = vlog2.f32 %v880_v30  ;;  %v884_v52 = vadd.f32 1.0, %v883_v39  ;;  %v894_v55 = vmul.f32 %v3320_v27, %v893_v42  ;;  %v5026_v26 = vmov 17  }
 0x1f6   : > { %vm887_vm11 = vcmp.lt.f32.partialorder %v886_v56, 0.0004427343  ;;  %v5016_v27 = vmov 18   ;;  %v5029_v28 = vmov 26   ;;  %v3513_v30 = vmov 1966171168  }
 0x1f7   : > { %v885_v63 = vmul.f32 %v3322_v29, %v884_v52  ;;  %v937_v29 = vlaneseq  ;;  %v935_v31 = vunpack.c.l.s4 %v3513_v30  ;;  %v5038_v32 = vmov 20  }
 0x1f9   : > { %v3745_v33 = vshrl.u32 %v937_v29, 7  ;;  %v936_v34 = vunpack.c.0.s8 %v935_v31 }
 0x1fb   : > { %v3751_v38 = vsub.s32 %v936_v34, %v3745_v33  ;;  %v3763_v42 = vsub.s32 0, %v3745_v33 }
 0x1fc   : > { %v3324_v37 = vpop.eup %3323 }
 0x1fd   : > { %v873_v40 = vmul.f32 0.6931472, %v3324_v37  ;;  %v4991_v37 = vmov 21  }
 0x1fe   : > { %v3326_v43 = vpop.eup %3325 }
 0x1ff   : > { %v879_v46 = vsel %vm878_vm8, %v876_v41, %v873_v40  ;;  %v864_v47 = vmul.f32 0.6931472, %v3326_v43  ;;  %v5035_v40 = vmov 23   ;;  %v4999_v43 = vmov 24  }
 0x200   : > { %v3328_v49 = vpop.eup %3327  ;;  %v899_v50 = vadd.f32 %v879_v46, %v843_v44 }
 0x201   : > { %v870_v53 = vsel %vm869_vm9, %v867_v48, %v864_v47  ;;  %v891_v54 = vmul.f32 0.6931472, %v3328_v49 }
 0x202   : > { %903 = vst.msk [vmem:[#allocation3 + $0x8] sm:$0xff] %vm605_vm4, %v899_v50  ;;  %v898_v57 = vadd.f32 %v870_v53, %v842_v51  ;;  %v3330_v59 = vpop.eup %3329 }
 0x203   : > { %v897_v60 = vsel %vm896_vm10, %v894_v55, %v891_v54  ;;  %v882_v62 = vmul.f32 0.6931472, %v3330_v59  ;;  %v5020_v55 = vmov 29  }
 0x204   : > { %902 = vst.msk [vmem:[#allocation3] sm:$0xff] %vm605_vm4, %v898_v57  ;;  %v901_v61 = vadd.f32 %v897_v60, %v845_v58 }
 0x205   : > { %v888_v3 = vsel %vm887_vm11, %v885_v63, %v882_v62 }
 0x206   : > { %905 = vst.msk [vmem:[#allocation3 + $0x18] sm:$0xff] %vm605_vm4, %v901_v61  ;;  %v900_v4 = vadd.f32 %v888_v3, %v844_v2  ;;  %v913_v61 = vld [vmem:[#allocation2] sm:$0xff] }
 0x208   : > { %904 = vst.msk [vmem:[#allocation3 + $0x10] sm:$0xff] %vm605_vm4, %v900_v4  ;;  %v5009_v4 = vmov 30  }
 0x20b   : > { %v909_v36 = vld [vmem:[#allocation3] sm:$0xff] }
 0x20c   : > { %v940_v39 = vrot.slane %v909_v36, %v3751_v38  ;;  %v933_v51 = vcombine.high %v909_v36, %v909_v36  ;;  %v3814_v29 = vmul.f32 %v913_v61, %v909_v36 }
 0x20e   : > { %v956_v41 = vrot.slane %v940_v39, %v3751_v38  ;;  %v948_v46 = vcombine.high %v940_v39, %v940_v39  ;;  %v947_v54 = vrot.slane %v933_v51, %v3751_v38  ;;  %v3827_v36 = vrot.slane %v3814_v29, %v3763_v42 }
 0x20f   : > { %v3677_v5 = vpop.trf.xlu1 }
 0x210   : > { %5097 = vst [vmem:[#allocation7_spill] sm:$0xff] %v3677_v5  ;;  %v3679_v6 = vpop.trf.xlu0  ;;  %1605 = vperm.xlu1 %3166, %v3677_v5   ;;  %v3767_v44 = vrot.slane %v956_v41, %v3763_v42  ;;  %v970_v48 = vrot.slane %v948_v46, %v3751_v38  ;;  %v978_v52 = vcombine.high %v956_v41, %v956_v41 }
 0x211   : > { %1547 = vperm.xlu0 %3164, %v3679_v6   ;;  %v963_v60 = vrot.slane %v947_v54, %v3751_v38  ;;  %v949_v3 = vcombine.high %v947_v54, %v947_v54 }
 0x212   : > { %v1289_v47 = vmul.f32 %v3767_v44, %v3775_v45  ;;  %v3789_v53 = vrot.slane %v970_v48, %v3763_v42  ;;  %v3798_v57 = vrot.slane %v978_v52, %v3763_v42  ;;  %v980_v59 = vcombine.high %v970_v48, %v970_v48 }
 0x213   : > { %v3785_v50 = vpop.trf.xlu1  ;;  %v3817_v30 = vrot.slane %v963_v60, %v3763_v42  ;;  %v977_v39 = vrot.slane %v949_v3, %v3751_v38  ;;  %v3843_v3 = vld [vmem:[#allocation3 + $0x8] sm:$0xff] }
 0x214   : > { %3167 = vset.pattern.permute.xlu1 %v5006_v7  ;;  %v1353_v49 = vmul.f32 1.442695, %v1289_v47  ;;  %v3795_v56 = vpop.trf.xlu0  ;;  %v1291_v58 = vmul.f32 %v3789_v53, %v3775_v45  ;;  %v1293_v62 = vmul.f32 %v3798_v57, %v3775_v45  ;;  %v3809_v2 = vrot.slane %v980_v59, %v3763_v42 }
 0x215   : > { %1567 = vperm.xlu0 %3164, %v3677_v5   ;;  %1624 = vperm.xlu1 %3167, %v3679_v6   ;;  %v1297_v48 = vmul.f32 %v3817_v30, %v3775_v45  ;;  %v3835_v51 = vrot.slane %v977_v39, %v3763_v42 }
 0x216   : > { %3331 = vpow2.f32 %v1353_v49  ;;  %v1357_v63 = vmul.f32 1.442695, %v1291_v58  ;;  %v1361_v31 = vmul.f32 1.442695, %v1293_v62  ;;  %v1295_v34 = vmul.f32 %v3809_v2, %v3775_v45 }
 0x217   : > { %v1369_v61 = vmul.f32 1.442695, %v1297_v48  ;;  %v979_v62 = vcombine.high %v963_v60, %v963_v60  ;;  %v989_v48 = vrot.slane %v3843_v3, %v3751_v38 }
 0x218   : > { %3333 = vpow2.f32 %v1357_v63  ;;  %v1365_v49 = vmul.f32 1.442695, %v1295_v34  ;;  %v1299_v63 = vmul.f32 %v3835_v51, %v3775_v45 }
 0x219   : > { %3165 = vset.pattern.permute.xlu0 %v5007_v0  ;;  %1642 = vperm.xlu1 %3167, %v3677_v5   ;;  %3335 = vpow2.f32 %v1361_v31 }
 0x21a   : > { %1587 = vperm.xlu0 %3165, %v3679_v6   ;;  %3337 = vpow2.f32 %v1365_v49  ;;  %v3860_v49 = vrot.slane %v979_v62, %v3763_v42 }
 0x21b   : > { %3339 = vpow2.f32 %v1369_v61 }
 0x21d   : > { %3169 = vset.pattern.permute.xlu1 %v5004_v8 }
 0x21e   : > { %3168 = vset.pattern.permute.xlu0 %v5004_v8  ;;  %1679 = vperm.xlu1 %3169, %v3677_v5  }
 0x21f   : > { %1661 = vperm.xlu0 %3168, %v3679_v6  }
 0x222   : > { %3170 = vset.pattern.permute.xlu1 %v5003_v9 }
 0x223   : > { %3171 = vset.pattern.permute.xlu0 %v5002_v10  ;;  %1698 = vperm.xlu1 %3170, %v3679_v6   ;;  %v3332_v41 = vpop.eup %3331 }
 0x224   : > { %1735 = vperm.xlu0 %3171, %v3679_v6   ;;  %v1561_v54 = vmul.f32 0.0, %v3332_v41  ;;  %v3850_v41 = vsub.s32 1, %v3745_v33 }
 0x226   : > { %v3857_v60 = vrot.slane %v3814_v29, %v3850_v41 }
 0x227   : > { %1716 = vperm.xlu1 %3170, %v3677_v5  }
 0x228   : > { %3174 = vset.pattern.permute.xlu0 %v5014_v11 }
 0x229   : > { %1809 = vperm.xlu0 %3174, %v3679_v6  }
 0x22b   : > { %3172 = vset.pattern.permute.xlu1 %v5002_v10 }
 0x22c   : > { %1753 = vperm.xlu1 %3172, %v3677_v5  }
 0x22d   : > { %3177 = vset.pattern.permute.xlu0 %v4997_v12 }
 0x22e   : > { %1920 = vperm.xlu0 %3177, %v3679_v6  }
 0x230   : > { %3173 = vset.pattern.permute.xlu1 %v5001_v13 }
 0x231   : > { %1772 = vperm.xlu1 %3173, %v3679_v6  }
 0x232   : > { %3180 = vset.pattern.permute.xlu0 %v5031_v14 }
 0x233   : > { %2031 = vperm.xlu0 %3180, %v3679_v6  }
 0x235   : > { %1790 = vperm.xlu1 %3173, %v3677_v5  }
 0x237   : > { %3183 = vset.pattern.permute.xlu0 %v4993_v16 }
 0x238   : > { %2142 = vperm.xlu0 %3183, %v3679_v6  }
 0x239   : > { %3175 = vset.pattern.permute.xlu1 %v5005_v17 }
 0x23a   : > { %1846 = vperm.xlu1 %3175, %v3679_v6  }
 0x23c   : > { %3186 = vset.pattern.permute.xlu0 %v5033_v15 }
 0x23d   : > { %2253 = vperm.xlu0 %3186, %v3679_v6  }
 0x23e   : > { %3176 = vset.pattern.permute.xlu1 %v5018_v18 }
 0x23f   : > { %1883 = vperm.xlu1 %3176, %v3679_v6  }
 0x241   : > { %3189 = vset.pattern.permute.xlu0 %v5011_v19 }
 0x242   : > { %2364 = vperm.xlu0 %3189, %v3679_v6  }
 0x243   : > { %3178 = vset.pattern.permute.xlu1 %v5013_v20 }
 0x244   : > { %1957 = vperm.xlu1 %3178, %v3679_v6  }
 0x246   : > { %3192 = vset.pattern.permute.xlu0 %v4989_v21 }
 0x247   : > { %2475 = vperm.xlu0 %3192, %v3679_v6  }
 0x248   : > { %3179 = vset.pattern.permute.xlu1 %v5024_v22 }
 0x249   : > { %1994 = vperm.xlu1 %3179, %v3679_v6  }
 0x24b   : > { %3195 = vset.pattern.permute.xlu0 %v5027_v23 }
 0x24c   : > { %2586 = vperm.xlu0 %3195, %v3679_v6  }
 0x24d   : > { %3181 = vset.pattern.permute.xlu1 %v5022_v24 }
 0x24e   : > { %2068 = vperm.xlu1 %3181, %v3679_v6  }
 0x250   : > { %3198 = vset.pattern.permute.xlu0 %v5005_v17 }
 0x251   : > { %1864 = vperm.xlu0 %3198, %v3677_v5  }
 0x252   : > { %3182 = vset.pattern.permute.xlu1 %v4995_v25 }
 0x253   : > { %2105 = vperm.xlu1 %3182, %v3679_v6  }
 0x255   : > { %3201 = vset.pattern.permute.xlu0 %v4993_v16  ;;  %v1301_v16 = vmul.f32 %v3860_v49, %v3775_v45 }
 0x256   : > { %2160 = vperm.xlu0 %3201, %v3677_v5  }
 0x257   : > { %3184 = vset.pattern.permute.xlu1 %v5026_v26 }
 0x258   : > { %2179 = vperm.xlu1 %3184, %v3679_v6  }
 0x25a   : > { %3204 = vset.pattern.permute.xlu0 %v4989_v21 }
 0x25b   : > { %2493 = vperm.xlu0 %3204, %v3677_v5  }
 0x25c   : > { %3185 = vset.pattern.permute.xlu1 %v5016_v27 }
 0x25d   : > { %2216 = vperm.xlu1 %3185, %v3679_v6  }
 0x25f   : > { %3207 = vset.pattern.permute.xlu0 %v5029_v28 }
 0x260   : > { %2530 = vperm.xlu0 %3207, %v3677_v5  }
 0x261   : > { %3187 = vset.pattern.permute.xlu1 %v5038_v32 }
 0x262   : > { %2290 = vperm.xlu1 %3187, %v3679_v6  }
 0x264   : > { %3210 = vset.pattern.permute.xlu0 %v4987_v35 }
 0x265   : > { %2567 = vperm.xlu0 %3210, %v3677_v5  }
 0x266   : > { %3188 = vset.pattern.permute.xlu1 %v4991_v37 }
 0x267   : > { %2327 = vperm.xlu1 %3188, %v3679_v6  }
 0x269   : > { %3213 = vset.pattern.permute.xlu0 %v5038_v32 }
 0x26a   : > { %2308 = vperm.xlu0 %3213, %v3677_v5  }
 0x26b   : > { %3190 = vset.pattern.permute.xlu1 %v5035_v40 }
 0x26c   : > { %2401 = vperm.xlu1 %3190, %v3679_v6  }
 0x26e   : > { %3216 = vset.pattern.permute.xlu0 %v4991_v37 }
 0x26f   : > { %2345 = vperm.xlu0 %3216, %v3677_v5  }
 0x270   : > { %3191 = vset.pattern.permute.xlu1 %v4999_v43 }
 0x271   : > { %2438 = vperm.xlu1 %3191, %v3679_v6  }
 0x273   : > { %3219 = vset.pattern.permute.xlu0 %v4995_v25  ;;  %v997_v25 = vcombine.high %v989_v48, %v989_v48 }
 0x274   : > { %2123 = vperm.xlu0 %3219, %v3677_v5  }
 0x275   : > { %3193 = vset.pattern.permute.xlu1 %v5029_v28 }
 0x276   : > { %2512 = vperm.xlu1 %3193, %v3679_v6  }
 0x278   : > { %3222 = vset.pattern.permute.xlu0 %v5035_v40  ;;  %v915_v40 = vld [vmem:[#allocation2 + $0x10] sm:$0xff] }
 0x279   : > { %2419 = vperm.xlu0 %3222, %v3677_v5  }
 0x27a   : > { %3194 = vset.pattern.permute.xlu1 %v4987_v35 }
 0x27b   : > { %2549 = vperm.xlu1 %3194, %v3679_v6  }
 0x27d   : > { %3225 = vset.pattern.permute.xlu0 %v5007_v0  ;;  %v982_v0 = vcombine.high %v3843_v3, %v3843_v3 }
 0x27e   : > { %1609 = vperm.xlu0 %3225, %v3785_v50  }
 0x27f   : > { %3196 = vset.pattern.permute.xlu1 %v5020_v55 }
 0x280   : > { %2623 = vperm.xlu1 %3196, %v3679_v6  }
 0x282   : > { %3226 = vset.pattern.permute.xlu0 %v5006_v7 }
 0x283   : > { %1628 = vperm.xlu0 %3226, %v3795_v56  }
 0x284   : > { %3197 = vset.pattern.permute.xlu1 %v5009_v4 }
 0x285   : > { %2660 = vperm.xlu1 %3197, %v3679_v6  }
 0x287   : > { %3229 = vset.pattern.permute.xlu0 %v5004_v8 }
 0x288   : > { %1683 = vperm.xlu0 %3229, %v3785_v50  }
 0x289   : > { %3199 = vset.pattern.permute.xlu1 %v5018_v18 }
 0x28a   : > { %1901 = vperm.xlu1 %3199, %v3677_v5  }
 0x28b   : > { %v3829_v46 = vpop.permute.xlu1 %1605 }
 0x28c   : > { %5098 = vst [vmem:[#allocation8_spill] sm:$0xff] %v3829_v46  ;;  %3230 = vset.pattern.permute.xlu0 %v5003_v9  ;;  %v1548_v47 = vpop.permute.xlu0 %1547  ;;  %v1019_v9 = vrot.slane %v997_v25, %v3751_v38 }
 0x28d   : > { %v1559_v52 = vmul.f32 %v3827_v36, %v1548_v47  ;;  %1702 = vperm.xlu0 %3230, %v3795_v56   ;;  %v981_v47 = vcombine.high %v977_v39, %v977_v39 }
 0x28e   : > { %3200 = vset.pattern.permute.xlu1 %v4997_v12  ;;  %v3926_v1 = vrot.slane %v1019_v9, %v3763_v42  ;;  %v1029_v18 = vcombine.high %v1019_v9, %v1019_v9  ;;  %v3964_v9 = vsub.s32 6, %v3745_v33 }
 0x28f   : > { %v1563_v58 = vadd.f32 %v1561_v54, %v1559_v52  ;;  %1938 = vperm.xlu1 %3200, %v3677_v5   ;;  %v1373_v52 = vmul.f32 1.442695, %v1299_v63  ;;  %v3334_v54 = vpop.eup %3333  ;;  %v3876_v62 = vrot.slane %v981_v47, %v3763_v42 }
 0x290   : > { %v1568_v59 = vpop.permute.xlu0 %1567  ;;  %v1625_v34 = vpop.permute.xlu1 %1624  ;;  %5108 = vst [vmem:[#allocation18_spill] sm:$0xff] %v3926_v1 }
 0x291   : > { %v3845_v31 = vmul.f32 %v1568_v59, %v1563_v58  ;;  %3233 = vset.pattern.permute.xlu0 %v5002_v10  ;;  %v3863_v59 = vsub.s32 2, %v3745_v33  ;;  %v1600_v37 = vmul.f32 %v3334_v54, %v1563_v58  ;;  %5101 = vst [vmem:[#allocation11_spill] sm:$0xff] %v3876_v62  ;;  %3341 = vpow2.f32 %v1373_v52  ;;  %v3336_v58 = vpop.eup %3335 }
 0x292   : > { %1757 = vperm.xlu0 %3233, %v3785_v50   ;;  %v3885_v54 = vsub.s32 3, %v3745_v33  ;;  %v3906_v10 = vsub.s32 4, %v3745_v33 }
 0x293   : > { %3202 = vset.pattern.permute.xlu1 %v5026_v26  ;;  %v3872_v61 = vrot.slane %v3814_v29, %v3863_v59 }
 0x294   : > { %2197 = vperm.xlu1 %3202, %v3677_v5   ;;  %v3866_v39 = vpop.permute.xlu1 %1642  ;;  %v3894_v52 = vrot.slane %v3814_v29, %v3885_v54 }
 0x295   : > { %5099 = vst [vmem:[#allocation9_spill] sm:$0xff] %v3866_v39  ;;  %v1588_v35 = vpop.permute.xlu0 %1587  ;;  %5100 = vst [vmem:[#allocation10_spill] sm:$0xff] %v3872_v61  ;;  %v1635_v12 = vmul.f32 %v3872_v61, %v1625_v34  ;;  %v1303_v34 = vmul.f32 %v3876_v62, %v3775_v45  ;;  %v5163_v39 = vmov 31   ;;  %v5164_v61 = vmov 0  }
 0x296   : > { %v1598_v21 = vmul.f32 %v3857_v60, %v1588_v35  ;;  %3234 = vset.pattern.permute.xlu0 %v5001_v13  ;;  %v1005_v35 = vrot.slane %v989_v48, %v3751_v38  ;;  %5103 = vst [vmem:[#allocation13_spill] sm:$0xff] %v3894_v52  ;;  %v1377_v48 = vmul.f32 1.442695, %v1301_v16  ;;  %v3338_v13 = vpop.eup %3337 }
 0x297   : > { %1776 = vperm.xlu0 %3234, %v3795_v56   ;;  %v1381_v25 = vmul.f32 1.442695, %v1303_v34 }
 0x298   : > { %v3878_v63 = vadd.f32 %v1600_v37, %v1598_v21  ;;  %3203 = vset.pattern.permute.xlu1 %v4999_v43  ;;  %3343 = vpow2.f32 %v1377_v48  ;;  %v3931_v48 = vsub.s32 5, %v3745_v33  ;;  %v1027_v34 = vcombine.high %v1005_v35, %v1005_v35 }
 0x299   : > { %2456 = vperm.xlu1 %3203, %v3677_v5   ;;  %v3890_v21 = vpop.permute.xlu1 %1679  ;;  %3345 = vpow2.f32 %v1381_v25 }
 0x29a   : > { %v1637_v47 = vmul.f32 %v3336_v58, %v3878_v63  ;;  %5102 = vst [vmem:[#allocation12_spill] sm:$0xff] %v3890_v21  ;;  %v1662_v37 = vpop.permute.xlu0 %1661  ;;  %v3903_v58 = vrot.slane %v1005_v35, %v3763_v42  ;;  %v996_v35 = vrot.slane %v982_v0, %v3751_v38  ;;  %v3951_v55 = vrot.slane %v1027_v34, %v3763_v42 }
 0x29b   : > { %3237 = vset.pattern.permute.xlu0 %v5005_v17  ;;  %v1672_v8 = vmul.f32 %v3894_v52, %v1662_v37  ;;  %v3967_v34 = vrot.slane %v1029_v18, %v3763_v42 }
 0x29c   : > { %v3897_v43 = vadd.f32 %v1637_v47, %v1635_v12  ;;  %1850 = vperm.xlu0 %3237, %v3795_v56   ;;  %5105 = vst [vmem:[#allocation15_spill] sm:$0xff] %v3903_v58  ;;  %v3915_v47 = vrot.slane %v3814_v29, %v3906_v10  ;;  %v1305_v37 = vmul.f32 %v3903_v58, %v3775_v45  ;;  %5112 = vst [vmem:[#allocation22_spill] sm:$0xff] %v3951_v55 }
 0x29d   : > { %3205 = vset.pattern.permute.xlu1 %v5013_v20  ;;  %5115 = vst [vmem:[#allocation25_spill] sm:$0xff] %v3967_v34 }
 0x29e   : > { %5104 = vst [vmem:[#allocation14_spill] sm:$0xff] %v3897_v43  ;;  %v1674_v12 = vmul.f32 %v3338_v13, %v3897_v43  ;;  %1975 = vperm.xlu1 %3205, %v3677_v5   ;;  %v1699_v16 = vpop.permute.xlu1 %1698  ;;  %5106 = vst [vmem:[#allocation16_spill] sm:$0xff] %v3915_v47  ;;  %v3340_v13 = vpop.eup %3339 }
 0x29f   : > { %v1736_v17 = vpop.permute.xlu0 %1735 }
 0x2a0   : > { %v3917_v7 = vadd.f32 %v1674_v12, %v1672_v8  ;;  %3240 = vset.pattern.permute.xlu0 %v5013_v20  ;;  %v1709_v8 = vmul.f32 %v3915_v47, %v1699_v16  ;;  %v3940_v20 = vrot.slane %v3814_v29, %v3931_v48  ;;  %v3342_v16 = vpop.eup %3341 }
 0x2a1   : > { %1961 = vperm.xlu0 %3240, %v3795_v56  }
 0x2a2   : > { %5107 = vst [vmem:[#allocation17_spill] sm:$0xff] %v3917_v7  ;;  %v1711_v4 = vmul.f32 %v3340_v13, %v3917_v7  ;;  %3206 = vset.pattern.permute.xlu1 %v5016_v27  ;;  %v3934_v12 = vpop.permute.xlu1 %1716  ;;  %5111 = vst [vmem:[#allocation21_spill] sm:$0xff] %v3940_v20  ;;  %v1385_v13 = vmul.f32 1.442695, %v1305_v37  ;;  %v1307_v27 = vmul.f32 %v3926_v1, %v3775_v45 }
 0x2a3   : > { %5109 = vst [vmem:[#allocation19_spill] sm:$0xff] %v3934_v12  ;;  %2234 = vperm.xlu1 %3206, %v3677_v5  }
 0x2a4   : > { %v3936_v19 = vadd.f32 %v1711_v4, %v1709_v8  ;;  %v1810_v11 = vpop.permute.xlu0 %1809  ;;  %v1746_v4 = vmul.f32 %v3940_v20, %v1736_v17  ;;  %3347 = vpow2.f32 %v1385_v13  ;;  %v1012_v17 = vrot.slane %v996_v35, %v3751_v38  ;;  %v4058_v20 = vld [vmem:[#allocation3 + $0x18] sm:$0xff] }
 0x2a5   : > { %3243 = vset.pattern.permute.xlu0 %v5022_v24  ;;  %v998_v24 = vcombine.high %v996_v35, %v996_v35  ;;  %v3974_v13 = vrot.slane %v3814_v29, %v3964_v9 }
 0x2a6   : > { %5110 = vst [vmem:[#allocation20_spill] sm:$0xff] %v3936_v19  ;;  %v1748_v8 = vmul.f32 %v3342_v16, %v3936_v19  ;;  %2072 = vperm.xlu0 %3243, %v3795_v56   ;;  %v1389_v16 = vmul.f32 1.442695, %v1307_v27  ;;  %v3977_v27 = vsub.s32 7, %v3745_v33  ;;  %v1311_v33 = vmul.f32 %v3967_v34, %v3775_v45 }
 0x2a7   : > { %3208 = vset.pattern.permute.xlu1 %v5024_v22  ;;  %v3956_v37 = vpop.permute.xlu1 %1753  ;;  %5116 = vst [vmem:[#allocation26_spill] sm:$0xff] %v3974_v13  ;;  %v3981_v22 = vrot.slane %v1012_v17, %v3763_v42  ;;  %v1026_v18 = vrot.slane %v998_v24, %v3751_v38 }
 0x2a8   : > { %v3953_v25 = vadd.f32 %v1748_v8, %v1746_v4  ;;  %5114 = vst [vmem:[#allocation24_spill] sm:$0xff] %v3956_v37  ;;  %2012 = vperm.xlu1 %3208, %v3677_v5   ;;  %v1309_v4 = vmul.f32 %v3951_v55, %v3775_v45  ;;  %v3344_v8 = vpop.eup %3343  ;;  %3349 = vpow2.f32 %v1389_v16  ;;  %v3994_v16 = vrot.slane %v3814_v29, %v3977_v27 }
 0x2a9   : > { %v3959_v0 = vpop.permute.xlu0 %1920  ;;  %5117 = vst [vmem:[#allocation27_spill] sm:$0xff] %v3981_v22  ;;  %v4009_v34 = vrot.slane %v1026_v18, %v3763_v42  ;;  %v5132_v55 = vmov 28  }
 0x2aa   : > { %5113 = vst [vmem:[#allocation23_spill] sm:$0xff] %v3953_v25  ;;  %3246 = vset.pattern.permute.xlu0 %v5026_v26  ;;  %v914_v26 = vld [vmem:[#allocation2 + $0x8] sm:$0xff]  ;;  %v1785_v23 = vmul.f32 %v3344_v8, %v3953_v25  ;;  %5118 = vst [vmem:[#allocation28_spill] sm:$0xff] %v3994_v16  ;;  %v3999_v8 = vld [vmem:[#allocation3 + $0x10] sm:$0xff]  ;;  %v1820_v29 = vmul.f32 %v3994_v16, %v1810_v11  ;;  %v1397_v25 = vmul.f32 1.442695, %v1311_v33 }
 0x2ab   : > { %2183 = vperm.xlu0 %3246, %v3795_v56   ;;  %5121 = vst [vmem:[#allocation31_spill] sm:$0xff] %v4009_v34  ;;  %v1038_v11 = vrot.slane %v3999_v8, %v3751_v38  ;;  %v1030_v33 = vcombine.high %v1026_v18, %v1026_v18  ;;  %v5126_v16 = vmov 13  }
 0x2ac   : > { %3209 = vset.pattern.permute.xlu1 %v5033_v15  ;;  %v1773_v35 = vpop.permute.xlu1 %1772  ;;  %v1393_v15 = vmul.f32 1.442695, %v1309_v4  ;;  %v1313_v4 = vmul.f32 %v3981_v22, %v3775_v45 }
 0x2ad   : > { %v1783_v28 = vmul.f32 %v3974_v13, %v1773_v35  ;;  %2271 = vperm.xlu1 %3209, %v3677_v5   ;;  %v3346_v35 = vpop.eup %3345  ;;  %v4002_v13 = vmul.f32 %v914_v26, %v3843_v3  ;;  %v4018_v3 = vmul.f32 %v915_v40, %v3999_v8 }
 0x2ae   : > { %v3987_v14 = vpop.permute.xlu0 %2031  ;;  %3351 = vpow2.f32 %v1393_v15 }
 0x2af   : > { %3249 = vset.pattern.permute.xlu0 %v5038_v32  ;;  %v3997_v24 = vadd.f32 %v1785_v23, %v1783_v28  ;;  %v1028_v32 = vcombine.high %v1012_v17, %v1012_v17  ;;  %v5042_v28 = vmov 31   ;;  %v5122_v17 = vmov 23  }
 0x2b0   : > { %2294 = vperm.xlu0 %3249, %v3795_v56   ;;  %v4004_v37 = vpop.permute.xlu1 %1790  ;;  %v4028_v15 = vrot.slane %v4002_v13, %v3763_v42  ;;  %3353 = vpow2.f32 %v1397_v25  ;;  %v1046_v25 = vcombine.high %v1038_v11, %v1038_v11  ;;  %v4071_v12 = vrot.slane %v4018_v3, %v3964_v9 }
 0x2b1   : > { %5119 = vst [vmem:[#allocation29_spill] sm:$0xff] %v3997_v24  ;;  %5120 = vst [vmem:[#allocation30_spill] sm:$0xff] %v4004_v37  ;;  %v1822_v23 = vmul.f32 %v3346_v35, %v3997_v24  ;;  %3211 = vset.pattern.permute.xlu1 %v5042_v28  ;;  %v3348_v35 = vpop.eup %3347  ;;  %v4040_v37 = vrot.slane %v4018_v3, %v3885_v54  ;;  %v916_v24 = vld [vmem:[#allocation2 + $0x18] sm:$0xff] }
 0x2b2   : > { %2697 = vperm.xlu1 %3211, %v3679_v6   ;;  %5124 = vst [vmem:[#allocation33_spill] sm:$0xff] %v4028_v15  ;;  %v1401_v6 = vmul.f32 1.442695, %v1313_v4  ;;  %5133 = vst [vmem:[#allocation39_spill] sm:$0xff] %v4071_v12 }
 0x2b3   : > { %v4015_v26 = vpop.permute.xlu0 %2142  ;;  %v4021_v22 = vadd.f32 %v1822_v23, %v1820_v29  ;;  %v1315_v29 = vmul.f32 %v4009_v34, %v3775_v45  ;;  %5127 = vst [vmem:[#allocation35_spill] sm:$0xff] %v4040_v37  ;;  %v4056_v34 = vrot.slane %v4002_v13, %v3850_v41 }
 0x2b4   : > { %3252 = vset.pattern.permute.xlu0 %v5122_v17  ;;  %v4032_v17 = vrot.slane %v1028_v32, %v3763_v42  ;;  %v5128_v32 = vmov 26   ;;  %3355 = vpow2.f32 %v1401_v6 }
 0x2b5   : > { %5123 = vst [vmem:[#allocation32_spill] sm:$0xff] %v4021_v22  ;;  %2405 = vperm.xlu0 %3252, %v3795_v56   ;;  %v1847_v28 = vpop.permute.xlu1 %1846  ;;  %v1859_v40 = vmul.f32 %v3348_v35, %v4021_v22  ;;  %v4050_v22 = vrot.slane %v1030_v33, %v3763_v42  ;;  %5130 = vst [vmem:[#allocation37_spill] sm:$0xff] %v4056_v34 }
 0x2b6   : > { %5125 = vst [vmem:[#allocation34_spill] sm:$0xff] %v4032_v17  ;;  %v1857_v23 = vmul.f32 %v4028_v15, %v1847_v28  ;;  %3212 = vset.pattern.permute.xlu1 %v5126_v16  ;;  %v1054_v28 = vrot.slane %v1038_v11, %v3751_v38  ;;  %v3350_v15 = vpop.eup %3349  ;;  %v4065_v11 = vrot.slane %v4002_v13, %v3863_v59 }
 0x2b7   : > { %2049 = vperm.xlu1 %3212, %v3677_v5   ;;  %5129 = vst [vmem:[#allocation36_spill] sm:$0xff] %v4050_v22 }
 0x2b8   : > { %v2254_v18 = vpop.permute.xlu0 %2253  ;;  %v4047_v35 = vadd.f32 %v1859_v40, %v1857_v23  ;;  %v1317_v40 = vmul.f32 %v4032_v17, %v3775_v45  ;;  %v1405_v23 = vmul.f32 1.442695, %v1315_v29  ;;  %5131 = vst [vmem:[#allocation38_spill] sm:$0xff] %v4065_v11  ;;  %v4075_v29 = vmul.f32 %v916_v24, %v4058_v20 }
 0x2b9   : > { %v4044_v4 = vmul.f32 %v4040_v37, %v2254_v18  ;;  %3255 = vset.pattern.permute.xlu0 %v5128_v32  ;;  %v1068_v17 = vrot.slane %v1046_v25, %v3751_v38  ;;  %v4081_v19 = vrot.slane %v1054_v28, %v3763_v42  ;;  %v1931_v24 = vmul.f32 %v4065_v11, %v3959_v0 }
 0x2ba   : > { %2516 = vperm.xlu0 %3255, %v3795_v56   ;;  %v1884_v18 = vpop.permute.xlu1 %1883  ;;  %v1896_v33 = vmul.f32 %v3350_v15, %v4047_v35  ;;  %v1319_v15 = vmul.f32 %v4050_v22, %v3775_v45  ;;  %3357 = vpow2.f32 %v1405_v23  ;;  %v1409_v47 = vmul.f32 1.442695, %v1317_v40 }
 0x2bb   : > { %v1894_v37 = vmul.f32 %v4056_v34, %v1884_v18  ;;  %3214 = vset.pattern.permute.xlu1 %v5132_v55  ;;  %5134 = vst [vmem:[#allocation40_spill] sm:$0xff] %v4081_v19  ;;  %v5135_v34 = vmov 29   ;;  %v3352_v1 = vpop.eup %3351  ;;  %v4094_v25 = vrot.slane %v4002_v13, %v3885_v54  ;;  %v4103_v23 = vrot.slane %v1068_v17, %v3763_v42 }
 0x2bc   : > { %2604 = vperm.xlu1 %3214, %v3677_v5   ;;  %v1413_v40 = vmul.f32 1.442695, %v1319_v15  ;;  %3359 = vpow2.f32 %v1409_v47  ;;  %v5142_v15 = vmov 9  }
 0x2bd   : > { %v2365_v6 = vpop.permute.xlu0 %2364  ;;  %v4087_v32 = vadd.f32 %v1896_v33, %v1894_v37  ;;  %5137 = vst [vmem:[#allocation42_spill] sm:$0xff] %v4094_v25  ;;  %v4100_v37 = vrot.slane %v4075_v29, %v3850_v41  ;;  %5140 = vst [vmem:[#allocation44_spill] sm:$0xff] %v4103_v23  ;;  %v1076_v33 = vcombine.high %v1054_v28, %v1054_v28 }
 0x2be   : > { %v4084_v18 = vmul.f32 %v4071_v12, %v2365_v6  ;;  %3258 = vset.pattern.permute.xlu0 %v5135_v34  ;;  %v5138_v12 = vmov 14   ;;  %3361 = vpow2.f32 %v1413_v40 }
 0x2bf   : > { %5136 = vst [vmem:[#allocation41_spill] sm:$0xff] %v4087_v32  ;;  %2627 = vperm.xlu0 %3258, %v3795_v56   ;;  %v1958_v22 = vpop.permute.xlu1 %1957  ;;  %v1933_v6 = vmul.f32 %v3352_v1, %v4087_v32  ;;  %5139 = vst [vmem:[#allocation43_spill] sm:$0xff] %v4100_v37  ;;  %v1321_v1 = vmul.f32 %v4081_v19, %v3775_v45  ;;  %v1031_v32 = vcombine.high %v3999_v8, %v3999_v8 }
 0x2c0   : > { %3215 = vset.pattern.permute.xlu1 %v5138_v12  ;;  %v3354_v12 = vpop.eup %3353  ;;  %v1968_v28 = vmul.f32 %v4094_v25, %v1958_v22  ;;  %v4125_v8 = vrot.slane %v4075_v29, %v3906_v10  ;;  %v4130_v19 = vrot.slane %v1076_v33, %v3763_v42 }
 0x2c1   : > { %2086 = vperm.xlu1 %3215, %v3677_v5   ;;  %v4106_v11 = vadd.f32 %v1933_v6, %v1931_v24  ;;  %v4120_v24 = vrot.slane %v4002_v13, %v3906_v10  ;;  %v1417_v25 = vmul.f32 1.442695, %v1321_v1 }
 0x2c2   : > { %v2476_v0 = vpop.permute.xlu0 %2475  ;;  %5144 = vst [vmem:[#allocation47_spill] sm:$0xff] %v4125_v8  ;;  %5145 = vst [vmem:[#allocation48_spill] sm:$0xff] %v4130_v19  ;;  %v1325_v1 = vmul.f32 %v4130_v19, %v3775_v45  ;;  %v4163_v19 = vrot.slane %v4002_v13, %v3964_v9 }
 0x2c3   : > { %5141 = vst [vmem:[#allocation45_spill] sm:$0xff] %v4106_v11  ;;  %v4113_v21 = vmul.f32 %v4100_v37, %v2476_v0  ;;  %3261 = vset.pattern.permute.xlu0 %v5142_v15  ;;  %5143 = vst [vmem:[#allocation46_spill] sm:$0xff] %v4120_v24  ;;  %v1970_v47 = vmul.f32 %v3354_v12, %v4106_v11  ;;  %v1323_v0 = vmul.f32 %v4103_v23, %v3775_v45  ;;  %v3356_v11 = vpop.eup %3355 }
 0x2c4   : > { %1905 = vperm.xlu0 %3261, %v3785_v50   ;;  %v1995_v6 = vpop.permute.xlu1 %1994  ;;  %v1078_v37 = vcombine.high %v1068_v17, %v1068_v17  ;;  %v1045_v12 = vrot.slane %v1031_v32, %v3751_v38  ;;  %v5147_v17 = vmov 17   ;;  %3363 = vpow2.f32 %v1417_v25  ;;  %5152 = vst [vmem:[#allocation53_spill] sm:$0xff] %v4163_v19 }
 0x2c5   : > { %3217 = vset.pattern.permute.xlu1 %v5135_v34  ;;  %v4133_v22 = vadd.f32 %v1970_v47, %v1968_v28  ;;  %v2005_v52 = vmul.f32 %v4120_v24, %v1995_v6  ;;  %v4145_v28 = vrot.slane %v4002_v13, %v3931_v48  ;;  %v1421_v32 = vmul.f32 1.442695, %v1323_v0 }
 0x2c6   : > { %2641 = vperm.xlu1 %3217, %v3677_v5   ;;  %v4149_v40 = vrot.slane %v1078_v37, %v3763_v42  ;;  %v1061_v6 = vrot.slane %v1045_v12, %v3751_v38  ;;  %v5154_v25 = vmov 11  }
 0x2c7   : > { %5146 = vst [vmem:[#allocation49_spill] sm:$0xff] %v4133_v22  ;;  %v2587_v7 = vpop.permute.xlu0 %2586  ;;  %v2007_v33 = vmul.f32 %v3356_v11, %v4133_v22  ;;  %5148 = vst [vmem:[#allocation50_spill] sm:$0xff] %v4145_v28  ;;  %v1047_v11 = vcombine.high %v1045_v12, %v1045_v12  ;;  %v2042_v22 = vmul.f32 %v4145_v28, %v3987_v14  ;;  %3365 = vpow2.f32 %v1421_v32 }
 0x2c8   : > { %v4139_v23 = vmul.f32 %v4125_v8, %v2587_v7  ;;  %3264 = vset.pattern.permute.xlu0 %v5147_v17  ;;  %5149 = vst [vmem:[#allocation51_spill] sm:$0xff] %v4149_v40  ;;  %v3358_v17 = vpop.eup %3357  ;;  %v5151_v8 = vmov 7   ;;  %v1327_v12 = vmul.f32 %v4149_v40, %v3775_v45  ;;  %v5156_v32 = vmov 22  }
 0x2c9   : > { %2201 = vperm.xlu0 %3264, %v3785_v50   ;;  %v2069_v47 = vpop.permute.xlu1 %2068  ;;  %v4153_v7 = vadd.f32 %v2007_v33, %v2005_v52  ;;  %v1425_v33 = vmul.f32 1.442695, %v1325_v1  ;;  %v3360_v28 = vpop.eup %3359 }
 0x2ca   : > { %3218 = vset.pattern.permute.xlu1 %v5151_v8  ;;  %v1429_v1 = vmul.f32 1.442695, %v1327_v12 }
 0x2cb   : > { %5150 = vst [vmem:[#allocation52_spill] sm:$0xff] %v4153_v7  ;;  %1827 = vperm.xlu1 %3218, %v3677_v5   ;;  %v2044_v0 = vmul.f32 %v3358_v17, %v4153_v7  ;;  %v4175_v17 = vrot.slane %v1061_v6, %v3763_v42  ;;  %v1075_v7 = vrot.slane %v1047_v11, %v3751_v38  ;;  %v5158_v11 = vmov 12  }
 0x2cc   : > { %v1865_v37 = vpop.permute.xlu0 %1864  ;;  %3367 = vpow2.f32 %v1425_v33 }
 0x2cd   : > { %v4166_v52 = vmul.f32 %v1865_v37, %v4047_v35  ;;  %3267 = vset.pattern.permute.xlu0 %v5154_v25  ;;  %v4172_v14 = vadd.f32 %v2044_v0, %v2042_v22  ;;  %5155 = vst [vmem:[#allocation55_spill] sm:$0xff] %v4175_v17  ;;  %v2079_v35 = vmul.f32 %v4163_v19, %v2069_v47  ;;  %v3362_v19 = vpop.eup %3361  ;;  %3369 = vpow2.f32 %v1429_v1 }
 0x2ce   : > { %1979 = vperm.xlu0 %3267, %v3785_v50   ;;  %v2106_v24 = vpop.permute.xlu1 %2105  ;;  %v4183_v25 = vrot.slane %v4002_v13, %v3977_v27  ;;  %v1077_v0 = vcombine.high %v1061_v6, %v1061_v6  ;;  %v1329_v47 = vmul.f32 %v4175_v17, %v3775_v45  ;;  %v4199_v6 = vrot.slane %v4018_v3, %v3763_v42 }
 0x2cf   : > { %5153 = vst [vmem:[#allocation54_spill] sm:$0xff] %v4166_v52  ;;  %v2081_v37 = vmul.f32 %v3360_v28, %v4172_v14  ;;  %3220 = vset.pattern.permute.xlu1 %v5156_v32  ;;  %v4192_v28 = vrot.slane %v1075_v7, %v3763_v42  ;;  %v1079_v58 = vcombine.high %v1075_v7, %v1075_v7 }
 0x2d0   : > { %5157 = vst [vmem:[#allocation56_spill] sm:$0xff] %v4183_v25  ;;  %2382 = vperm.xlu1 %3220, %v3677_v5   ;;  %v2116_v13 = vmul.f32 %v4183_v25, %v2106_v24  ;;  %5160 = vst [vmem:[#allocation58_spill] sm:$0xff] %v4199_v6  ;;  %v4203_v33 = vrot.slane %v1077_v0, %v3763_v42  ;;  %v2153_v1 = vmul.f32 %v4199_v6, %v4015_v26 }
 0x2d1   : > { %v2161_v22 = vpop.permute.xlu0 %2160  ;;  %v4186_v52 = vadd.f32 %v2081_v37, %v2079_v35  ;;  %5159 = vst [vmem:[#allocation57_spill] sm:$0xff] %v4192_v28  ;;  %v5161_v35 = vmov 30   ;;  %v1087_v37 = vrot.slane %v4058_v20, %v3751_v38  ;;  %v1331_v25 = vmul.f32 %v4192_v28, %v3775_v45  ;;  %v3364_v62 = vpop.eup %3363 }
 0x2d2   : > { %3270 = vset.pattern.permute.xlu0 %v5158_v11  ;;  %5162 = vst [vmem:[#allocation59_spill] sm:$0xff] %v4203_v33 }
 0x2d3   : > { %2016 = vperm.xlu0 %3270, %v3785_v50   ;;  %v2118_v40 = vmul.f32 %v3362_v19, %v4186_v52  ;;  %v2180_v12 = vpop.permute.xlu1 %2179  ;;  %v1433_v19 = vmul.f32 1.442695, %v1329_v47  ;;  %v1333_v47 = vmul.f32 %v4203_v33, %v3775_v45  ;;  %v1103_v7 = vrot.slane %v1087_v37, %v3751_v38 }
 0x2d4   : > { %3221 = vset.pattern.permute.xlu1 %v5161_v35  ;;  %v3366_v28 = vpop.eup %3365  ;;  %v1437_v26 = vmul.f32 1.442695, %v1331_v25 }
 0x2d5   : > { %v4207_v17 = vadd.f32 %v2118_v40, %v2116_v13  ;;  %2678 = vperm.xlu1 %3221, %v3677_v5   ;;  %v4221_v40 = vrot.slane %v4018_v3, %v3850_v41  ;;  %v1095_v5 = vcombine.high %v1087_v37, %v1087_v37  ;;  %3371 = vpow2.f32 %v1433_v19 }
 0x2d6   : > { %v4210_v24 = vpop.permute.xlu0 %2493  ;;  %v4239_v37 = vrot.slane %v4018_v3, %v3863_v59  ;;  %3373 = vpow2.f32 %v1437_v26 }
 0x2d7   : > { %3273 = vset.pattern.permute.xlu0 %v5163_v39  ;;  %v2155_v0 = vmul.f32 %v3364_v62, %v4207_v17  ;;  %v4228_v62 = vrot.slane %v1079_v58, %v3763_v42  ;;  %v2190_v33 = vmul.f32 %v4221_v40, %v2180_v12  ;;  %v4244_v58 = vrot.slane %v1103_v7, %v3763_v42 }
 0x2d8   : > { %2701 = vperm.xlu0 %3273, %v3795_v56   ;;  %v2217_v13 = vpop.permute.xlu1 %2216  ;;  %5166 = vst [vmem:[#allocation61_spill] sm:$0xff] %v4239_v37 }
 0x2d9   : > { %v2157_v43 = vadd.f32 %v2155_v0, %v2153_v1  ;;  %3223 = vset.pattern.permute.xlu1 %v5164_v61  ;;  %v1117_v61 = vrot.slane %v1095_v5, %v3751_v38  ;;  %5167 = vst [vmem:[#allocation62_spill] sm:$0xff] %v4244_v58  ;;  %v3368_v12 = vpop.eup %3367  ;;  %v2227_v19 = vmul.f32 %v4239_v37, %v2217_v13  ;;  %v5171_v37 = vmov 1  }
 0x2da   : > { %1552 = vperm.xlu1 %3223, %v3795_v56   ;;  %v1125_v5 = vcombine.high %v1103_v7, %v1103_v7 }
 0x2db   : > { %v4231_v41 = vpop.permute.xlu0 %2530  ;;  %v4233_v6 = vmul.f32 %v2161_v22, %v2157_v43  ;;  %v2192_v46 = vmul.f32 %v3366_v28, %v2157_v43  ;;  %v1441_v43 = vmul.f32 1.442695, %v1333_v47  ;;  %v1335_v28 = vmul.f32 %v4228_v62, %v3775_v45  ;;  %v3370_v47 = vpop.eup %3369 }
 0x2dc   : > { %3276 = vset.pattern.permute.xlu0 %v5132_v55  ;;  %v4264_v13 = vrot.slane %v1117_v61, %v3763_v42 }
 0x2dd   : > { %5165 = vst [vmem:[#allocation60_spill] sm:$0xff] %v4233_v6  ;;  %2608 = vperm.xlu0 %3276, %v3785_v50   ;;  %v4246_v25 = vadd.f32 %v2192_v46, %v2190_v33  ;;  %v2291_v22 = vpop.permute.xlu1 %2290  ;;  %v1337_v46 = vmul.f32 %v4244_v58, %v3775_v45  ;;  %v1080_v33 = vcombine.high %v4058_v20, %v4058_v20  ;;  %3375 = vpow2.f32 %v1441_v43 }
 0x2de   : > { %1572 = vperm.xlu1 %3223, %v3785_v50   ;;  %5170 = vst [vmem:[#allocation65_spill] sm:$0xff] %v4264_v13  ;;  %v4271_v20 = vrot.slane %v4018_v3, %v3906_v10  ;;  %v4274_v43 = vrot.slane %v1125_v5, %v3763_v42 }
 0x2df   : > { %5168 = vst [vmem:[#allocation63_spill] sm:$0xff] %v4246_v25  ;;  %v2229_v1 = vmul.f32 %v3368_v12, %v4246_v25  ;;  %v1445_v12 = vmul.f32 1.442695, %v1335_v28  ;;  %v1094_v28 = vrot.slane %v1080_v33, %v3751_v38  ;;  %v5178_v25 = vmov 3  }
 0x2e0   : > { %v4253_v0 = vpop.permute.xlu0 %2567  ;;  %5172 = vst [vmem:[#allocation66_spill] sm:$0xff] %v4271_v20  ;;  %v2301_v10 = vmul.f32 %v4271_v20, %v2291_v22  ;;  %v1341_v33 = vmul.f32 %v4274_v43, %v3775_v45 }
 0x2e1   : > { %3279 = vset.pattern.permute.xlu0 %v5135_v34  ;;  %v4260_v26 = vadd.f32 %v2229_v1, %v2227_v19  ;;  %v1449_v19 = vmul.f32 1.442695, %v1337_v46  ;;  %v1127_v1 = vcombine.high %v1117_v61, %v1117_v61  ;;  %3377 = vpow2.f32 %v1445_v12 }
 0x2e2   : > { %2645 = vperm.xlu0 %3279, %v3785_v50   ;;  %v2328_v6 = vpop.permute.xlu1 %2327  ;;  %3224 = vset.pattern.permute.xlu1 %v5171_v37  ;;  %v1339_v37 = vmul.f32 %v4264_v13, %v3775_v45  ;;  %v5174_v46 = vmov 2  }
 0x2e3   : > { %5169 = vst [vmem:[#allocation64_spill] sm:$0xff] %v4260_v26  ;;  %v2266_v34 = vmul.f32 %v3370_v47, %v4260_v26  ;;  %1591 = vperm.xlu1 %3224, %v3795_v56   ;;  %v3372_v47 = vpop.eup %3371  ;;  %3379 = vpow2.f32 %v1449_v19  ;;  %v4293_v12 = vrot.slane %v1127_v1, %v3763_v42 }
 0x2e4   : > { %v1453_v26 = vmul.f32 1.442695, %v1339_v37  ;;  %v1457_v37 = vmul.f32 1.442695, %v1341_v33  ;;  %v4318_v33 = vrot.slane %v4018_v3, %v3977_v27 }
 0x2e5   : > { %v2309_v7 = vpop.permute.xlu0 %2308  ;;  %v4277_v58 = vadd.f32 %v2266_v34, %v4044_v4  ;;  %v4289_v4 = vrot.slane %v4018_v3, %v3931_v48  ;;  %5176 = vst [vmem:[#allocation69_spill] sm:$0xff] %v4293_v12 }
 0x2e6   : > { %3282 = vset.pattern.permute.xlu0 %v5156_v32  ;;  %3381 = vpow2.f32 %v1453_v26 }
 0x2e7   : > { %5173 = vst [vmem:[#allocation67_spill] sm:$0xff] %v4277_v58  ;;  %2386 = vperm.xlu0 %3282, %v3785_v50   ;;  %v2303_v61 = vmul.f32 %v3372_v47, %v4277_v58  ;;  %v2402_v5 = vpop.permute.xlu1 %2401  ;;  %3227 = vset.pattern.permute.xlu1 %v5174_v46  ;;  %5175 = vst [vmem:[#allocation68_spill] sm:$0xff] %v4289_v4  ;;  %v1110_v47 = vrot.slane %v1094_v28, %v3751_v38  ;;  %v3374_v46 = vpop.eup %3373  ;;  %3383 = vpow2.f32 %v1457_v37 }
 0x2e8   : > { %1646 = vperm.xlu1 %3227, %v3785_v50   ;;  %v1096_v58 = vcombine.high %v1094_v28, %v1094_v28  ;;  %v2338_v20 = vmul.f32 %v4289_v4, %v2328_v6  ;;  %v2412_v3 = vmul.f32 %v4318_v33, %v2402_v5  ;;  %v5182_v5 = vmov 5  }
 0x2e9   : > { %v2305_v34 = vadd.f32 %v2303_v61, %v2301_v10  ;;  %v1343_v10 = vmul.f32 %v4293_v12, %v3775_v45  ;;  %v4308_v28 = vrot.slane %v1110_v47, %v3763_v42  ;;  %v5181_v12 = vmov 4  }
 0x2ea   : > { %v2346_v22 = vpop.permute.xlu0 %2345  ;;  %v1124_v6 = vrot.slane %v1096_v58, %v3751_v38 }
 0x2eb   : > { %3286 = vset.pattern.permute.xlu0 %v5163_v39  ;;  %v4300_v13 = vmul.f32 %v2309_v7, %v2305_v34  ;;  %v2340_v19 = vmul.f32 %v3374_v46, %v2305_v34  ;;  %v3376_v7 = vpop.eup %3375  ;;  %v1345_v38 = vmul.f32 %v4308_v28, %v3775_v45 }
 0x2ec   : > { %2719 = vperm.xlu0 %3286, %v3785_v50   ;;  %v2439_v1 = vpop.permute.xlu1 %2438  ;;  %3228 = vset.pattern.permute.xlu1 %v5178_v25  ;;  %v4327_v58 = vrot.slane %v1124_v6, %v3763_v42 }
 0x2ed   : > { %5177 = vst [vmem:[#allocation70_spill] sm:$0xff] %v4300_v13  ;;  %v2342_v61 = vadd.f32 %v2340_v19, %v2338_v20  ;;  %1665 = vperm.xlu1 %3228, %v3795_v56   ;;  %v1461_v20 = vmul.f32 1.442695, %v1343_v10  ;;  %v1126_v19 = vcombine.high %v1110_v47, %v1110_v47  ;;  %v1465_v10 = vmul.f32 1.442695, %v1345_v38 }
 0x2ee   : > { %v1347_v37 = vmul.f32 %v4327_v58, %v3775_v45 }
 0x2ef   : > { %v2124_v34 = vpop.permute.xlu0 %2123  ;;  %v4311_v46 = vmul.f32 %v2346_v22, %v2342_v61  ;;  %v2377_v13 = vmul.f32 %v3376_v7, %v2342_v61  ;;  %3385 = vpow2.f32 %v1461_v20  ;;  %v1128_v61 = vcombine.high %v1124_v6, %v1124_v6 }
 0x2f0   : > { %v4314_v25 = vmul.f32 %v2124_v34, %v4207_v17  ;;  %v3378_v17 = vpop.eup %3377  ;;  %3387 = vpow2.f32 %v1465_v10  ;;  %v1469_v38 = vmul.f32 1.442695, %v1347_v37 }
 0x2f1   : > { %5179 = vst [vmem:[#allocation71_spill] sm:$0xff] %v4311_v46  ;;  %v2513_v26 = vpop.permute.xlu1 %2512  ;;  %3231 = vset.pattern.permute.xlu1 %v5181_v12  ;;  %v4322_v4 = vadd.f32 %v2377_v13, %v4084_v18  ;;  %v4334_v12 = vrot.slane %v4075_v29, %v3763_v42  ;;  %v4337_v18 = vrot.slane %v1126_v19, %v3763_v42  ;;  %v3380_v13 = vpop.eup %3379 }
 0x2f2   : > { %5180 = vst [vmem:[#allocation72_spill] sm:$0xff] %v4314_v25  ;;  %1720 = vperm.xlu1 %3231, %v3785_v50   ;;  %v4351_v6 = vrot.slane %v1128_v61, %v3763_v42  ;;  %3389 = vpow2.f32 %v1469_v38 }
 0x2f3   : > { %v2414_v22 = vmul.f32 %v3378_v17, %v4322_v4  ;;  %v2449_v17 = vmul.f32 %v4334_v12, %v2439_v1  ;;  %v1349_v20 = vmul.f32 %v4337_v18, %v3775_v45  ;;  %v5184_v1 = vmov 6  }
 0x2f4   : > { %v2420_v7 = vpop.permute.xlu0 %2419  ;;  %v1351_v42 = vmul.f32 %v4351_v6, %v3775_v45 }
 0x2f5   : > { %v2416_v47 = vadd.f32 %v2414_v22, %v2412_v3  ;;  %v3382_v3 = vpop.eup %3381 }
 0x2f6   : > { %v2550_v34 = vpop.permute.xlu1 %2549  ;;  %3232 = vset.pattern.permute.xlu1 %v5182_v5  ;;  %v3384_v10 = vpop.eup %3383  ;;  %v1477_v45 = vmul.f32 1.442695, %v1351_v42 }
 0x2f7   : > { %v4343_v25 = vmul.f32 %v2420_v7, %v2416_v47  ;;  %v2451_v46 = vmul.f32 %v3380_v13, %v2416_v47  ;;  %1739 = vperm.xlu1 %3232, %v3795_v56   ;;  %v4357_v13 = vrot.slane %v4075_v29, %v3863_v59  ;;  %v1473_v47 = vmul.f32 1.442695, %v1349_v20 }
 0x2f9   : > { %5183 = vst [vmem:[#allocation73_spill] sm:$0xff] %v4343_v25  ;;  %v4348_v19 = vadd.f32 %v2451_v46, %v2449_v17  ;;  %v2523_v37 = vmul.f32 %v4357_v13, %v2513_v26  ;;  %3391 = vpow2.f32 %v1473_v47 }
 0x2fa   : > { %3393 = vpow2.f32 %v1477_v45 }
 0x2fb   : > { %v2488_v22 = vmul.f32 %v3382_v3, %v4348_v19  ;;  %v2624_v5 = vpop.permute.xlu1 %2623  ;;  %3235 = vset.pattern.permute.xlu1 %v5184_v1 }
 0x2fc   : > { %1794 = vperm.xlu1 %3235, %v3785_v50   ;;  %v3386_v59 = vpop.eup %3385 }
 0x2fd   : > { %v2490_v46 = vadd.f32 %v2488_v22, %v4113_v21  ;;  %v4370_v21 = vrot.slane %v4075_v29, %v3885_v54  ;;  %v3388_v1 = vpop.eup %3387 }
 0x2ff   : > { %v2525_v61 = vmul.f32 %v3384_v10, %v2490_v46  ;;  %v4365_v7 = vmul.f32 %v4210_v24, %v2490_v46  ;;  %v2560_v20 = vmul.f32 %v4370_v21, %v2550_v34  ;;  %v4386_v34 = vrot.slane %v4075_v29, %v3931_v48  ;;  %v3390_v47 = vpop.eup %3389 }
 0x300   : > { %v2661_v17 = vpop.permute.xlu1 %2660  ;;  %3236 = vset.pattern.permute.xlu1 %v5151_v8  ;;  %v5189_v10 = vmov 10  }
 0x301   : > { %5185 = vst [vmem:[#allocation74_spill] sm:$0xff] %v4365_v7  ;;  %v2527_v3 = vadd.f32 %v2525_v61, %v2523_v37  ;;  %1813 = vperm.xlu1 %3236, %v3795_v56   ;;  %5188 = vst [vmem:[#allocation77_spill] sm:$0xff] %v4386_v34 }
 0x303   : > { %v2562_v26 = vmul.f32 %v3386_v59, %v2527_v3  ;;  %v4375_v38 = vmul.f32 %v4231_v41, %v2527_v3 }
 0x305   : > { %5186 = vst [vmem:[#allocation75_spill] sm:$0xff] %v4375_v38  ;;  %v2564_v24 = vadd.f32 %v2562_v26, %v2560_v20  ;;  %v4377_v22 = vpop.permute.xlu1 %1901  ;;  %3238 = vset.pattern.permute.xlu1 %v5142_v15  ;;  %v2634_v15 = vmul.f32 %v4386_v34, %v2624_v5 }
 0x306   : > { %1887 = vperm.xlu1 %3238, %v3795_v56   ;;  %v3392_v59 = vpop.eup %3391 }
 0x307   : > { %v4382_v54 = vmul.f32 %v4253_v0, %v2564_v24  ;;  %v2599_v46 = vmul.f32 %v3388_v1, %v2564_v24  ;;  %v4396_v0 = vrot.slane %v4075_v29, %v3964_v9  ;;  %v3394_v5 = vpop.eup %3393  ;;  %v5190_v24 = vmov 15  }
 0x309   : > { %5187 = vst [vmem:[#allocation76_spill] sm:$0xff] %v4382_v54  ;;  %v2601_v41 = vadd.f32 %v2599_v46, %v4139_v23  ;;  %v2671_v48 = vmul.f32 %v4396_v0, %v2661_v17  ;;  %v5193_v46 = vmov 18  }
 0x30a   : > { %v4389_v42 = vpop.permute.xlu1 %1938  ;;  %3239 = vset.pattern.permute.xlu1 %v5189_v10 }
 0x30b   : > { %1924 = vperm.xlu1 %3239, %v3795_v56   ;;  %v2636_v37 = vmul.f32 %v3390_v47, %v2601_v41 }
 0x30d   : > { %v2638_v61 = vadd.f32 %v2636_v37, %v2634_v15  ;;  %v5195_v15 = vmov 19   ;;  %v4425_v37 = vrot.slane %v4075_v29, %v3977_v27  ;;  %v5200_v27 = vmov 24  }
 0x30f   : > { %v4399_v3 = vpop.permute.xlu1 %2197  ;;  %3241 = vset.pattern.permute.xlu1 %v5158_v11  ;;  %v2673_v23 = vmul.f32 %v3392_v59, %v2638_v61  ;;  %v5192_v11 = vmov 16   ;;  %5196 = vst [vmem:[#allocation80_spill] sm:$0xff] %v4425_v37 }
 0x310   : > { %1998 = vperm.xlu1 %3241, %v3795_v56  }
 0x311   : > { %v2675_v45 = vadd.f32 %v2673_v23, %v2671_v48  ;;  %v5197_v48 = vmov 21  }
 0x313   : > { %v2710_v20 = vmul.f32 %v3394_v5, %v2675_v45 }
 0x314   : > { %v4403_v26 = vpop.permute.xlu1 %2456  ;;  %3242 = vset.pattern.permute.xlu1 %v5126_v16 }
 0x315   : > { %2035 = vperm.xlu1 %3242, %v3795_v56  }
 0x319   : > { %v4407_v9 = vpop.permute.xlu1 %1975  ;;  %3244 = vset.pattern.permute.xlu1 %v5190_v24 }
 0x31a   : > { %2109 = vperm.xlu1 %3244, %v3795_v56  }
 0x31e   : > { %v4411_v17 = vpop.permute.xlu1 %2234  ;;  %3245 = vset.pattern.permute.xlu1 %v5192_v11 }
 0x31f   : > { %5191 = vst [vmem:[#allocation78_spill] sm:$0xff] %v4411_v17  ;;  %2146 = vperm.xlu1 %3245, %v3795_v56  }
 0x323   : > { %v4415_v1 = vpop.permute.xlu1 %2012  ;;  %3247 = vset.pattern.permute.xlu1 %v5193_v46 }
 0x324   : > { %2220 = vperm.xlu1 %3247, %v3795_v56  }
 0x328   : > { %v4419_v47 = vpop.permute.xlu1 %2271  ;;  %3248 = vset.pattern.permute.xlu1 %v5195_v15 }
 0x329   : > { %5194 = vst [vmem:[#allocation79_spill] sm:$0xff] %v4419_v47  ;;  %2257 = vperm.xlu1 %3248, %v3795_v56   ;;  %v5201_v47 = vmov 25  }
 0x32d   : > { %v2698_v59 = vpop.permute.xlu1 %2697  ;;  %3250 = vset.pattern.permute.xlu1 %v5197_v48 }
 0x32e   : > { %v2708_v23 = vmul.f32 %v4425_v37, %v2698_v59  ;;  %2331 = vperm.xlu1 %3250, %v3795_v56  }
 0x330   : > { %v4430_v5 = vadd.f32 %v2710_v20, %v2708_v23  ;;  %v4445_v20 = vld [vmem:[%s4983_s8 + $0x8] sm:$0xff] }
 0x332   : > { %5198 = vst [vmem:[#allocation81_spill] sm:$0xff] %v4430_v5  ;;  %v2050_v25 = vpop.permute.xlu1 %2049  ;;  %3251 = vset.pattern.permute.xlu1 %v5156_v32  ;;  %v1290_v32 = vmul.f32 %v3767_v44, %v4445_v20  ;;  %v1610_v5 = vpop.permute.xlu0 %1609 }
 0x333   : > { %v4434_v54 = vmul.f32 %v2050_v25, %v4172_v14  ;;  %2368 = vperm.xlu1 %3251, %v3795_v56  }
 0x334   : > { %v1355_v23 = vmul.f32 1.442695, %v1290_v32  ;;  %v1294_v32 = vmul.f32 %v3798_v57, %v4445_v20 }
 0x335   : > { %5199 = vst [vmem:[#allocation82_spill] sm:$0xff] %v4434_v54 }
 0x336   : > { %3395 = vpow2.f32 %v1355_v23  ;;  %v1629_v44 = vpop.permute.xlu0 %1628 }
 0x337   : > { %v2605_v38 = vpop.permute.xlu1 %2604  ;;  %3253 = vset.pattern.permute.xlu1 %v5200_v27 }
 0x338   : > { %v4438_v29 = vmul.f32 %v2605_v38, %v2601_v41  ;;  %2442 = vperm.xlu1 %3253, %v3795_v56   ;;  %v5203_v38 = vmov 27  }
 0x33c   : > { %v2087_v59 = vpop.permute.xlu1 %2086  ;;  %3254 = vset.pattern.permute.xlu1 %v5201_v47 }
 0x33d   : > { %v4448_v14 = vmul.f32 %v2087_v59, %v4186_v52  ;;  %2479 = vperm.xlu1 %3254, %v3795_v56   ;;  %v1292_v52 = vmul.f32 %v3789_v53, %v4445_v20  ;;  %v1363_v53 = vmul.f32 1.442695, %v1294_v32 }
 0x33f   : > { %5202 = vst [vmem:[#allocation83_spill] sm:$0xff] %v4448_v14 }
 0x341   : > { %v2642_v25 = vpop.permute.xlu1 %2641  ;;  %3256 = vset.pattern.permute.xlu1 %v5203_v38 }
 0x342   : > { %v4454_v41 = vmul.f32 %v2642_v25, %v2638_v61  ;;  %2553 = vperm.xlu1 %3256, %v3795_v56   ;;  %v1359_v25 = vmul.f32 1.442695, %v1292_v52 }
 0x343   : > { %v3396_v17 = vpop.eup %3395 }
 0x344   : > { %5204 = vst [vmem:[#allocation84_spill] sm:$0xff] %v4454_v41  ;;  %3397 = vpow2.f32 %v1359_v25 }
 0x345   : > { %3399 = vpow2.f32 %v1363_v53  ;;  %v1300_v53 = vmul.f32 %v3835_v51, %v4445_v20  ;;  %v5208_v51 = vld [vmem:[#allocation8_spill] sm:$0xff] }
 0x346   : > { %v4457_v54 = vpop.permute.xlu1 %1827  ;;  %3257 = vset.pattern.permute.xlu1 %v5132_v55  ;;  %v4470_v55 = vpop.permute.xlu0 %1683 }
 0x347   : > { %5205 = vst [vmem:[#allocation85_spill] sm:$0xff] %v4457_v54  ;;  %2590 = vperm.xlu1 %3257, %v3795_v56   ;;  %v5206_v54 = vmov 8  }
 0x34b   : > { %v2383_v59 = vpop.permute.xlu1 %2382  ;;  %3259 = vset.pattern.permute.xlu1 %v5161_v35 }
 0x34c   : > { %v4465_v61 = vmul.f32 %v2383_v59, %v4322_v4  ;;  %2664 = vperm.xlu1 %3259, %v3795_v56   ;;  %v1296_v4 = vmul.f32 %v3809_v2, %v4445_v20  ;;  %v4478_v56 = vpop.permute.xlu0 %1702  ;;  %v1298_v59 = vmul.f32 %v3817_v30, %v4445_v20 }
 0x350   : > { %v2679_v23 = vpop.permute.xlu1 %2678  ;;  %3260 = vset.pattern.permute.xlu1 %v5206_v54  ;;  %v1562_v54 = vmul.f32 0.0, %v3396_v17  ;;  %v4485_v32 = vpop.permute.xlu0 %1757 }
 0x351   : > { %v4473_v14 = vmul.f32 %v2679_v23, %v2675_v45  ;;  %1868 = vperm.xlu1 %3260, %v3785_v50   ;;  %v1367_v45 = vmul.f32 1.442695, %v1296_v4  ;;  %v3398_v4 = vpop.eup %3397 }
 0x353   : > { %5207 = vst [vmem:[#allocation86_spill] sm:$0xff] %v4473_v14  ;;  %3401 = vpow2.f32 %v1367_v45  ;;  %v1302_v45 = vmul.f32 %v3860_v49, %v4445_v20  ;;  %v5209_v14 = vld [vmem:[#allocation10_spill] sm:$0xff] }
 0x354   : > { %v1636_v7 = vmul.f32 %v5209_v14, %v1629_v44  ;;  %v5212_v44 = vld [vmem:[#allocation11_spill] sm:$0xff] }
 0x355   : > { %3262 = vset.pattern.permute.xlu1 %v5189_v10  ;;  %v1553_v57 = vpop.permute.xlu1 %1552  ;;  %v1371_v10 = vmul.f32 1.442695, %v1298_v59  ;;  %v1612_v59 = vmul.f32 %v5208_v51, %v3878_v63  ;;  %v5210_v63 = vld [vmem:[#allocation14_spill] sm:$0xff] }
 0x356   : > { %v1560_v52 = vmul.f32 %v3827_v36, %v1553_v57  ;;  %1942 = vperm.xlu1 %3262, %v3785_v50   ;;  %v1577_v36 = vsel %vm605_vm4, %v3845_v31, 0.0  ;;  %v4494_v57 = vpop.permute.xlu0 %1776  ;;  %v1375_v31 = vmul.f32 1.442695, %v1300_v53 }
 0x357   : > { %3403 = vpow2.f32 %v1371_v10  ;;  %v1614_v10 = vsel %vm605_vm4, %v1612_v59, 0.0  ;;  %v5214_v59 = vld [vmem:[#allocation13_spill] sm:$0xff] }
 0x358   : > { %v1564_v25 = vadd.f32 %v1562_v54, %v1560_v52  ;;  %3405 = vpow2.f32 %v1375_v31 }
 0x359   : > { %v1573_v23 = vpop.permute.xlu1 %1572 }
 0x35a   : > { %v1576_v2 = vmul.f32 %v1573_v23, %v1564_v25  ;;  %3263 = vset.pattern.permute.xlu1 %v5192_v11  ;;  %v1601_v23 = vmul.f32 %v3398_v4, %v1564_v25  ;;  %v4504_v4 = vpop.permute.xlu0 %1850 }
 0x35b   : > { %2164 = vperm.xlu1 %3263, %v3785_v50  }
 0x35c   : > { %v1578_v17 = vsel %vm605_vm4, %v1576_v2, 0.0 }
 0x35d   : > { %v1579_v30 = vadd.f32 %v1578_v17, %v1577_v36  ;;  %v3400_v36 = vpop.eup %3399 }
 0x35e   : > { %v1592_v52 = vpop.permute.xlu1 %1591 }
 0x35f   : > { %v1580_v54 = vrot.slane %v1579_v30, 4  ;;  %v1599_v11 = vmul.f32 %v3857_v60, %v1592_v52  ;;  %3265 = vset.pattern.permute.xlu1 %v5200_v27  ;;  %v1379_v27 = vmul.f32 1.442695, %v1302_v45  ;;  %v5211_v52 = vld [vmem:[#allocation9_spill] sm:$0xff]  ;;  %v5213_v45 = vld [vmem:[#allocation15_spill] sm:$0xff] }
 0x360   : > { %2460 = vperm.xlu1 %3265, %v3785_v50   ;;  %v1306_v51 = vmul.f32 %v5213_v45, %v4445_v20 }
 0x361   : > { %v1603_v2 = vadd.f32 %v1601_v23, %v1599_v11  ;;  %v1581_v17 = vadd.f32 %v1580_v54, %v1579_v30  ;;  %v1649_v11 = vmul.f32 %v5211_v52, %v5210_v63  ;;  %v1304_v30 = vmul.f32 %v5212_v44, %v4445_v20  ;;  %v3402_v23 = vpop.eup %3401  ;;  %v5215_v63 = vld [vmem:[#allocation17_spill] sm:$0xff]  ;;  %v5216_v52 = vld [vmem:[#allocation12_spill] sm:$0xff] }
 0x362   : > { %3407 = vpow2.f32 %v1379_v27  ;;  %v1686_v44 = vmul.f32 %v5216_v52, %v5215_v63  ;;  %v5221_v63 = vld [vmem:[#allocation19_spill] sm:$0xff] }
 0x363   : > { %v1613_v37 = vmul.f32 %v1610_v5, %v1603_v2  ;;  %v1647_v60 = vpop.permute.xlu1 %1646  ;;  %v1638_v25 = vmul.f32 %v3400_v36, %v1603_v2  ;;  %v1582_v14 = vrot.slane %v1581_v17, 2  ;;  %v1383_v27 = vmul.f32 1.442695, %v1304_v30 }
 0x364   : > { %3266 = vset.pattern.permute.xlu1 %v5201_v47 }
 0x365   : > { %v1615_v49 = vsel %vm605_vm4, %v1613_v37, 0.0  ;;  %v1640_v53 = vadd.f32 %v1638_v25, %v1636_v7  ;;  %2497 = vperm.xlu1 %3266, %v3785_v50   ;;  %v1651_v7 = vsel %vm605_vm4, %v1649_v11, 0.0  ;;  %v4520_v25 = vpop.permute.xlu0 %1961  ;;  %v3404_v11 = vpop.eup %3403  ;;  %3409 = vpow2.f32 %v1383_v27 }
 0x366   : > { %v1616_v5 = vadd.f32 %v1615_v49, %v1614_v10  ;;  %v1583_v10 = vadd.f32 %v1582_v14, %v1581_v17 }
 0x367   : > { %v1650_v54 = vmul.f32 %v1647_v60, %v1640_v53  ;;  %v1675_v36 = vmul.f32 %v3402_v23, %v1640_v53 }
 0x368   : > { %v1617_v47 = vrot.slane %v1616_v5, 4  ;;  %v1666_v31 = vpop.permute.xlu1 %1665 }
 0x369   : > { %v1652_v37 = vsel %vm605_vm4, %v1650_v54, 0.0  ;;  %v1673_v2 = vmul.f32 %v5214_v59, %v1666_v31  ;;  %3268 = vset.pattern.permute.xlu1 %v5193_v46  ;;  %v5217_v31 = vld [vmem:[#allocation18_spill] sm:$0xff]  ;;  %v5218_v46 = vld [vmem:[#allocation16_spill] sm:$0xff]  ;;  %v5219_v59 = vmov 26  }
 0x36a   : > { %v1618_v60 = vadd.f32 %v1617_v47, %v1616_v5  ;;  %v1653_v49 = vadd.f32 %v1652_v37, %v1651_v7  ;;  %2238 = vperm.xlu1 %3268, %v3785_v50   ;;  %v1308_v53 = vmul.f32 %v5217_v31, %v4445_v20  ;;  %v1710_v23 = vmul.f32 %v5218_v46, %v4478_v56 }
 0x36b   : > { %v1677_v45 = vadd.f32 %v1675_v36, %v1673_v2  ;;  %v1387_v47 = vmul.f32 1.442695, %v1306_v51  ;;  %v1584_v7 = vrot.slane %v1583_v10, 1  ;;  %v1688_v2 = vsel %vm605_vm4, %v1686_v44, 0.0  ;;  %v5220_v36 = vld [vmem:[#allocation20_spill] sm:$0xff] }
 0x36c   : > { %v1619_v41 = vrot.slane %v1618_v60, 2  ;;  %v1654_v54 = vrot.slane %v1653_v49, 4  ;;  %v1723_v52 = vmul.f32 %v5221_v63, %v5220_v36  ;;  %v1391_v44 = vmul.f32 1.442695, %v1308_v53  ;;  %v5223_v36 = vld [vmem:[#allocation21_spill] sm:$0xff]  ;;  %v5224_v53 = vld [vmem:[#allocation23_spill] sm:$0xff] }
 0x36d   : > { %v1687_v17 = vmul.f32 %v4470_v55, %v1677_v45  ;;  %v1721_v14 = vpop.permute.xlu1 %1720  ;;  %v1712_v5 = vmul.f32 %v3404_v11, %v1677_v45  ;;  %v4536_v55 = vpop.permute.xlu0 %2072  ;;  %3411 = vpow2.f32 %v1387_v47  ;;  %v1585_v11 = vadd.f32 %v1584_v7, %v1583_v10  ;;  %v5225_v7 = vld [vmem:[#allocation24_spill] sm:$0xff] }
 0x36e   : > { %v1620_v30 = vadd.f32 %v1619_v41, %v1618_v60  ;;  %v1655_v37 = vadd.f32 %v1654_v54, %v1653_v49  ;;  %3269 = vset.pattern.permute.xlu1 %v5219_v59  ;;  %v5222_v41 = vld [vmem:[#allocation22_spill] sm:$0xff]  ;;  %v3406_v49 = vpop.eup %3405  ;;  %3413 = vpow2.f32 %v1391_v44 }
 0x36f   : > { %v1689_v31 = vsel %vm605_vm4, %v1687_v17, 0.0  ;;  %v1714_v34 = vadd.f32 %v1712_v5, %v1710_v23  ;;  %2534 = vperm.xlu1 %3269, %v3785_v50   ;;  %v1310_v60 = vmul.f32 %v5222_v41, %v4445_v20  ;;  %v1725_v5 = vsel %vm605_vm4, %v1723_v52, 0.0  ;;  %v3408_v10 = vpop.eup %3407  ;;  %v5226_v52 = vld [vmem:[#allocation25_spill] sm:$0xff] }
 0x370   : > { %v1621_v56 = vrot.slane %v1620_v30, 1  ;;  %v1656_v51 = vrot.slane %v1655_v37, 2  ;;  %v1690_v45 = vadd.f32 %v1689_v31, %v1688_v2 }
 0x371   : > { %v1724_v27 = vmul.f32 %v1721_v14, %v1714_v34  ;;  %v1749_v2 = vmul.f32 %v3406_v49, %v1714_v34 }
 0x372   : > { %v1622_v54 = vadd.f32 %v1621_v56, %v1620_v30  ;;  %v1657_v46 = vadd.f32 %v1656_v51, %v1655_v37  ;;  %v1691_v17 = vrot.slane %v1690_v45, 4  ;;  %v1740_v23 = vpop.permute.xlu1 %1739  ;;  %v1760_v30 = vmul.f32 %v5225_v7, %v5224_v53  ;;  %v4550_v51 = vpop.permute.xlu0 %2183 }
 0x373   : > { %v1726_v59 = vsel %vm605_vm4, %v1724_v27, 0.0  ;;  %v1747_v63 = vmul.f32 %v5223_v36, %v1740_v23  ;;  %3271 = vset.pattern.permute.xlu1 %v5195_v15  ;;  %v1312_v56 = vmul.f32 %v5226_v52, %v4445_v20  ;;  %v1395_v27 = vmul.f32 1.442695, %v1310_v60  ;;  %v3410_v44 = vpop.eup %3409 }
 0x374   : > { %v1658_v31 = vrot.slane %v1657_v46, 1  ;;  %v2734_v41 = vsel %vm2733_vm12, %v1585_v11, %v1622_v54  ;;  %v1692_v14 = vadd.f32 %v1691_v17, %v1690_v45  ;;  %v1727_v47 = vadd.f32 %v1726_v59, %v1725_v5  ;;  %2275 = vperm.xlu1 %3271, %v3785_v50   ;;  %v5227_v11 = vld [vmem:[#allocation26_spill] sm:$0xff] }
 0x375   : > { %v1751_v37 = vadd.f32 %v1749_v2, %v1747_v63  ;;  %v1784_v45 = vmul.f32 %v5227_v11, %v4494_v57  ;;  %v1762_v63 = vsel %vm605_vm4, %v1760_v30, 0.0  ;;  %v5229_v2 = vld [vmem:[#allocation30_spill] sm:$0xff]  ;;  %3415 = vpow2.f32 %v1395_v27 }
 0x376   : > { %v1659_v34 = vadd.f32 %v1658_v31, %v1657_v46  ;;  %v1693_v49 = vrot.slane %v1692_v14, 2  ;;  %v1728_v15 = vrot.slane %v1727_v47, 4  ;;  %v5228_v46 = vld [vmem:[#allocation29_spill] sm:$0xff] }
 0x377   : > { %v1761_v54 = vmul.f32 %v4485_v32, %v1751_v37  ;;  %v1795_v17 = vpop.permute.xlu1 %1794  ;;  %v1786_v23 = vmul.f32 %v3408_v10, %v1751_v37  ;;  %v1797_v31 = vmul.f32 %v5229_v2, %v5228_v46 }
 0x378   : > { %v2735_v5 = vsel %vm753_vm5, %v2734_v41, %v1659_v34  ;;  %v1694_v59 = vadd.f32 %v1693_v49, %v1692_v14  ;;  %v1729_v36 = vadd.f32 %v1728_v15, %v1727_v47  ;;  %3272 = vset.pattern.permute.xlu1 %v5203_v38  ;;  %v1399_v41 = vmul.f32 1.442695, %v1312_v56  ;;  %v5230_v14 = vld [vmem:[#allocation27_spill] sm:$0xff]  ;;  %v4564_v47 = vpop.permute.xlu0 %2294 }
 0x379   : > { %v1763_v60 = vsel %vm605_vm4, %v1761_v54, 0.0  ;;  %v1788_v53 = vadd.f32 %v1786_v23, %v1784_v45  ;;  %2571 = vperm.xlu1 %3272, %v3785_v50   ;;  %v1314_v38 = vmul.f32 %v5230_v14, %v4445_v20  ;;  %v5231_v49 = vld [vmem:[#allocation31_spill] sm:$0xff]  ;;  %v1799_v11 = vsel %vm605_vm4, %v1797_v31, 0.0  ;;  %v5232_v54 = vld [vmem:[#allocation28_spill] sm:$0xff] }
 0x37a   : > { %v1695_v32 = vrot.slane %v1694_v59, 1  ;;  %v1730_v57 = vrot.slane %v1729_v36, 2  ;;  %v1764_v10 = vadd.f32 %v1763_v60, %v1762_v63  ;;  %v1316_v15 = vmul.f32 %v5231_v49, %v4445_v20  ;;  %v3412_v56 = vpop.eup %3411 }
 0x37b   : > { %v1798_v7 = vmul.f32 %v1795_v17, %v1788_v53  ;;  %v1823_v27 = vmul.f32 %v3410_v44, %v1788_v53  ;;  %3417 = vpow2.f32 %v1399_v41  ;;  %v1403_v2 = vmul.f32 1.442695, %v1314_v38  ;;  %v5233_v53 = vld [vmem:[#allocation33_spill] sm:$0xff]  ;;  %v5235_v41 = vld [vmem:[#allocation34_spill] sm:$0xff] }
 0x37c   : > { %v1696_v30 = vadd.f32 %v1695_v32, %v1694_v59  ;;  %v1731_v37 = vadd.f32 %v1730_v57, %v1729_v36  ;;  %v1765_v52 = vrot.slane %v1764_v10, 4  ;;  %v1814_v34 = vpop.permute.xlu1 %1813  ;;  %v1858_v57 = vmul.f32 %v5233_v53, %v4504_v4  ;;  %v5239_v53 = vld [vmem:[#allocation38_spill] sm:$0xff] }
 0x37d   : > { %v1800_v45 = vsel %vm605_vm4, %v1798_v7, 0.0  ;;  %v1821_v17 = vmul.f32 %v5232_v54, %v1814_v34  ;;  %3274 = vset.pattern.permute.xlu1 %v5126_v16  ;;  %v4579_v7 = vpop.permute.xlu0 %2405  ;;  %3419 = vpow2.f32 %v1403_v2  ;;  %v1318_v38 = vmul.f32 %v5235_v41, %v4445_v20  ;;  %v5240_v41 = vld [vmem:[#allocation40_spill] sm:$0xff] }
 0x37e   : > { %v1732_v23 = vrot.slane %v1731_v37, 1  ;;  %v2736_v63 = vsel %vm440_vm0, %v2735_v5, %v1696_v30  ;;  %v1766_v59 = vadd.f32 %v1765_v52, %v1764_v10  ;;  %v1801_v36 = vadd.f32 %v1800_v45, %v1799_v11  ;;  %2053 = vperm.xlu1 %3274, %v3785_v50   ;;  %v5236_v11 = vld [vmem:[#allocation37_spill] sm:$0xff] }
 0x37f   : > { %v4574_v46 = vadd.f32 %v1823_v27, %v1821_v17  ;;  %v5234_v30 = vmov 20   ;;  %v1407_v4 = vmul.f32 1.442695, %v1316_v15 }
 0x380   : > { %v1733_v31 = vadd.f32 %v1732_v23, %v1731_v37  ;;  %v1767_v60 = vrot.slane %v1766_v59, 2  ;;  %v1802_v32 = vrot.slane %v1801_v36, 4  ;;  %v3414_v37 = vpop.eup %3413 }
 0x381   : > { %v1860_v16 = vmul.f32 %v3412_v56, %v4574_v46  ;;  %v1888_v44 = vpop.permute.xlu1 %1887  ;;  %3421 = vpow2.f32 %v1407_v4 }
 0x382   : > { %v2738_v5 = vsel %vm2737_vm13, %v2736_v63, %v1733_v31  ;;  %v1768_v10 = vadd.f32 %v1767_v60, %v1766_v59  ;;  %v1803_v14 = vadd.f32 %v1802_v32, %v1801_v36  ;;  %3275 = vset.pattern.permute.xlu1 %v5234_v30  ;;  %v1895_v45 = vmul.f32 %v5236_v11, %v1888_v44  ;;  %v5238_v36 = vld [vmem:[#allocation36_spill] sm:$0xff]  ;;  %v3416_v15 = vpop.eup %3415  ;;  %v4595_v31 = vpop.permute.xlu0 %2516 }
 0x383   : > { %v4583_v52 = vadd.f32 %v1860_v16, %v1858_v57  ;;  %2312 = vperm.xlu1 %3275, %v3785_v50   ;;  %v5237_v63 = vmov 14   ;;  %v1411_v59 = vmul.f32 1.442695, %v1318_v38  ;;  %v1320_v2 = vmul.f32 %v5238_v36, %v4445_v20 }
 0x384   : > { %v1769_v34 = vrot.slane %v1768_v10, 1  ;;  %v1804_v49 = vrot.slane %v1803_v14, 2  ;;  %v1322_v38 = vmul.f32 %v5240_v41, %v4445_v20  ;;  %v5246_v41 = vld [vmem:[#allocation51_spill] sm:$0xff] }
 0x385   : > { %v1897_v54 = vmul.f32 %v3414_v37, %v4583_v52  ;;  %3423 = vpow2.f32 %v1411_v59  ;;  %v1415_v30 = vmul.f32 1.442695, %v1320_v2  ;;  %v5243_v59 = vld [vmem:[#allocation46_spill] sm:$0xff] }
 0x386   : > { %v1770_v17 = vadd.f32 %v1769_v34, %v1768_v10  ;;  %v1805_v27 = vadd.f32 %v1804_v49, %v1803_v14  ;;  %v1925_v56 = vpop.permute.xlu1 %1924  ;;  %v4613_v11 = vpop.permute.xlu0 %2627 }
 0x387   : > { %v4590_v23 = vadd.f32 %v1897_v54, %v1895_v45  ;;  %3277 = vset.pattern.permute.xlu1 %v5237_v63  ;;  %v1932_v57 = vmul.f32 %v5239_v53, %v1925_v56  ;;  %3425 = vpow2.f32 %v1415_v30  ;;  %v5242_v54 = vld [vmem:[#allocation44_spill] sm:$0xff] }
 0x388   : > { %v1806_v60 = vrot.slane %v1805_v27, 1  ;;  %v2739_v32 = vsel %vm548_vm3, %v2738_v5, %v1770_v17  ;;  %2090 = vperm.xlu1 %3277, %v3785_v50   ;;  %v3418_v4 = vpop.eup %3417  ;;  %v5241_v5 = vld [vmem:[#allocation42_spill] sm:$0xff]  ;;  %v1324_v17 = vmul.f32 %v5242_v54, %v4445_v20 }
 0x389   : > { %v1934_v16 = vmul.f32 %v3416_v15, %v4590_v23  ;;  %v1969_v34 = vmul.f32 %v5241_v5, %v4520_v25 }
 0x38a   : > { %v1807_v44 = vadd.f32 %v1806_v60, %v1805_v27  ;;  %v1419_v27 = vmul.f32 1.442695, %v1322_v38  ;;  %v3420_v56 = vpop.eup %3419  ;;  %v4622_v25 = vpop.permute.xlu0 %1905  ;;  %v1423_v15 = vmul.f32 1.442695, %v1324_v17  ;;  %v5244_v60 = vld [vmem:[#allocation48_spill] sm:$0xff]  ;;  %v1328_v38 = vmul.f32 %v5246_v41, %v4445_v20 }
 0x38b   : > { %v4601_v10 = vadd.f32 %v1934_v16, %v1932_v57  ;;  %v1999_v14 = vpop.permute.xlu1 %1998  ;;  %v5245_v57 = vld [vmem:[#allocation50_spill] sm:$0xff] }
 0x38c   : > { %v4606_v37 = vsel %vm515_vm2, %v2739_v32, %v1807_v44  ;;  %3278 = vset.pattern.permute.xlu1 %v5197_v48  ;;  %v2006_v48 = vmul.f32 %v5243_v59, %v1999_v14  ;;  %3427 = vpow2.f32 %v1419_v27  ;;  %v1326_v32 = vmul.f32 %v5244_v60, %v4445_v20 }
 0x38d   : > { %v1971_v49 = vmul.f32 %v3418_v4, %v4601_v10  ;;  %2349 = vperm.xlu1 %3278, %v3785_v50   ;;  %3429 = vpow2.f32 %v1423_v15 }
 0x38e   : > { %v3422_v53 = vpop.eup %3421  ;;  %v1427_v30 = vmul.f32 1.442695, %v1326_v32  ;;  %v2202_v5 = vpop.permute.xlu0 %2201 }
 0x38f   : > { %v4615_v45 = vadd.f32 %v1971_v49, %v1969_v34  ;;  %v5247_v34 = vld [vmem:[#allocation53_spill] sm:$0xff] }
 0x390   : > { %v2036_v63 = vpop.permute.xlu1 %2035  ;;  %v2080_v49 = vmul.f32 %v5247_v34, %v4536_v55  ;;  %3431 = vpow2.f32 %v1427_v30  ;;  %v5252_v30 = vld [vmem:[#allocation58_spill] sm:$0xff]  ;;  %v5253_v34 = vld [vmem:[#allocation59_spill] sm:$0xff] }
 0x391   : > { %v2008_v36 = vmul.f32 %v3420_v56, %v4615_v45  ;;  %3280 = vset.pattern.permute.xlu1 %v5151_v8  ;;  %v2043_v16 = vmul.f32 %v5245_v57, %v2036_v63  ;;  %v1431_v63 = vmul.f32 1.442695, %v1328_v38 }
 0x392   : > { %1831 = vperm.xlu1 %3280, %v3785_v50   ;;  %v3424_v4 = vpop.eup %3423  ;;  %v4648_v55 = vpop.permute.xlu0 %1979 }
 0x393   : > { %v4625_v2 = vadd.f32 %v2008_v36, %v2006_v48  ;;  %v5249_v48 = vld [vmem:[#allocation56_spill] sm:$0xff]  ;;  %3433 = vpow2.f32 %v1431_v63  ;;  %v2191_v63 = vmul.f32 %v4221_v40, %v4550_v51 }
 0x394   : > { %v3426_v59 = vpop.eup %3425 }
 0x395   : > { %v2045_v44 = vmul.f32 %v3422_v53, %v4625_v2  ;;  %v2110_v14 = vpop.permute.xlu1 %2109 }
 0x396   : > { %3281 = vset.pattern.permute.xlu1 %v5190_v24  ;;  %v5248_v24 = vld [vmem:[#allocation55_spill] sm:$0xff]  ;;  %v2117_v36 = vmul.f32 %v5249_v48, %v2110_v14 }
 0x397   : > { %v4632_v8 = vadd.f32 %v2045_v44, %v2043_v16  ;;  %2127 = vperm.xlu1 %3281, %v3785_v50   ;;  %v1330_v56 = vmul.f32 %v5248_v24, %v4445_v20  ;;  %v5251_v44 = vmov 23   ;;  %v4662_v24 = vpop.permute.xlu0 %2016  ;;  %v5255_v48 = vld [vmem:[#allocation63_spill] sm:$0xff] }
 0x399   : > { %v2082_v54 = vmul.f32 %v3424_v4, %v4632_v8  ;;  %v1435_v53 = vmul.f32 1.442695, %v1330_v56  ;;  %v3428_v16 = vpop.eup %3427 }
 0x39a   : > { %v2147_v17 = vpop.permute.xlu1 %2146 }
 0x39b   : > { %v4640_v27 = vadd.f32 %v2082_v54, %v2080_v49  ;;  %3283 = vset.pattern.permute.xlu1 %v5161_v35  ;;  %v5250_v35 = vld [vmem:[#allocation57_spill] sm:$0xff]  ;;  %v2154_v41 = vmul.f32 %v5252_v30, %v2147_v17  ;;  %3435 = vpow2.f32 %v1435_v53  ;;  %v1334_v49 = vmul.f32 %v5253_v34, %v4445_v20  ;;  %v3430_v54 = vpop.eup %3429  ;;  %v4674_v30 = vpop.permute.xlu0 %2701 }
 0x39c   : > { %2682 = vperm.xlu1 %3283, %v3785_v50   ;;  %v1332_v57 = vmul.f32 %v5250_v35, %v4445_v20 }
 0x39d   : > { %v2119_v15 = vmul.f32 %v3426_v59, %v4640_v27  ;;  %v5254_v59 = vld [vmem:[#allocation7_spill] sm:$0xff]  ;;  %v1443_v53 = vmul.f32 1.442695, %v1334_v49  ;;  %v3432_v35 = vpop.eup %3431 }
 0x39e   : > { %v1439_v4 = vmul.f32 1.442695, %v1332_v57 }
 0x39f   : > { %v4650_v60 = vadd.f32 %v2119_v15, %v2117_v36  ;;  %v2221_v32 = vpop.permute.xlu1 %2220  ;;  %v2204_v36 = vmul.f32 %v4399_v3, %v5255_v48 }
 0x3a0   : > { %3284 = vset.pattern.permute.xlu1 %v5251_v44  ;;  %3437 = vpow2.f32 %v1439_v4  ;;  %v3434_v4 = vpop.eup %3433 }
 0x3a1   : > { %v2156_v38 = vmul.f32 %v3428_v16, %v4650_v60  ;;  %2423 = vperm.xlu1 %3284, %v3785_v50   ;;  %v1336_v50 = vmul.f32 %v4228_v62, %v4445_v20  ;;  %v5256_v16 = vld [vmem:[#allocation61_spill] sm:$0xff]  ;;  %v2206_v62 = vsel %vm605_vm4, %v2204_v36, 0.0  ;;  %3439 = vpow2.f32 %v1443_v53  ;;  %v5260_v53 = vld [vmem:[#allocation66_spill] sm:$0xff] }
 0x3a2   : > { %v2228_v44 = vmul.f32 %v5256_v16, %v2221_v32 }
 0x3a3   : > { %v4658_v14 = vadd.f32 %v2156_v38, %v2154_v41  ;;  %v5257_v41 = vld [vmem:[#allocation62_spill] sm:$0xff] }
 0x3a4   : > { %v2258_v56 = vpop.permute.xlu1 %2257  ;;  %v1338_v38 = vmul.f32 %v5257_v41, %v4445_v20  ;;  %v5261_v41 = vld [vmem:[#allocation68_spill] sm:$0xff] }
 0x3a5   : > { %v2193_v17 = vmul.f32 %v3430_v54, %v4658_v14  ;;  %3285 = vset.pattern.permute.xlu1 %v5163_v39  ;;  %v1447_v39 = vmul.f32 1.442695, %v1336_v50  ;;  %v5259_v50 = vld [vmem:[#allocation65_spill] sm:$0xff] }
 0x3a6   : > { %2715 = vperm.xlu1 %3285, %v5254_v59   ;;  %v1451_v59 = vmul.f32 1.442695, %v1338_v38  ;;  %v1340_v48 = vmul.f32 %v5259_v50, %v4445_v20  ;;  %v5263_v50 = vld [vmem:[#allocation39_spill] sm:$0xff] }
 0x3a7   : > { %v2195_v15 = vadd.f32 %v2193_v17, %v2191_v63  ;;  %3441 = vpow2.f32 %v1447_v39 }
 0x3a8   : > { %v3436_v36 = vpop.eup %3435  ;;  %3443 = vpow2.f32 %v1451_v59 }
 0x3a9   : > { %v2205_v57 = vmul.f32 %v2202_v5, %v2195_v15  ;;  %v2230_v40 = vmul.f32 %v3432_v35, %v2195_v15  ;;  %v2332_v51 = vpop.permute.xlu1 %2331  ;;  %v5258_v5 = vld [vmem:[#allocation35_spill] sm:$0xff]  ;;  %v4690_v15 = vpop.permute.xlu0 %2608  ;;  %v2302_v35 = vmul.f32 %v5260_v53, %v4564_v47  ;;  %v3295_v47 = vld [vmem:[%s4985_s10 + $0x18] sm:$0xff]   ;;  %v1346_v53 = vmul.f32 %v4308_v28, %v4445_v20  ;;  %v5264_v28 = vld [vmem:[#allocation41_spill] sm:$0xff] }
 0x3aa   : > { %v2265_v32 = vmul.f32 %v5258_v5, %v2258_v56  ;;  %v2339_v38 = vmul.f32 %v5261_v41, %v2332_v51  ;;  %3108 = vmatprep.subr.bf16.mxu1 %v3295_v47  ;;  %v2413_v41 = vmul.f32 %v4318_v33, %v4579_v7  ;;  %v3298_v33 = vld [vmem:[%s4985_s10] sm:$0xff]   ;;  %v2391_v7 = vsel %vm605_vm4, %v4465_v61, 0.0 }
 0x3ab   : > { %v2207_v34 = vsel %vm605_vm4, %v2205_v57, 0.0  ;;  %v4680_v3 = vadd.f32 %v2230_v40, %v2228_v44  ;;  %v1342_v44 = vmul.f32 %v4274_v43, %v4445_v20  ;;  %v1455_v40 = vmul.f32 1.442695, %v1340_v48  ;;  %3109 = vmatpush3.bf16.msra.mxu1 %v3295_v47 }
 0x3ac   : > { %v4682_v49 = vadd.f32 %v2207_v34, %v2206_v62 }
 0x3ad   : > { %v2267_v54 = vmul.f32 %v3434_v4, %v4680_v3  ;;  %v3438_v39 = vpop.eup %3437  ;;  %v4701_v34 = vpop.permute.xlu0 %2645  ;;  %v3296_v4 = vld [vmem:[%s4985_s10 + $0x10] sm:$0xff]   ;;  %3445 = vpow2.f32 %v1455_v40  ;;  %v1459_v43 = vmul.f32 1.442695, %v1342_v44 }
 0x3ae   : > { %v2369_v63 = vpop.permute.xlu1 %2368  ;;  %v3440_v51 = vpop.eup %3439  ;;  %3110 = vmatprep.subr.bf16.mxu1 %v3296_v4 }
 0x3af   : > { %v4686_v17 = vadd.f32 %v2267_v54, %v2265_v32  ;;  %v5262_v32 = vld [vmem:[#allocation69_spill] sm:$0xff]  ;;  %v2376_v48 = vmul.f32 %v5263_v50, %v2369_v63  ;;  %3447 = vpow2.f32 %v1459_v43  ;;  %v1909_v63 = vmul.f32 %v4622_v25, %v4590_v23  ;;  %3111 = vmatpush3.bf16.msra.mxu1 %v3296_v4 }
 0x3b0   : > { %v1344_v54 = vmul.f32 %v5262_v32, %v4445_v20  ;;  %v1908_v32 = vmul.f32 %v4377_v22, %v5264_v28  ;;  %v1348_v43 = vmul.f32 %v4327_v58, %v4445_v20  ;;  %v1983_v58 = vmul.f32 %v4648_v55, %v4615_v45 }
 0x3b1   : > { %v2304_v57 = vmul.f32 %v3436_v36, %v4686_v17  ;;  %v1911_v4 = vsel %vm605_vm4, %v1909_v63, 0.0  ;;  %v2020_v45 = vmul.f32 %v4662_v24, %v4625_v2 }
 0x3b2   : > { %v1463_v44 = vmul.f32 1.442695, %v1344_v54  ;;  %v1467_v54 = vmul.f32 1.442695, %v1346_v53  ;;  %v1910_v61 = vsel %vm605_vm4, %v1908_v32, 0.0 }
 0x3b3   : > { %v4695_v16 = vadd.f32 %v2304_v57, %v2302_v35  ;;  %v2443_v56 = vpop.permute.xlu1 %2442  ;;  %v3297_v35 = vld [vmem:[%s4985_s10 + $0x8] sm:$0xff]   ;;  %v1471_v53 = vmul.f32 1.442695, %v1348_v43  ;;  %v2022_v28 = vsel %vm605_vm4, %v2020_v45, 0.0  ;;  %v2463_v45 = vmul.f32 %v4403_v26, %v4348_v19 }
 0x3b4   : > { %v3442_v40 = vpop.eup %3441  ;;  %3112 = vmatprep.subr.bf16.mxu1 %v3297_v35  ;;  %3449 = vpow2.f32 %v1463_v44  ;;  %v2450_v50 = vmul.f32 %v4334_v12, %v2443_v56  ;;  %v5265_v44 = vld [vmem:[#allocation49_spill] sm:$0xff]  ;;  %v5266_v12 = vld [vmem:[#allocation47_spill] sm:$0xff] }
 0x3b5   : > { %v2341_v62 = vmul.f32 %v3438_v39, %v4695_v16  ;;  %v2387_v39 = vpop.permute.xlu0 %2386  ;;  %v3444_v22 = vpop.eup %3443  ;;  %3113 = vmatpush3.bf16.msra.mxu1 %v3297_v35  ;;  %3451 = vpow2.f32 %v1467_v54 }
 0x3b6   : > { %3114 = vmatprep.subr.bf16.mxu1 %v3298_v33  ;;  %3453 = vpow2.f32 %v1471_v53  ;;  %v5269_v53 = vld [vmem:[#allocation54_spill] sm:$0xff] }
 0x3b7   : > { %v4709_v5 = vadd.f32 %v2341_v62, %v2339_v38 }
 0x3b8   : > { %v2480_v59 = vpop.permute.xlu1 %2479 }
 0x3b9   : > { %v2378_v36 = vmul.f32 %v3440_v51, %v4709_v5  ;;  %3115 = vmatpush3.bf16.msra.mxu1 %v3298_v33 }
 0x3ba   : > { %v3446_v35 = vpop.eup %3445 }
 0x3bb   : > { %v2380_v57 = vadd.f32 %v2378_v36, %v2376_v48 }
 0x3bd   : > { %v2390_v38 = vmul.f32 %v2387_v39, %v2380_v57  ;;  %v2415_v62 = vmul.f32 %v3442_v40, %v2380_v57  ;;  %v2554_v47 = vpop.permute.xlu1 %2553  ;;  %v1350_v57 = vmul.f32 %v4337_v18, %v4445_v20  ;;  %v1982_v40 = vmul.f32 %v4407_v9, %v5265_v44 }
 0x3be   : > { %v4727_v51 = vmul.f32 %v4370_v21, %v2554_v47  ;;  %v1912_v39 = vadd.f32 %v1911_v4, %v1910_v61  ;;  %v1352_v9 = vmul.f32 %v4351_v6, %v4445_v20  ;;  %v2524_v6 = vmul.f32 %v4357_v13, %v4595_v31  ;;  %v5270_v31 = vld [vmem:[#allocation45_spill] sm:$0xff] }
 0x3bf   : > { %v2392_v23 = vsel %vm605_vm4, %v2390_v38, 0.0  ;;  %v4737_v25 = vadd.f32 %v2415_v62, %v2413_v41  ;;  %v5267_v41 = vld [vmem:[#allocation52_spill] sm:$0xff]  ;;  %v1985_v38 = vsel %vm605_vm4, %v1983_v58, 0.0  ;;  %v5268_v62 = vld [vmem:[#allocation43_spill] sm:$0xff]  ;;  %v1475_v2 = vmul.f32 1.442695, %v1350_v57 }
 0x3c0   : > { %v4739_v21 = vadd.f32 %v2392_v23, %v2391_v7  ;;  %v2019_v63 = vmul.f32 %v4415_v1, %v5267_v41  ;;  %v2487_v18 = vmul.f32 %v5268_v62, %v2480_v59  ;;  %v1984_v24 = vsel %vm605_vm4, %v1982_v40, 0.0  ;;  %v3448_v1 = vpop.eup %3447 }
 0x3c1   : > { %v2452_v48 = vmul.f32 %v3444_v22, %v4737_v25  ;;  %v1913_v54 = vrot.slane %v1912_v39, 4  ;;  %v1986_v7 = vadd.f32 %v1985_v38, %v1984_v24  ;;  %v1479_v22 = vmul.f32 1.442695, %v1352_v9  ;;  %v3450_v58 = vpop.eup %3449 }
 0x3c2   : > { %v2591_v36 = vpop.permute.xlu1 %2590  ;;  %v2021_v33 = vsel %vm605_vm4, %v2019_v63, 0.0  ;;  %3455 = vpow2.f32 %v1475_v2  ;;  %v1873_v57 = vsel %vm605_vm4, %v5269_v53, 0.0  ;;  %v3452_v13 = vpop.eup %3451  ;;  %v1945_v40 = vmul.f32 %v4389_v42, %v5270_v31  ;;  %v5271_v63 = vld [vmem:[#allocation60_spill] sm:$0xff] }
 0x3c3   : > { %v4753_v55 = vadd.f32 %v2452_v48, %v2450_v50  ;;  %v2598_v56 = vmul.f32 %v5266_v12, %v2591_v36  ;;  %v2023_v23 = vadd.f32 %v2022_v28, %v2021_v33  ;;  %v1914_v50 = vadd.f32 %v1913_v54, %v1912_v39  ;;  %v3454_v28 = vpop.eup %3453  ;;  %v5272_v33 = vld [vmem:[#allocation77_spill] sm:$0xff] }
 0x3c4   : > { %v1987_v48 = vrot.slane %v1986_v7, 4  ;;  %3457 = vpow2.f32 %v1479_v22  ;;  %v2169_v38 = vsel %vm605_vm4, %v5271_v63, 0.0  ;;  %v2209_v42 = vrot.slane %v4682_v49, 4  ;;  %v5273_v22 = vld [vmem:[#allocation84_spill] sm:$0xff] }
 0x3c5   : > { %v2489_v47 = vmul.f32 %v3446_v35, %v4753_v55  ;;  %v2024_v44 = vrot.slane %v2023_v23, 4  ;;  %v1915_v39 = vrot.slane %v1914_v50, 2  ;;  %v1947_v26 = vsel %vm605_vm4, %v1945_v40, 0.0 }
 0x3c6   : > { %v1988_v41 = vadd.f32 %v1987_v48, %v1986_v7  ;;  %v2613_v2 = vsel %vm605_vm4, %v4438_v29, 0.0  ;;  %v2210_v29 = vadd.f32 %v2209_v42, %v4682_v49 }
 0x3c7   : > { %v4765_v32 = vadd.f32 %v2489_v47, %v2487_v18  ;;  %v2665_v43 = vpop.permute.xlu1 %2664  ;;  %v2025_v47 = vadd.f32 %v2024_v44, %v2023_v23 }
 0x3c8   : > { %v4768_v59 = vmul.f32 %v4396_v0, %v2665_v43  ;;  %v1916_v43 = vadd.f32 %v1915_v39, %v1914_v50 }
 0x3c9   : > { %v2526_v20 = vmul.f32 %v3448_v1, %v4765_v32  ;;  %v1989_v1 = vrot.slane %v1988_v41, 2  ;;  %v2026_v48 = vrot.slane %v2025_v47, 2 }
 0x3cb   : > { %v4774_v4 = vadd.f32 %v2526_v20, %v2524_v6  ;;  %v2635_v6 = vmul.f32 %v5272_v33, %v4613_v11  ;;  %v1917_v11 = vrot.slane %v1916_v43, 1  ;;  %v1990_v44 = vadd.f32 %v1989_v1, %v1988_v41 }
 0x3cc   : > { %v1869_v61 = vpop.permute.xlu1 %1868 }
 0x3cd   : > { %v2563_v36 = vmul.f32 %v3450_v58, %v4774_v4  ;;  %v1872_v0 = vmul.f32 %v1869_v61, %v4583_v52  ;;  %v2650_v58 = vsel %vm605_vm4, %v5273_v22, 0.0 }
 0x3cf   : > { %v4785_v12 = vadd.f32 %v2563_v36, %v4727_v51  ;;  %v1874_v35 = vsel %vm605_vm4, %v1872_v0, 0.0  ;;  %v2465_v51 = vsel %vm605_vm4, %v2463_v45, 0.0 }
 0x3d0   : > { %v1875_v52 = vadd.f32 %v1874_v35, %v1873_v57  ;;  %v3456_v57 = vpop.eup %3455  ;;  %v5274_v35 = vld [vmem:[#allocation80_spill] sm:$0xff] }
 0x3d1   : > { %v2600_v62 = vmul.f32 %v3452_v13, %v4785_v12  ;;  %v1943_v18 = vpop.permute.xlu1 %1942  ;;  %v2709_v39 = vmul.f32 %v5274_v35, %v4674_v30 }
 0x3d2   : > { %v1876_v9 = vrot.slane %v1875_v52, 4  ;;  %v1946_v19 = vmul.f32 %v1943_v18, %v4601_v10  ;;  %v2027_v18 = vadd.f32 %v2026_v48, %v2025_v47  ;;  %v5275_v48 = vld [vmem:[#allocation74_spill] sm:$0xff] }
 0x3d3   : > { %v2602_v24 = vadd.f32 %v2600_v62, %v2598_v56 }
 0x3d4   : > { %v1877_v54 = vadd.f32 %v1876_v9, %v1875_v52  ;;  %v1948_v7 = vsel %vm605_vm4, %v1946_v19, 0.0  ;;  %v2211_v52 = vrot.slane %v2210_v29, 2 }
 0x3d5   : > { %v2612_v20 = vmul.f32 %v4690_v15, %v2602_v24  ;;  %v2637_v10 = vmul.f32 %v3454_v28, %v2602_v24  ;;  %v1949_v23 = vadd.f32 %v1948_v7, %v1947_v26  ;;  %v1918_v26 = vadd.f32 %v1917_v11, %v1916_v43 }
 0x3d6   : > { %v1878_v56 = vrot.slane %v1877_v54, 2  ;;  %v2165_v61 = vpop.permute.xlu1 %2164  ;;  %v1991_v28 = vrot.slane %v1990_v44, 1 }
 0x3d7   : > { %v2614_v50 = vsel %vm605_vm4, %v2612_v20, 0.0  ;;  %v1950_v36 = vrot.slane %v1949_v23, 4  ;;  %v2168_v0 = vmul.f32 %v2165_v61, %v4658_v14  ;;  %v2639_v53 = vadd.f32 %v2637_v10, %v2635_v6  ;;  %v3458_v14 = vpop.eup %3457  ;;  %v5277_v61 = vld [vmem:[#allocation78_spill] sm:$0xff] }
 0x3d8   : > { %v4806_v15 = vadd.f32 %v2614_v50, %v2613_v2  ;;  %v1879_v13 = vadd.f32 %v1878_v56, %v1877_v54  ;;  %v2212_v54 = vadd.f32 %v2211_v52, %v2210_v29  ;;  %v2028_v6 = vrot.slane %v2027_v18, 1  ;;  %v5276_v29 = vld [vmem:[#allocation64_spill] sm:$0xff] }
 0x3d9   : > { %v1951_v31 = vadd.f32 %v1950_v36, %v1949_v23  ;;  %v2170_v40 = vsel %vm605_vm4, %v2168_v0, 0.0  ;;  %v2649_v45 = vmul.f32 %v4701_v34, %v2639_v53  ;;  %v2674_v49 = vmul.f32 %v3456_v57, %v2639_v53 }
 0x3da   : > { %v1880_v63 = vrot.slane %v1879_v13, 1  ;;  %v2171_v62 = vadd.f32 %v2170_v40, %v2169_v38  ;;  %v2502_v56 = vsel %vm605_vm4, %v5275_v48, 0.0  ;;  %v2241_v50 = vmul.f32 %v5277_v61, %v5276_v29 }
 0x3db   : > { %v1952_v42 = vrot.slane %v1951_v31, 2  ;;  %v2461_v9 = vpop.permute.xlu1 %2460  ;;  %v2651_v41 = vsel %vm605_vm4, %v2649_v45, 0.0  ;;  %v4814_v19 = vadd.f32 %v2674_v49, %v4768_v59  ;;  %v1992_v36 = vadd.f32 %v1991_v28, %v1990_v44 }
 0x3dc   : > { %v1881_v2 = vadd.f32 %v1880_v63, %v1879_v13  ;;  %v2172_v24 = vrot.slane %v2171_v62, 4  ;;  %v2464_v34 = vmul.f32 %v2461_v9, %v4753_v55  ;;  %v4817_v30 = vadd.f32 %v2651_v41, %v2650_v58 }
 0x3dd   : > { %v1953_v1 = vadd.f32 %v1952_v42, %v1951_v31  ;;  %v2711_v38 = vmul.f32 %v3458_v14, %v4814_v19  ;;  %v2213_v0 = vrot.slane %v2212_v54, 1  ;;  %v2029_v57 = vadd.f32 %v2028_v6, %v2027_v18 }
 0x3de   : > { %v2742_v47 = vsel %vm2733_vm12, %v1881_v2, %v1918_v26  ;;  %v2173_v7 = vadd.f32 %v2172_v24, %v2171_v62  ;;  %v2466_v33 = vsel %vm605_vm4, %v2464_v34, 0.0  ;;  %v2243_v62 = vsel %vm605_vm4, %v2241_v50, 0.0 }
 0x3df   : > { %v1954_v59 = vrot.slane %v1953_v1, 1  ;;  %v2467_v20 = vadd.f32 %v2466_v33, %v2465_v51  ;;  %v4822_v43 = vadd.f32 %v2711_v38, %v2709_v39  ;;  %v2214_v39 = vadd.f32 %v2213_v0, %v2212_v54  ;;  %v5278_v38 = vld [vmem:[#allocation67_spill] sm:$0xff] }
 0x3e0   : > { %v2174_v10 = vrot.slane %v2173_v7, 2  ;;  %v2498_v23 = vpop.permute.xlu1 %2497  ;;  %v5279_v54 = vld [vmem:[#allocation79_spill] sm:$0xff]  ;;  %v2653_v0 = vrot.slane %v4817_v30, 4 }
 0x3e1   : > { %v1955_v55 = vadd.f32 %v1954_v59, %v1953_v1  ;;  %v2468_v22 = vrot.slane %v2467_v20, 4  ;;  %v2501_v58 = vmul.f32 %v2498_v23, %v4765_v32 }
 0x3e2   : > { %v2175_v53 = vadd.f32 %v2174_v10, %v2173_v7  ;;  %v5280_v7 = vld [vmem:[#allocation75_spill] sm:$0xff] }
 0x3e3   : > { %v2743_v51 = vsel %vm753_vm5, %v2742_v47, %v1955_v55  ;;  %v2469_v11 = vadd.f32 %v2468_v22, %v2467_v20  ;;  %v2503_v13 = vsel %vm605_vm4, %v2501_v58, 0.0  ;;  %v2278_v47 = vmul.f32 %v5279_v54, %v5278_v38 }
 0x3e4   : > { %v2744_v31 = vsel %vm440_vm0, %v2743_v51, %v1992_v36  ;;  %v2176_v40 = vrot.slane %v2175_v53, 1  ;;  %v2504_v45 = vadd.f32 %v2503_v13, %v2502_v56  ;;  %v2539_v33 = vsel %vm605_vm4, %v5280_v7, 0.0 }
 0x3e5   : > { %v2470_v32 = vrot.slane %v2469_v11, 2  ;;  %v2239_v49 = vpop.permute.xlu1 %2238  ;;  %v4833_v35 = vsel %vm2737_vm13, %v2744_v31, %v2029_v57  ;;  %v2280_v48 = vsel %vm605_vm4, %v2278_v47, 0.0  ;;  %v2616_v56 = vrot.slane %v4806_v15, 4 }
 0x3e6   : > { %v2177_v52 = vadd.f32 %v2176_v40, %v2175_v53  ;;  %v2505_v44 = vrot.slane %v2504_v45, 4  ;;  %v2242_v63 = vmul.f32 %v2239_v49, %v4680_v3 }
 0x3e7   : > { %v2471_v18 = vadd.f32 %v2470_v32, %v2469_v11  ;;  %v2617_v13 = vadd.f32 %v2616_v56, %v4806_v15  ;;  %v2654_v32 = vadd.f32 %v2653_v0, %v4817_v30 }
 0x3e8   : > { %v2749_v14 = vsel %vm2733_vm12, %v2177_v52, %v2214_v39  ;;  %v2506_v42 = vadd.f32 %v2505_v44, %v2504_v45  ;;  %v2244_v9 = vsel %vm605_vm4, %v2242_v63, 0.0  ;;  %v5281_v52 = vld [vmem:[#allocation76_spill] sm:$0xff] }
 0x3e9   : > { %v2245_v41 = vadd.f32 %v2244_v9, %v2243_v62  ;;  %v2472_v28 = vrot.slane %v2471_v18, 1  ;;  %v2576_v15 = vsel %vm605_vm4, %v5281_v52, 0.0  ;;  %v2618_v62 = vrot.slane %v2617_v13, 2 }
 0x3ea   : > { %v2507_v26 = vrot.slane %v2506_v42, 2  ;;  %v2535_v2 = vpop.permute.xlu1 %2534 }
 0x3eb   : > { %v2246_v24 = vrot.slane %v2245_v41, 4  ;;  %v2538_v34 = vmul.f32 %v2535_v2, %v4774_v4  ;;  %v2473_v55 = vadd.f32 %v2472_v28, %v2471_v18  ;;  %v2655_v2 = vrot.slane %v2654_v32, 2 }
 0x3ec   : > { %v2508_v1 = vadd.f32 %v2507_v26, %v2506_v42  ;;  %v4866_v42 = vld [vmem:[%s4859_s29] sm:$0xff]   ;;  %v2619_v47 = vadd.f32 %v2618_v62, %v2617_v13 }
 0x3ed   : > { %v2247_v3 = vadd.f32 %v2246_v24, %v2245_v41  ;;  %v2540_v6 = vsel %vm605_vm4, %v2538_v34, 0.0  ;;  %v5282_v24 = vld [vmem:[#allocation82_spill] sm:$0xff]  ;;  %v3063_v54 = vunpack.c.l.bf16 %v4866_v42 }
 0x3ee   : > { %v2509_v59 = vrot.slane %v2508_v1, 1  ;;  %v2541_v20 = vadd.f32 %v2540_v6, %v2539_v33 }
 0x3ef   : > { %v2248_v10 = vrot.slane %v2247_v3, 2  ;;  %v2276_v23 = vpop.permute.xlu1 %2275 }
 0x3f0   : > { %v2510_v22 = vadd.f32 %v2509_v59, %v2508_v1  ;;  %v2542_v58 = vrot.slane %v2541_v20, 4  ;;  %v2279_v4 = vmul.f32 %v2276_v23, %v4686_v17  ;;  %v2656_v59 = vadd.f32 %v2655_v2, %v2654_v32  ;;  %v4897_v2 = vld [vmem:[%s4859_s29 + $0x8] sm:$0xff]  }
 0x3f1   : > { %v2249_v29 = vadd.f32 %v2248_v10, %v2247_v3  ;;  %v3064_v23 = vunpack.c.h.bf16 %v4866_v42 }
 0x3f2   : > { %v2756_v61 = vsel %vm2733_vm12, %v2473_v55, %v2510_v22  ;;  %v2543_v50 = vadd.f32 %v2542_v58, %v2541_v20  ;;  %v2281_v36 = vsel %vm605_vm4, %v2279_v4, 0.0  ;;  %v5283_v55 = vld [vmem:[#allocation70_spill] sm:$0xff]  ;;  %v3037_v4 = vmul.f32 -1.442695, %v3063_v54 }
 0x3f3   : > { %v2250_v53 = vrot.slane %v2249_v29, 1  ;;  %v2282_v57 = vadd.f32 %v2281_v36, %v2280_v48  ;;  %v2317_v22 = vsel %vm605_vm4, %v5283_v55, 0.0  ;;  %v2620_v48 = vrot.slane %v2619_v47, 1 }
 0x3f4   : > { %v2544_v51 = vrot.slane %v2543_v50, 2  ;;  %v2572_v11 = vpop.permute.xlu1 %2571  ;;  %v2657_v0 = vrot.slane %v2656_v59, 1  ;;  %3459 = vpow2.f32 %v3037_v4 }
 0x3f5   : > { %v2251_v17 = vadd.f32 %v2250_v53, %v2249_v29  ;;  %v2283_v31 = vrot.slane %v2282_v57, 4  ;;  %v2575_v40 = vmul.f32 %v2572_v11, %v4785_v12 }
 0x3f6   : > { %v2545_v45 = vadd.f32 %v2544_v51, %v2543_v50  ;;  %v5284_v51 = vld [vmem:[#allocation83_spill] sm:$0xff] }
 0x3f7   : > { %v2750_v49 = vsel %vm753_vm5, %v2749_v14, %v2251_v17  ;;  %v2284_v39 = vadd.f32 %v2283_v31, %v2282_v57  ;;  %v2577_v44 = vsel %vm605_vm4, %v2575_v40, 0.0  ;;  %v2058_v14 = vsel %vm605_vm4, %v5282_v24, 0.0  ;;  %v5285_v24 = vld [vmem:[#allocation71_spill] sm:$0xff] }
 0x3f8   : > { %v2546_v63 = vrot.slane %v2545_v45, 1  ;;  %v2578_v12 = vadd.f32 %v2577_v44, %v2576_v15  ;;  %v3038_v57 = vmul.f32 -1.442695, %v3064_v23  ;;  %v2095_v11 = vsel %vm605_vm4, %v5284_v51, 0.0 }
 0x3f9   : > { %v2285_v18 = vrot.slane %v2284_v39, 2  ;;  %v2054_v30 = vpop.permute.xlu1 %2053  ;;  %v2394_v40 = vrot.slane %v4739_v21, 4  ;;  %v2658_v15 = vadd.f32 %v2657_v0, %v2656_v59 }
 0x3fa   : > { %v2547_v9 = vadd.f32 %v2546_v63, %v2545_v45  ;;  %v2579_v41 = vrot.slane %v2578_v12, 4  ;;  %v2057_v26 = vmul.f32 %v2054_v30, %v4632_v8  ;;  %v2621_v45 = vadd.f32 %v2620_v48, %v2619_v47 }
 0x3fb   : > { %v2286_v34 = vadd.f32 %v2285_v18, %v2284_v39  ;;  %3461 = vpow2.f32 %v3038_v57  ;;  %v2395_v30 = vadd.f32 %v2394_v40, %v4739_v21 }
 0x3fc   : > { %v2757_v28 = vsel %vm753_vm5, %v2756_v61, %v2547_v9  ;;  %v2580_v1 = vadd.f32 %v2579_v41, %v2578_v12  ;;  %v2059_v38 = vsel %vm605_vm4, %v2057_v26, 0.0 }
 0x3fd   : > { %v2287_v3 = vrot.slane %v2286_v34, 1  ;;  %v2060_v7 = vadd.f32 %v2059_v38, %v2058_v14  ;;  %v2354_v14 = vsel %vm605_vm4, %v5285_v24, 0.0  ;;  %v4927_v24 = vld [vmem:[%s4984_s9] ss:$0 sm:$0xff] }
 0x3fe   : > { %v2581_v33 = vrot.slane %v2580_v1, 2  ;;  %v2313_v6 = vpop.permute.xlu1 %2312 }
 0x3ff   : > { %v2288_v20 = vadd.f32 %v2287_v3, %v2286_v34  ;;  %v2061_v8 = vrot.slane %v2060_v7, 4  ;;  %v2316_v10 = vmul.f32 %v2313_v6, %v4695_v16  ;;  %v3067_v6 = vunpack.c.l.bf16 %v4897_v2 }
 0x400   : > { %v2582_v58 = vadd.f32 %v2581_v33, %v2580_v1  ;;  %v5287_v1 = vld [vmem:[#allocation85_spill] sm:$0xff] }
 0x401   : > { %v2751_v56 = vsel %vm440_vm0, %v2750_v49, %v2288_v20  ;;  %v2062_v29 = vadd.f32 %v2061_v8, %v2060_v7  ;;  %v2318_v61 = vsel %vm605_vm4, %v2316_v10, 0.0 }
 0x402   : > { %v2583_v50 = vrot.slane %v2582_v58, 1  ;;  %v2319_v36 = vadd.f32 %v2318_v61, %v2317_v22  ;;  %v3068_v22 = vunpack.c.h.bf16 %v4897_v2  ;;  %v3039_v61 = vmul.f32 -1.442695, %v3067_v6  ;;  %v2835_v2 = vld [vmem:[%s421_s15] sm:$0xff] }
 0x403   : > { %v2063_v53 = vrot.slane %v2062_v29, 2  ;;  %v2091_v16 = vpop.permute.xlu1 %2090 }
 0x404   : > { %v2584_v13 = vadd.f32 %v2583_v50, %v2582_v58  ;;  %v2320_v17 = vrot.slane %v2319_v36, 4  ;;  %v2094_v31 = vmul.f32 %v2091_v16, %v4640_v27  ;;  %3463 = vpow2.f32 %v3039_v61 }
 0x405   : > { %v2064_v32 = vadd.f32 %v2063_v53, %v2062_v29  ;;  %v3460_v53 = vpop.eup %3459 }
 0x406   : > { %v2758_v49 = vsel %vm440_vm0, %v2757_v28, %v2584_v13  ;;  %v2321_v39 = vadd.f32 %v2320_v17, %v2319_v36  ;;  %v2096_v52 = vsel %vm605_vm4, %v2094_v31, 0.0  ;;  %v5286_v28 = vld [vmem:[#allocation32_spill] sm:$0xff] }
 0x407   : > { %v2759_v44 = vsel %vm2737_vm13, %v2758_v49, %v2621_v45  ;;  %v2065_v63 = vrot.slane %v2064_v32, 1  ;;  %v2097_v12 = vadd.f32 %v2096_v52, %v2095_v11  ;;  %v1834_v38 = vmul.f32 %v5287_v1, %v5286_v28  ;;  %v5288_v17 = vld [vmem:[#allocation72_spill] sm:$0xff] }
 0x408   : > { %v2322_v62 = vrot.slane %v2321_v39, 2  ;;  %v2350_v18 = vpop.permute.xlu1 %2349  ;;  %v4892_v27 = vsel %vm548_vm3, %v2759_v44, %v2658_v15  ;;  %v2132_v31 = vsel %vm605_vm4, %v5288_v17, 0.0  ;;  %v2805_v44 = vadd.f32 1.0, %v3460_v53  ;;  %v3476_v53 = vld [vmem:[#allocation2 + $0x8] sm:$0xff] }
 0x409   : > { %v2066_v9 = vadd.f32 %v2065_v63, %v2064_v32  ;;  %v2098_v41 = vrot.slane %v2097_v12, 4  ;;  %v2353_v26 = vmul.f32 %v2350_v18, %v4709_v5  ;;  %v2396_v5 = vrot.slane %v2395_v30, 2 }
 0x40a   : > { %v2323_v34 = vadd.f32 %v2322_v62, %v2321_v39  ;;  %v1836_v58 = vsel %vm605_vm4, %v1834_v38, 0.0 }
 0x40b   : > { %v2746_v47 = vsel %vm548_vm3, %v4833_v35, %v2066_v9  ;;  %v2099_v3 = vadd.f32 %v2098_v41, %v2097_v12  ;;  %v2355_v7 = vsel %vm605_vm4, %v2353_v26, 0.0  ;;  %v2397_v50 = vadd.f32 %v2396_v5, %v2395_v30  ;;  %v5289_v9 = vld [vmem:[#allocation86_spill] sm:$0xff] }
 0x40c   : > { %v2324_v21 = vrot.slane %v2323_v34, 1  ;;  %v2356_v33 = vadd.f32 %v2355_v7, %v2354_v14  ;;  %v2687_v41 = vsel %vm605_vm4, %v5289_v9, 0.0 }
 0x40d   : > { %v2100_v59 = vrot.slane %v2099_v3, 2  ;;  %v1832_v20 = vpop.permute.xlu1 %1831  ;;  %v2398_v45 = vrot.slane %v2397_v50, 1 }
 0x40e   : > { %v2325_v8 = vadd.f32 %v2324_v21, %v2323_v34  ;;  %v2357_v10 = vrot.slane %v2356_v33, 4  ;;  %v1835_v55 = vmul.f32 %v1832_v20, %v4574_v46  ;;  %v3040_v46 = vmul.f32 -1.442695, %v3068_v22 }
 0x40f   : > { %v2101_v4 = vadd.f32 %v2100_v59, %v2099_v3  ;;  %v2399_v26 = vadd.f32 %v2398_v45, %v2397_v50  ;;  %v3475_v3 = vld [vmem:[#allocation2] sm:$0xff] }
 0x410   : > { %v2752_v35 = vsel %vm2737_vm13, %v2751_v56, %v2325_v8  ;;  %v2358_v48 = vadd.f32 %v2357_v10, %v2356_v33  ;;  %v1837_v29 = vsel %vm605_vm4, %v1835_v55, 0.0  ;;  %v3462_v56 = vpop.eup %3461  ;;  %3465 = vpow2.f32 %v3040_v46  ;;  %v5290_v10 = vld [vmem:[#allocation73_spill] sm:$0xff] }
 0x411   : > { %v2102_v36 = vrot.slane %v2101_v4, 1  ;;  %v1838_v0 = vadd.f32 %v1837_v29, %v1836_v58  ;;  %v2806_v62 = vadd.f32 1.0, %v3462_v56  ;;  %3467 = vrcp.f32 %v2805_v44  ;;  %v2720_v58 = vpop.permute.xlu0 %2719 }
 0x412   : > { %v2359_v16 = vrot.slane %v2358_v48, 2  ;;  %v2128_v57 = vpop.permute.xlu1 %2127  ;;  %v2769_v7 = vmul.f32 %v3475_v3, %v4927_v24  ;;  %v2428_v55 = vsel %vm605_vm4, %v5290_v10, 0.0 }
 0x413   : > { %v2103_v51 = vadd.f32 %v2102_v36, %v2101_v4  ;;  %v1839_v11 = vrot.slane %v1838_v0, 4  ;;  %v2131_v13 = vmul.f32 %v2128_v57, %v4650_v60  ;;  %3469 = vrcp.f32 %v2806_v62 }
 0x414   : > { %v2360_v40 = vadd.f32 %v2359_v16, %v2358_v48  ;;  %v2723_v36 = vmul.f32 %v2720_v58, %v4822_v43 }
 0x415   : > { %v2747_v32 = vsel %vm515_vm2, %v2746_v47, %v2103_v51  ;;  %v1840_v49 = vadd.f32 %v1839_v11, %v1838_v0  ;;  %v2133_v39 = vsel %vm605_vm4, %v2131_v13, 0.0  ;;  %v3464_v0 = vpop.eup %3463  ;;  %v5291_v11 = vld [vmem:[#allocation81_spill] sm:$0xff] }
 0x416   : > { %v2361_v52 = vrot.slane %v2360_v40, 1  ;;  %v2134_v15 = vadd.f32 %v2133_v39, %v2132_v31  ;;  %v2725_v43 = vsel %vm605_vm4, %v2723_v36, 0.0  ;;  %v2838_v36 = vld [vmem:[%s421_s15 + $0x18] sm:$0xff] }
 0x417   : > { %v1841_v63 = vrot.slane %v1840_v49, 2  ;;  %v2683_v12 = vpop.permute.xlu1 %2682 }
 0x418   : > { %v2362_v60 = vadd.f32 %v2361_v52, %v2360_v40  ;;  %v2135_v18 = vrot.slane %v2134_v15, 4  ;;  %v2686_v30 = vmul.f32 %v2683_v12, %v4814_v19  ;;  %v2807_v52 = vadd.f32 1.0, %v3464_v0 }
 0x419   : > { %v1842_v14 = vadd.f32 %v1841_v63, %v1840_v49 }
 0x41a   : > { %v2753_v34 = vsel %vm548_vm3, %v2752_v35, %v2362_v60  ;;  %v2136_v28 = vadd.f32 %v2135_v18, %v2134_v15  ;;  %v2688_v1 = vsel %vm605_vm4, %v2686_v30, 0.0  ;;  %3471 = vrcp.f32 %v2807_v52 }
 0x41b   : > { %v1843_v38 = vrot.slane %v1842_v14, 1  ;;  %v2689_v47 = vadd.f32 %v2688_v1, %v2687_v41  ;;  %v2754_v19 = vsel %vm515_vm2, %v2753_v34, %v2399_v26  ;;  %v3477_v41 = vld [vmem:[#allocation2 + $0x10] sm:$0xff] }
 0x41c   : > { %v2137_v21 = vrot.slane %v2136_v28, 2  ;;  %v2424_v33 = vpop.permute.xlu1 %2423  ;;  %v2771_v26 = vmul.f32 %v3477_v41, %v4927_v24 }
 0x41d   : > { %v1844_v5 = vadd.f32 %v1843_v38, %v1842_v14  ;;  %v2690_v59 = vrot.slane %v2689_v47, 4  ;;  %v2427_v20 = vmul.f32 %v2424_v33, %v4737_v25  ;;  %v2770_v25 = vmul.f32 %v3476_v53, %v4927_v24  ;;  %v3466_v13 = vpop.eup %3465 }
 0x41e   : > { %v2138_v8 = vadd.f32 %v2137_v21, %v2136_v28  ;;  %v2808_v44 = vadd.f32 1.0, %v3466_v13  ;;  %v3468_v63 = vpop.eup %3467 }
 0x41f   : > { %v2741_v4 = vsel %vm482_vm1, %v4606_v37, %v1844_v5  ;;  %v2691_v35 = vadd.f32 %v2690_v59, %v2689_v47  ;;  %v2429_v48 = vsel %vm605_vm4, %v2427_v20, 0.0  ;;  %v2817_v34 = vmul.f32 %v3468_v63, %v3063_v54  ;;  %v3478_v59 = vld [vmem:[#allocation2 + $0x18] sm:$0xff] }
 0x420   : > { %v2773_v29 = vadd.f32 %v2769_v7, %v2741_v4  ;;  %v2139_v61 = vrot.slane %v2138_v8, 1  ;;  %v2430_v50 = vadd.f32 %v2429_v48, %v2428_v55  ;;  %v3470_v60 = vpop.eup %3469  ;;  %3473 = vrcp.f32 %v2808_v44 }
 0x421   : > { %v2692_v16 = vrot.slane %v2691_v35, 2  ;;  %v2716_v57 = vpop.permute.xlu1 %2715  ;;  %v2818_v28 = vmul.f32 %v3470_v60, %v3064_v23  ;;  %v2772_v20 = vmul.f32 %v3478_v59, %v4927_v24 }
 0x422   : > { %2777 = vst.msk [vmem:[#allocation6] sm:$0xff] %vm605_vm4, %v2773_v29  ;;  %v2140_v46 = vadd.f32 %v2139_v61, %v2138_v8  ;;  %v2431_v51 = vrot.slane %v2430_v50, 4  ;;  %v2722_v37 = vmul.f32 %v2716_v57, %v5291_v11  ;;  %v2837_v61 = vld [vmem:[%s421_s15 + $0x10] sm:$0xff] }
 0x423   : > { %v2693_v56 = vadd.f32 %v2692_v16, %v2691_v35 }
 0x424   : > { %v2748_v17 = vsel %vm482_vm1, %v2747_v32, %v2140_v46  ;;  %v2432_v31 = vadd.f32 %v2431_v51, %v2430_v50  ;;  %v2724_v40 = vsel %vm605_vm4, %v2722_v37, 0.0 }
 0x425   : > { %v2774_v45 = vadd.f32 %v2770_v25, %v2748_v17  ;;  %v2694_v49 = vrot.slane %v2693_v56, 1  ;;  %v2726_v39 = vadd.f32 %v2725_v43, %v2724_v40  ;;  %v2836_v25 = vld [vmem:[%s421_s15 + $0x8] sm:$0xff] }
 0x426   : > { %v2433_v15 = vrot.slane %v2432_v31, 2 }
 0x427   : > { %2778 = vst.msk [vmem:[#allocation6 + $0x8] sm:$0xff] %vm605_vm4, %v2774_v45  ;;  %v2695_v12 = vadd.f32 %v2694_v49, %v2693_v56  ;;  %v2727_v62 = vrot.slane %v2726_v39, 4  ;;  %v3472_v10 = vpop.eup %3471 }
 0x428   : > { %v2434_v18 = vadd.f32 %v2433_v15, %v2432_v31  ;;  %v2819_v55 = vmul.f32 %v3472_v10, %v3067_v6 }
 0x429   : > { %v2761_v32 = vsel %vm515_vm2, %v4892_v27, %v2695_v12  ;;  %v2728_v30 = vadd.f32 %v2727_v62, %v2726_v39  ;;  %v2789_v38 = vld [vmem:[#allocation6] sm:$0xff] }
 0x42a   : > { %v2435_v9 = vrot.slane %v2434_v18, 1  ;;  %v2821_v33 = vmul.f32 %v2817_v34, %v2789_v38 }
 0x42b   : > { %v2729_v14 = vrot.slane %v2728_v30, 2 }
 0x42c   : > { %v2436_v1 = vadd.f32 %v2435_v9, %v2434_v18 }
 0x42d   : > { %v2730_v47 = vadd.f32 %v2729_v14, %v2728_v30 }
 0x42e   : > { %v2755_v3 = vsel %vm482_vm1, %v2754_v19, %v2436_v1  ;;  %v2790_v27 = vld [vmem:[#allocation6 + $0x8] sm:$0xff]  ;;  %v3474_v19 = vpop.eup %3473 }
 0x42f   : > { %v2775_v7 = vadd.f32 %v2771_v26, %v2755_v3  ;;  %v2731_v21 = vrot.slane %v2730_v47, 1  ;;  %v2822_v5 = vmul.f32 %v2818_v28, %v2790_v27  ;;  %v2820_v24 = vmul.f32 %v3474_v19, %v3068_v22 }
 0x431   : > { %2779 = vst.msk [vmem:[#allocation6 + $0x10] sm:$0xff] %vm605_vm4, %v2775_v7  ;;  %v2732_v8 = vadd.f32 %v2731_v21, %v2730_v47  ;;  %v2825_v54 = vpack.c.bf16 %v2822_v5, %v2821_v33 }
 0x433   : > { %v2762_v42 = vsel %vm482_vm1, %v2761_v32, %v2732_v8  ;;  %3116 = vmatprep.mubr.msk.bf16.mxu1 %vm605_vm4, %v2825_v54 }
 0x434   : > { %v2776_v23 = vadd.f32 %v2772_v20, %v2762_v42 }
 0x436   : > { %2780 = vst.msk [vmem:[#allocation6 + $0x18] sm:$0xff] %vm605_vm4, %v2776_v23 }
 0x438   : > { %v2791_v58 = vld [vmem:[#allocation6 + $0x10] sm:$0xff] }
 0x439   : > { %v2823_v35 = vmul.f32 %v2819_v55, %v2791_v58 }
 0x43d   : > { %v2792_v4 = vld [vmem:[#allocation6 + $0x18] sm:$0xff] }
 0x43e   : > { %v2824_v48 = vmul.f32 %v2820_v24, %v2792_v4 }
 0x440   : > { %v2826_v29 = vpack.c.bf16 %v2824_v48, %v2823_v35 }
 0x442   : > { %3117 = vmatmul.mubr.msk.bf16.vlgmr.msra.gmra.mxu1 %vm605_vm4, %v2826_v29 }
 0x502   : > { %v3118_v6 = vpop.f32.mrf.mxu1 }
 0x503   : > { %v2912_v22 = vadd.f32 %v3118_v6, %v2837_v61 }
 0x504   : > { %v2903_v50 = vpop.f32.mrf.mxu1 }
 0x505   : > { %2921 = vst.msk [vmem:[%s426_s20 + $0x10] sm:$0xff] %vm2918_vm14, %v2912_v22  ;;  %v2904_v0 = vadd.f32 %v2903_v50, %v2835_v2 }
 0x506   : > { %v3119_v53 = vpop.f32.mrf.mxu1 }
 0x507   : > { %2919 = vst.msk [vmem:[%s426_s20] sm:$0xff] %vm2918_vm14, %v2904_v0  ;;  %v2915_v16 = vadd.f32 %v3119_v53, %v2838_v36 }
 0x508   : > { %v2906_v57 = vpop.f32.mrf.mxu1 }
 0x509   : > { %2922 = vst.msk [vmem:[%s426_s20 + $0x18] sm:$0xff] %vm2918_vm14, %v2915_v16  ;;  %v2907_v46 = vadd.f32 %v2906_v57, %v2836_v25 }
 0x50b   : > { %2920 = vst.msk [vmem:[%s426_s20 + $0x8] sm:$0xff] %vm2918_vm14, %v2907_v46 }
 0x50c PF: > { %s21_s17 = sadd.s32 1, %s3485_s17  }
 0x50d   : > { %p18_p4 = scmp.ge.s32.totalorder %s21_s17, 4  }
 0x50f   :  { %20 = sbr.rel (!%p18_p4) target bundleno = 1 (0x1), region = 100 }

</bundles_post_ra>
